<compile_context>
chip_gen: v7x
topology: tpu7x:2x2x1
jax: 0.10.0
libtpu: 0.0.40
codegen_flags: <defaults>
</compile_context>

<pallas_src>
import functools

import jax
import jax.numpy as jnp
from jax import lax
from jax.experimental import pallas as pl
from jax.experimental.pallas import tpu as pltpu

_MATMUL_DTYPE = jnp.bfloat16   # MXU-native operand dtype; accumulation stays f32.


# ---------------------------------------------------------------------------
# Fused Pallas kernel: all transformer layers for one chunk of (b, p) groups
# ---------------------------------------------------------------------------
def _layernorm_1pass(x, g, b, eps):
    # One pass over x: var = E[x^2] - E[x]^2 (halves the cross-lane reductions).
    mean = jnp.mean(x, axis=-1, keepdims=True)
    msq = jnp.mean(x * x, axis=-1, keepdims=True)
    var = msq - mean * mean
    return (x - mean) * lax.rsqrt(var + eps) * g + b


def _fused_transformer_kernel(x_ref,
                              ln1g_ref, ln1b_ref, wq_ref, wk_ref, wv_ref,
                              wo_ref, bo_ref,
                              ln2g_ref, ln2b_ref, w1_ref, b1_ref, w2_ref, b2_ref,
                              out_ref, *,
                              depth, heads, dim_head, n_tok, groups, eps=1e-5):
    scale = dim_head ** (-0.5)
    tokens = groups * n_tok
    dim = x_ref.shape[-1]

    def layer(l, x):
        # ---------------- PreNorm + multi-head self-attention ----------------
        xn = _layernorm_1pass(x, ln1g_ref[l], ln1b_ref[l], eps)     # f32 (tokens, D)
        xn_m = xn.astype(_MATMUL_DTYPE)

        wq = wq_ref[l]           # (heads, D, dh)  bf16, VMEM-resident
        wk = wk_ref[l]
        wv = wv_ref[l]
        wo = wo_ref[l]           # (heads, dh, D)  bf16

        attn_out = jnp.zeros((tokens, dim), jnp.float32)
        for h in range(heads):   # static loop; weights pre-split per head, so there are
            # no lane-slices of activations and no cross-head concat.
            q = jnp.dot(xn_m, wq[h], preferred_element_type=jnp.float32)   # (tokens, dh)
            k = jnp.dot(xn_m, wk[h], preferred_element_type=jnp.float32)
            v = jnp.dot(xn_m, wv[h], preferred_element_type=jnp.float32)
            q = q.reshape(groups, n_tok, dim_head)    # leading-dim split: no relayout
            k = k.reshape(groups, n_tok, dim_head)
            v = v.reshape(groups, n_tok, dim_head)

            # Group-batched attention (softmax local to each (batch, patch) group).
            dots = jnp.einsum('gnd,gmd->gnm',
                              q.astype(_MATMUL_DTYPE), k.astype(_MATMUL_DTYPE),
                              preferred_element_type=jnp.float32) * scale
            dots = dots - jnp.max(dots, axis=-1, keepdims=True)
            e = jnp.exp(dots)
            # EUP approximate reciprocal (~1e-3 relative) — intentional, see header.
            attn = e * pl.reciprocal(jnp.sum(e, axis=-1, keepdims=True), approx=True)
            o = jnp.einsum('gnm,gmd->gnd',
                           attn.astype(_MATMUL_DTYPE), v.astype(_MATMUL_DTYPE),
                           preferred_element_type=jnp.float32)      # (groups, n_tok, dh)
            o = o.reshape(tokens, dim_head)                         # free leading merge
            # Head "concat" folded into a sum of per-head output projections.
            attn_out = attn_out + jnp.dot(o.astype(_MATMUL_DTYPE), wo[h],
                                          preferred_element_type=jnp.float32)

        x = x + attn_out + bo_ref[l]                                 # residual (f32)

        # ---------------- PreNorm + FeedForward ----------------
        xn2 = _layernorm_1pass(x, ln2g_ref[l], ln2b_ref[l], eps)
        h1 = jnp.dot(xn2.astype(_MATMUL_DTYPE), w1_ref[l],
                     preferred_element_type=jnp.float32) + b1_ref[l]
        h1 = jnp.maximum(h1, 0.0)                                    # ReLU (f32)
        ffn = jnp.dot(h1.astype(_MATMUL_DTYPE), w2_ref[l],
                      preferred_element_type=jnp.float32) + b2_ref[l]
        return x + ffn                                               # residual (f32)

    x = x_ref[...].astype(jnp.float32)

    if depth <= 4:
        for l in range(depth):                 # static unroll for shallow stacks
            x = layer(l, x)
    else:
        # Deep stacks: bounded live ranges / program size via fori_loop; weight refs
        # support dynamic first-axis indexing.
        x = lax.fori_loop(0, depth, layer, x)

    out_ref[...] = x.astype(out_ref.dtype)


# ---------------------------------------------------------------------------
# Wrapper: single pallas_call for the whole transformer
# ---------------------------------------------------------------------------
def transformer_pallas(x, params, *, heads, dim_head, num_chunks=1):
    """x: (B, P, N, D); params: list (len=depth) of dicts in PyTorch-like layout."""
    B, P, N, D = x.shape
    G = B * P                     # independent (batch, patch) token groups
    T = G * N                     # total tokens
    depth = len(params)

    # num_chunks > 1 only pays on v7x (2 TensorCores) with enough work per chunk;
    # on single-TC v5e/v6e keep one chunk so every matmul stays maximally batched.
    assert G % num_chunks == 0, "num_chunks must divide B*P"
    groups_per_chunk = G // num_chunks
    tok_chunk = groups_per_chunk * N

    stack = lambda k: jnp.stack([p[k] for p in params], axis=0)

    # LayerNorm params / biases stay f32 (elementwise path); matmul weights go bf16.
    ln1_g, ln1_b = stack("ln1_g"), stack("ln1_b")                  # (depth, 1, D)
    ln2_g, ln2_b = stack("ln2_g"), stack("ln2_b")
    bo, b1, b2 = stack("bo"), stack("b1"), stack("b2")

    # Split QKV / output-projection weights per head (wrapper-side, plain XLA).
    wqkv = stack("wqkv").reshape(depth, D, 3, heads, dim_head)     # cols are h-major
    wq = jnp.transpose(wqkv[:, :, 0], (0, 2, 1, 3)).astype(_MATMUL_DTYPE)  # (depth,H,D,dh)
    wk = jnp.transpose(wqkv[:, :, 1], (0, 2, 1, 3)).astype(_MATMUL_DTYPE)
    wv = jnp.transpose(wqkv[:, :, 2], (0, 2, 1, 3)).astype(_MATMUL_DTYPE)
    wo = stack("wo").reshape(depth, heads, dim_head, D).astype(_MATMUL_DTYPE)
    w1 = stack("w1").astype(_MATMUL_DTYPE)                         # (depth, D, mlp)
    w2 = stack("w2").astype(_MATMUL_DTYPE)                         # (depth, mlp, D)

    weights = (ln1_g, ln1_b, wq, wk, wv, wo, bo, ln2_g, ln2_b, w1, b1, w2, b2)

    x2 = x.reshape(T, D)          # 2-D token slab for the kernel

    kernel = functools.partial(_fused_transformer_kernel,
                               depth=depth, heads=heads, dim_head=dim_head,
                               n_tok=N, groups=groups_per_chunk)

    def resident(arr):            # full-array, constant-index (VMEM-resident) spec
        nd = arr.ndim
        return pl.BlockSpec(arr.shape, lambda i, _nd=nd: (0,) * _nd)

    out2 = pl.pallas_call(
        kernel,
        out_shape=jax.ShapeDtypeStruct((T, D), x.dtype),
        grid=(num_chunks,),
        in_specs=[pl.BlockSpec((tok_chunk, D), lambda i: (i, 0))] +
                 [resident(w) for w in weights],
        out_specs=pl.BlockSpec((tok_chunk, D), lambda i: (i, 0)),
        compiler_params=pltpu.CompilerParams(dimension_semantics=("parallel",)),
    )(x2, *weights)

    return out2.reshape(B, P, N, D)


# ---------------------------------------------------------------------------
# Pure-JAX reference (mirrors the PyTorch forward) for correctness check
# ---------------------------------------------------------------------------
def _layernorm(x, g, b, eps=1e-5):
    mean = jnp.mean(x, axis=-1, keepdims=True)
    var = jnp.mean((x - mean) ** 2, axis=-1, keepdims=True)
    return (x - mean) * lax.rsqrt(var + eps) * g + b


def transformer_ref(x, params, *, heads, dim_head):
    inner = heads * dim_head
    scale = dim_head ** (-0.5)
    for p in params:
        xn = _layernorm(x, p["ln1_g"][0], p["ln1_b"][0])
        qkv = xn @ p["wqkv"]                                      # (B,P,N,3*inner)
        q, k, v = jnp.split(qkv, 3, axis=-1)
        B, P, N, _ = q.shape
        reshp = lambda t: t.reshape(B, P, N, heads, dim_head).transpose(0, 1, 3, 2, 4)
        q, k, v = reshp(q), reshp(k), reshp(v)                    # (B,P,H,N,dh)
        dots = jnp.einsum("bphnd,bphmd->bphnm", q, k) * scale
        attn = jax.nn.softmax(dots, axis=-1)
        out = jnp.einsum("bphnm,bphmd->bphnd", attn, v)
        out = out.transpose(0, 1, 3, 2, 4).reshape(B, P, N, inner)
        x = out @ p["wo"] + p["bo"][0] + x
        xn2 = _layernorm(x, p["ln2_g"][0], p["ln2_b"][0])
        h1 = jnp.maximum(xn2 @ p["w1"] + p["b1"][0], 0.0)
        x = h1 @ p["w2"] + p["b2"][0] + x
    return x


# ---------------------------------------------------------------------------
# Deterministic parameter init (weights pre-transposed for row-major matmuls)
# ---------------------------------------------------------------------------
def init_params(key, depth, dim, heads, dim_head, mlp_dim):
    inner = heads * dim_head
    params = []
    for _ in range(depth):
        key, *ks = jax.random.split(key, 5)
        params.append({
            "ln1_g": jnp.ones((1, dim), jnp.float32),
            "ln1_b": jnp.zeros((1, dim), jnp.float32),
            "wqkv": 0.02 * jax.random.normal(ks[0], (dim, 3 * inner), jnp.float32),
            "wo": 0.02 * jax.random.normal(ks[1], (inner, dim), jnp.float32),
            "bo": jnp.zeros((1, dim), jnp.float32),
            "ln2_g": jnp.ones((1, dim), jnp.float32),
            "ln2_b": jnp.zeros((1, dim), jnp.float32),
            "w1": 0.02 * jax.random.normal(ks[2], (dim, mlp_dim), jnp.float32),
            "b1": jnp.zeros((1, mlp_dim), jnp.float32),
            "w2": 0.02 * jax.random.normal(ks[3], (mlp_dim, dim), jnp.float32),
            "b2": jnp.zeros((1, dim), jnp.float32),
        })
    return params


if __name__ == "__main__":
    # Small shapes consistent with the MobileViT transformer: x is (B, P, N, D)
    B, P, N, D = 2, 4, 8, 32
    depth, heads, dim_head, mlp_dim = 2, 2, 16, 64

    key = jax.random.PRNGKey(0)
    kx, kp = jax.random.split(key)
    x = jax.random.normal(kx, (B, P, N, D), jnp.float32)
    params = init_params(kp, depth, D, heads, dim_head, mlp_dim)

    # Dropout layers in the PyTorch module are identity in eval mode (p=0.0) — omitted.
    out = transformer_pallas(x, params, heads=heads, dim_head=dim_head)
    out = jax.block_until_ready(out)

    ref = transformer_ref(x, params, heads=heads, dim_head=dim_head)
    assert out.shape == (B, P, N, D)
    # Tolerance accounts for bf16 matmul operands (f32 accumulation) and the EUP
    # approximate reciprocal in the softmax denominator — both intentional perf choices.
    assert jnp.allclose(out, ref, atol=1e-2, rtol=1e-2), "mismatch vs JAX reference"

    print("KERNEL_OK")
</pallas_src>

<mosaic_0001>
module attributes {stable_mosaic.version = 11 : i64} {
  func.func @_fused_transformer_kernel(%arg0: i32, %arg1: memref<64x32xf32, #tpu.memory_space<vmem>>, %arg2: memref<2x1x32xf32, #tpu.memory_space<vmem>>, %arg3: memref<2x1x32xf32, #tpu.memory_space<vmem>>, %arg4: memref<2x2x32x16xbf16, #tpu.memory_space<vmem>>, %arg5: memref<2x2x32x16xbf16, #tpu.memory_space<vmem>>, %arg6: memref<2x2x32x16xbf16, #tpu.memory_space<vmem>>, %arg7: memref<2x2x16x32xbf16, #tpu.memory_space<vmem>>, %arg8: memref<2x1x32xf32, #tpu.memory_space<vmem>>, %arg9: memref<2x1x32xf32, #tpu.memory_space<vmem>>, %arg10: memref<2x1x32xf32, #tpu.memory_space<vmem>>, %arg11: memref<2x32x64xbf16, #tpu.memory_space<vmem>>, %arg12: memref<2x1x64xf32, #tpu.memory_space<vmem>>, %arg13: memref<2x64x32xbf16, #tpu.memory_space<vmem>>, %arg14: memref<2x1x32xf32, #tpu.memory_space<vmem>>, %arg15: memref<64x32xf32, #tpu.memory_space<vmem>>) attributes {dimension_semantics = [#tpu.dimension_semantics<parallel>], iteration_bounds = array<i64: 1>, scalar_prefetch = 0 : i64, scratch_operands = 0 : i64, tpu.core_type = #tpu.core_type<tc>, window_params = [{transform_indices = @transform_0, window_bounds = array<i64: 64, 32>}, {pipeline_mode = #tpu.pipeline_mode<synchronous>, transform_indices = @transform_1, window_bounds = array<i64: 2, 1, 32>}, {pipeline_mode = #tpu.pipeline_mode<synchronous>, transform_indices = @transform_2, window_bounds = array<i64: 2, 1, 32>}, {pipeline_mode = #tpu.pipeline_mode<synchronous>, transform_indices = @transform_3, window_bounds = array<i64: 2, 2, 32, 16>}, {pipeline_mode = #tpu.pipeline_mode<synchronous>, transform_indices = @transform_4, window_bounds = array<i64: 2, 2, 32, 16>}, {pipeline_mode = #tpu.pipeline_mode<synchronous>, transform_indices = @transform_5, window_bounds = array<i64: 2, 2, 32, 16>}, {pipeline_mode = #tpu.pipeline_mode<synchronous>, transform_indices = @transform_6, window_bounds = array<i64: 2, 2, 16, 32>}, {pipeline_mode = #tpu.pipeline_mode<synchronous>, transform_indices = @transform_7, window_bounds = array<i64: 2, 1, 32>}, {pipeline_mode = #tpu.pipeline_mode<synchronous>, transform_indices = @transform_8, window_bounds = array<i64: 2, 1, 32>}, {pipeline_mode = #tpu.pipeline_mode<synchronous>, transform_indices = @transform_9, window_bounds = array<i64: 2, 1, 32>}, {pipeline_mode = #tpu.pipeline_mode<synchronous>, transform_indices = @transform_10, window_bounds = array<i64: 2, 32, 64>}, {pipeline_mode = #tpu.pipeline_mode<synchronous>, transform_indices = @transform_11, window_bounds = array<i64: 2, 1, 64>}, {pipeline_mode = #tpu.pipeline_mode<synchronous>, transform_indices = @transform_12, window_bounds = array<i64: 2, 64, 32>}, {pipeline_mode = #tpu.pipeline_mode<synchronous>, transform_indices = @transform_13, window_bounds = array<i64: 2, 1, 32>}, {transform_indices = @transform_14, window_bounds = array<i64: 64, 32>}]} {
    %c0 = arith.constant 0 : index
    %c0_0 = arith.constant 0 : index
    %0 = vector.load %arg1[%c0, %c0_0] : memref<64x32xf32, #tpu.memory_space<vmem>>, vector<64x32xf32>
    %c0_1 = arith.constant 0 : index
    %c0_2 = arith.constant 0 : index
    %c0_3 = arith.constant 0 : index
    %1 = vector.load %arg2[%c0_1, %c0_2, %c0_3] : memref<2x1x32xf32, #tpu.memory_space<vmem>>, vector<1x1x32xf32>
    %2 = vector.shape_cast %1 : vector<1x1x32xf32> to vector<1x32xf32>
    %c0_4 = arith.constant 0 : index
    %c0_5 = arith.constant 0 : index
    %c0_6 = arith.constant 0 : index
    %3 = vector.load %arg3[%c0_4, %c0_5, %c0_6] : memref<2x1x32xf32, #tpu.memory_space<vmem>>, vector<1x1x32xf32>
    %4 = vector.shape_cast %3 : vector<1x1x32xf32> to vector<1x32xf32>
    %cst = arith.constant dense<0.000000e+00> : vector<64xf32>
    %5 = vector.multi_reduction <add>, %0, %cst [1] : vector<64x32xf32> to vector<64xf32>
    %6 = vector.shape_cast %5 : vector<64xf32> to vector<64x1xf32>
    %cst_7 = arith.constant 3.200000e+01 : f32
    %7 = vector.broadcast %cst_7 : f32 to vector<64x1xf32>
    %8 = arith.divf %6, %7 : vector<64x1xf32>
    %9 = arith.mulf %0, %0 : vector<64x32xf32>
    %cst_8 = arith.constant dense<0.000000e+00> : vector<64xf32>
    %10 = vector.multi_reduction <add>, %9, %cst_8 [1] : vector<64x32xf32> to vector<64xf32>
    %11 = vector.shape_cast %10 : vector<64xf32> to vector<64x1xf32>
    %cst_9 = arith.constant 3.200000e+01 : f32
    %12 = vector.broadcast %cst_9 : f32 to vector<64x1xf32>
    %13 = arith.divf %11, %12 : vector<64x1xf32>
    %14 = arith.mulf %8, %8 : vector<64x1xf32>
    %15 = arith.subf %13, %14 : vector<64x1xf32>
    %16 = vector.broadcast %8 : vector<64x1xf32> to vector<64x32xf32>
    %17 = arith.subf %0, %16 : vector<64x32xf32>
    %cst_10 = arith.constant 9.99999974E-6 : f32
    %18 = vector.broadcast %cst_10 : f32 to vector<64x1xf32>
    %19 = arith.addf %15, %18 : vector<64x1xf32>
    %20 = math.rsqrt %19 : vector<64x1xf32>
    %21 = vector.broadcast %20 : vector<64x1xf32> to vector<64x32xf32>
    %22 = arith.mulf %17, %21 : vector<64x32xf32>
    %23 = vector.broadcast %2 : vector<1x32xf32> to vector<64x32xf32>
    %24 = arith.mulf %22, %23 : vector<64x32xf32>
    %25 = vector.broadcast %4 : vector<1x32xf32> to vector<64x32xf32>
    %26 = arith.addf %24, %25 : vector<64x32xf32>
    %27 = arith.truncf %26 : vector<64x32xf32> to vector<64x32xbf16>
    %c0_11 = arith.constant 0 : index
    %c0_12 = arith.constant 0 : index
    %c0_13 = arith.constant 0 : index
    %c0_14 = arith.constant 0 : index
    %28 = vector.load %arg4[%c0_11, %c0_12, %c0_13, %c0_14] : memref<2x2x32x16xbf16, #tpu.memory_space<vmem>>, vector<1x2x32x16xbf16>
    %29 = vector.shape_cast %28 : vector<1x2x32x16xbf16> to vector<2x32x16xbf16>
    %c0_15 = arith.constant 0 : index
    %c0_16 = arith.constant 0 : index
    %c0_17 = arith.constant 0 : index
    %c0_18 = arith.constant 0 : index
    %30 = vector.load %arg5[%c0_15, %c0_16, %c0_17, %c0_18] : memref<2x2x32x16xbf16, #tpu.memory_space<vmem>>, vector<1x2x32x16xbf16>
    %31 = vector.shape_cast %30 : vector<1x2x32x16xbf16> to vector<2x32x16xbf16>
    %c0_19 = arith.constant 0 : index
    %c0_20 = arith.constant 0 : index
    %c0_21 = arith.constant 0 : index
    %c0_22 = arith.constant 0 : index
    %32 = vector.load %arg6[%c0_19, %c0_20, %c0_21, %c0_22] : memref<2x2x32x16xbf16, #tpu.memory_space<vmem>>, vector<1x2x32x16xbf16>
    %33 = vector.shape_cast %32 : vector<1x2x32x16xbf16> to vector<2x32x16xbf16>
    %c0_23 = arith.constant 0 : index
    %c0_24 = arith.constant 0 : index
    %c0_25 = arith.constant 0 : index
    %c0_26 = arith.constant 0 : index
    %34 = vector.load %arg7[%c0_23, %c0_24, %c0_25, %c0_26] : memref<2x2x16x32xbf16, #tpu.memory_space<vmem>>, vector<1x2x16x32xbf16>
    %35 = vector.shape_cast %34 : vector<1x2x16x32xbf16> to vector<2x16x32xbf16>
    %cst_27 = arith.constant 0.000000e+00 : f32
    %36 = vector.broadcast %cst_27 : f32 to vector<64x32xf32>
    %37 = vector.extract_strided_slice %29 {offsets = [0, 0, 0], sizes = [1, 32, 16], strides = [1, 1, 1]} : vector<2x32x16xbf16> to vector<1x32x16xbf16>
    %38 = vector.shape_cast %37 : vector<1x32x16xbf16> to vector<32x16xbf16>
    %cst_28 = arith.constant dense<0.000000e+00> : vector<64x16xf32>
    %39 = tpu.matmul %27, %38, %cst_28 {dimension_numbers = #tpu.dot_dimension_numbers<[1], [0], [0], [1], [0, 0, 1, 1], [], []>} : vector<64x32xbf16>, vector<32x16xbf16>, vector<64x16xf32> -> vector<64x16xf32>
    %40 = vector.extract_strided_slice %31 {offsets = [0, 0, 0], sizes = [1, 32, 16], strides = [1, 1, 1]} : vector<2x32x16xbf16> to vector<1x32x16xbf16>
    %41 = vector.shape_cast %40 : vector<1x32x16xbf16> to vector<32x16xbf16>
    %cst_29 = arith.constant dense<0.000000e+00> : vector<64x16xf32>
    %42 = tpu.matmul %27, %41, %cst_29 {dimension_numbers = #tpu.dot_dimension_numbers<[1], [0], [0], [1], [0, 0, 1, 1], [], []>} : vector<64x32xbf16>, vector<32x16xbf16>, vector<64x16xf32> -> vector<64x16xf32>
    %43 = vector.extract_strided_slice %33 {offsets = [0, 0, 0], sizes = [1, 32, 16], strides = [1, 1, 1]} : vector<2x32x16xbf16> to vector<1x32x16xbf16>
    %44 = vector.shape_cast %43 : vector<1x32x16xbf16> to vector<32x16xbf16>
    %cst_30 = arith.constant dense<0.000000e+00> : vector<64x16xf32>
    %45 = tpu.matmul %27, %44, %cst_30 {dimension_numbers = #tpu.dot_dimension_numbers<[1], [0], [0], [1], [0, 0, 1, 1], [], []>} : vector<64x32xbf16>, vector<32x16xbf16>, vector<64x16xf32> -> vector<64x16xf32>
    %46 = vector.shape_cast %39 : vector<64x16xf32> to vector<8x8x16xf32>
    %47 = vector.shape_cast %42 : vector<64x16xf32> to vector<8x8x16xf32>
    %48 = vector.shape_cast %45 : vector<64x16xf32> to vector<8x8x16xf32>
    %49 = arith.truncf %46 : vector<8x8x16xf32> to vector<8x8x16xbf16>
    %50 = arith.truncf %47 : vector<8x8x16xf32> to vector<8x8x16xbf16>
    "tpu.trace_start"() <{level = 10 : i32, message = "gnd,gmd->gnm"}> : () -> ()
    %cst_31 = arith.constant dense<0.000000e+00> : vector<8x8x8xf32>
    %51 = tpu.matmul %49, %50, %cst_31 {dimension_numbers = #tpu.dot_dimension_numbers<[2], [2], [1], [1], [0, 0, 0, 1, 1, 1], [0], [0]>} : vector<8x8x16xbf16>, vector<8x8x16xbf16>, vector<8x8x8xf32> -> vector<8x8x8xf32>
    "tpu.trace_stop"() : () -> ()
    %cst_32 = arith.constant 2.500000e-01 : f32
    %52 = vector.broadcast %cst_32 : f32 to vector<8x8x8xf32>
    %53 = arith.mulf %51, %52 : vector<8x8x8xf32>
    %cst_33 = arith.constant dense<0xFF800000> : vector<8x8xf32>
    %54 = vector.multi_reduction <maximumf>, %53, %cst_33 [2] : vector<8x8x8xf32> to vector<8x8xf32>
    %55 = vector.shape_cast %54 : vector<8x8xf32> to vector<8x8x1xf32>
    %56 = vector.broadcast %55 : vector<8x8x1xf32> to vector<8x8x8xf32>
    %57 = arith.subf %53, %56 : vector<8x8x8xf32>
    %58 = math.exp %57 : vector<8x8x8xf32>
    %cst_34 = arith.constant dense<0.000000e+00> : vector<8x8xf32>
    %59 = vector.multi_reduction <add>, %58, %cst_34 [2] : vector<8x8x8xf32> to vector<8x8xf32>
    %60 = vector.shape_cast %59 : vector<8x8xf32> to vector<8x8x1xf32>
    %61 = tpu.reciprocal %60 {approx = true} : vector<8x8x1xf32> -> vector<8x8x1xf32>
    %62 = vector.broadcast %61 : vector<8x8x1xf32> to vector<8x8x8xf32>
    %63 = arith.mulf %58, %62 : vector<8x8x8xf32>
    %64 = arith.truncf %63 : vector<8x8x8xf32> to vector<8x8x8xbf16>
    %65 = arith.truncf %48 : vector<8x8x16xf32> to vector<8x8x16xbf16>
    "tpu.trace_start"() <{level = 10 : i32, message = "gnm,gmd->gnd"}> : () -> ()
    %cst_35 = arith.constant dense<0.000000e+00> : vector<8x8x16xf32>
    %66 = tpu.matmul %64, %65, %cst_35 {dimension_numbers = #tpu.dot_dimension_numbers<[2], [1], [1], [2], [0, 0, 0, 1, 1, 2], [0], [0]>} : vector<8x8x8xbf16>, vector<8x8x16xbf16>, vector<8x8x16xf32> -> vector<8x8x16xf32>
    "tpu.trace_stop"() : () -> ()
    %67 = vector.shape_cast %66 : vector<8x8x16xf32> to vector<64x16xf32>
    %68 = arith.truncf %67 : vector<64x16xf32> to vector<64x16xbf16>
    %69 = vector.extract_strided_slice %35 {offsets = [0, 0, 0], sizes = [1, 16, 32], strides = [1, 1, 1]} : vector<2x16x32xbf16> to vector<1x16x32xbf16>
    %70 = vector.shape_cast %69 : vector<1x16x32xbf16> to vector<16x32xbf16>
    %cst_36 = arith.constant dense<0.000000e+00> : vector<64x32xf32>
    %71 = tpu.matmul %68, %70, %cst_36 {dimension_numbers = #tpu.dot_dimension_numbers<[1], [0], [0], [1], [0, 0, 1, 1], [], []>} : vector<64x16xbf16>, vector<16x32xbf16>, vector<64x32xf32> -> vector<64x32xf32>
    %72 = arith.addf %36, %71 : vector<64x32xf32>
    %73 = vector.extract_strided_slice %29 {offsets = [1, 0, 0], sizes = [1, 32, 16], strides = [1, 1, 1]} : vector<2x32x16xbf16> to vector<1x32x16xbf16>
    %74 = vector.shape_cast %73 : vector<1x32x16xbf16> to vector<32x16xbf16>
    %cst_37 = arith.constant dense<0.000000e+00> : vector<64x16xf32>
    %75 = tpu.matmul %27, %74, %cst_37 {dimension_numbers = #tpu.dot_dimension_numbers<[1], [0], [0], [1], [0, 0, 1, 1], [], []>} : vector<64x32xbf16>, vector<32x16xbf16>, vector<64x16xf32> -> vector<64x16xf32>
    %76 = vector.extract_strided_slice %31 {offsets = [1, 0, 0], sizes = [1, 32, 16], strides = [1, 1, 1]} : vector<2x32x16xbf16> to vector<1x32x16xbf16>
    %77 = vector.shape_cast %76 : vector<1x32x16xbf16> to vector<32x16xbf16>
    %cst_38 = arith.constant dense<0.000000e+00> : vector<64x16xf32>
    %78 = tpu.matmul %27, %77, %cst_38 {dimension_numbers = #tpu.dot_dimension_numbers<[1], [0], [0], [1], [0, 0, 1, 1], [], []>} : vector<64x32xbf16>, vector<32x16xbf16>, vector<64x16xf32> -> vector<64x16xf32>
    %79 = vector.extract_strided_slice %33 {offsets = [1, 0, 0], sizes = [1, 32, 16], strides = [1, 1, 1]} : vector<2x32x16xbf16> to vector<1x32x16xbf16>
    %80 = vector.shape_cast %79 : vector<1x32x16xbf16> to vector<32x16xbf16>
    %cst_39 = arith.constant dense<0.000000e+00> : vector<64x16xf32>
    %81 = tpu.matmul %27, %80, %cst_39 {dimension_numbers = #tpu.dot_dimension_numbers<[1], [0], [0], [1], [0, 0, 1, 1], [], []>} : vector<64x32xbf16>, vector<32x16xbf16>, vector<64x16xf32> -> vector<64x16xf32>
    %82 = vector.shape_cast %75 : vector<64x16xf32> to vector<8x8x16xf32>
    %83 = vector.shape_cast %78 : vector<64x16xf32> to vector<8x8x16xf32>
    %84 = vector.shape_cast %81 : vector<64x16xf32> to vector<8x8x16xf32>
    %85 = arith.truncf %82 : vector<8x8x16xf32> to vector<8x8x16xbf16>
    %86 = arith.truncf %83 : vector<8x8x16xf32> to vector<8x8x16xbf16>
    "tpu.trace_start"() <{level = 10 : i32, message = "gnd,gmd->gnm"}> : () -> ()
    %cst_40 = arith.constant dense<0.000000e+00> : vector<8x8x8xf32>
    %87 = tpu.matmul %85, %86, %cst_40 {dimension_numbers = #tpu.dot_dimension_numbers<[2], [2], [1], [1], [0, 0, 0, 1, 1, 1], [0], [0]>} : vector<8x8x16xbf16>, vector<8x8x16xbf16>, vector<8x8x8xf32> -> vector<8x8x8xf32>
    "tpu.trace_stop"() : () -> ()
    %cst_41 = arith.constant 2.500000e-01 : f32
    %88 = vector.broadcast %cst_41 : f32 to vector<8x8x8xf32>
    %89 = arith.mulf %87, %88 : vector<8x8x8xf32>
    %cst_42 = arith.constant dense<0xFF800000> : vector<8x8xf32>
    %90 = vector.multi_reduction <maximumf>, %89, %cst_42 [2] : vector<8x8x8xf32> to vector<8x8xf32>
    %91 = vector.shape_cast %90 : vector<8x8xf32> to vector<8x8x1xf32>
    %92 = vector.broadcast %91 : vector<8x8x1xf32> to vector<8x8x8xf32>
    %93 = arith.subf %89, %92 : vector<8x8x8xf32>
    %94 = math.exp %93 : vector<8x8x8xf32>
    %cst_43 = arith.constant dense<0.000000e+00> : vector<8x8xf32>
    %95 = vector.multi_reduction <add>, %94, %cst_43 [2] : vector<8x8x8xf32> to vector<8x8xf32>
    %96 = vector.shape_cast %95 : vector<8x8xf32> to vector<8x8x1xf32>
    %97 = tpu.reciprocal %96 {approx = true} : vector<8x8x1xf32> -> vector<8x8x1xf32>
    %98 = vector.broadcast %97 : vector<8x8x1xf32> to vector<8x8x8xf32>
    %99 = arith.mulf %94, %98 : vector<8x8x8xf32>
    %100 = arith.truncf %99 : vector<8x8x8xf32> to vector<8x8x8xbf16>
    %101 = arith.truncf %84 : vector<8x8x16xf32> to vector<8x8x16xbf16>
    "tpu.trace_start"() <{level = 10 : i32, message = "gnm,gmd->gnd"}> : () -> ()
    %cst_44 = arith.constant dense<0.000000e+00> : vector<8x8x16xf32>
    %102 = tpu.matmul %100, %101, %cst_44 {dimension_numbers = #tpu.dot_dimension_numbers<[2], [1], [1], [2], [0, 0, 0, 1, 1, 2], [0], [0]>} : vector<8x8x8xbf16>, vector<8x8x16xbf16>, vector<8x8x16xf32> -> vector<8x8x16xf32>
    "tpu.trace_stop"() : () -> ()
    %103 = vector.shape_cast %102 : vector<8x8x16xf32> to vector<64x16xf32>
    %104 = arith.truncf %103 : vector<64x16xf32> to vector<64x16xbf16>
    %105 = vector.extract_strided_slice %35 {offsets = [1, 0, 0], sizes = [1, 16, 32], strides = [1, 1, 1]} : vector<2x16x32xbf16> to vector<1x16x32xbf16>
    %106 = vector.shape_cast %105 : vector<1x16x32xbf16> to vector<16x32xbf16>
    %cst_45 = arith.constant dense<0.000000e+00> : vector<64x32xf32>
    %107 = tpu.matmul %104, %106, %cst_45 {dimension_numbers = #tpu.dot_dimension_numbers<[1], [0], [0], [1], [0, 0, 1, 1], [], []>} : vector<64x16xbf16>, vector<16x32xbf16>, vector<64x32xf32> -> vector<64x32xf32>
    %108 = arith.addf %72, %107 : vector<64x32xf32>
    %109 = arith.addf %0, %108 : vector<64x32xf32>
    %c0_46 = arith.constant 0 : index
    %c0_47 = arith.constant 0 : index
    %c0_48 = arith.constant 0 : index
    %110 = vector.load %arg8[%c0_46, %c0_47, %c0_48] : memref<2x1x32xf32, #tpu.memory_space<vmem>>, vector<1x1x32xf32>
    %111 = vector.shape_cast %110 : vector<1x1x32xf32> to vector<1x32xf32>
    %112 = vector.broadcast %111 : vector<1x32xf32> to vector<64x32xf32>
    %113 = arith.addf %109, %112 : vector<64x32xf32>
    %c0_49 = arith.constant 0 : index
    %c0_50 = arith.constant 0 : index
    %c0_51 = arith.constant 0 : index
    %114 = vector.load %arg9[%c0_49, %c0_50, %c0_51] : memref<2x1x32xf32, #tpu.memory_space<vmem>>, vector<1x1x32xf32>
    %115 = vector.shape_cast %114 : vector<1x1x32xf32> to vector<1x32xf32>
    %c0_52 = arith.constant 0 : index
    %c0_53 = arith.constant 0 : index
    %c0_54 = arith.constant 0 : index
    %116 = vector.load %arg10[%c0_52, %c0_53, %c0_54] : memref<2x1x32xf32, #tpu.memory_space<vmem>>, vector<1x1x32xf32>
    %117 = vector.shape_cast %116 : vector<1x1x32xf32> to vector<1x32xf32>
    %cst_55 = arith.constant dense<0.000000e+00> : vector<64xf32>
    %118 = vector.multi_reduction <add>, %113, %cst_55 [1] : vector<64x32xf32> to vector<64xf32>
    %119 = vector.shape_cast %118 : vector<64xf32> to vector<64x1xf32>
    %cst_56 = arith.constant 3.200000e+01 : f32
    %120 = vector.broadcast %cst_56 : f32 to vector<64x1xf32>
    %121 = arith.divf %119, %120 : vector<64x1xf32>
    %122 = arith.mulf %113, %113 : vector<64x32xf32>
    %cst_57 = arith.constant dense<0.000000e+00> : vector<64xf32>
    %123 = vector.multi_reduction <add>, %122, %cst_57 [1] : vector<64x32xf32> to vector<64xf32>
    %124 = vector.shape_cast %123 : vector<64xf32> to vector<64x1xf32>
    %cst_58 = arith.constant 3.200000e+01 : f32
    %125 = vector.broadcast %cst_58 : f32 to vector<64x1xf32>
    %126 = arith.divf %124, %125 : vector<64x1xf32>
    %127 = arith.mulf %121, %121 : vector<64x1xf32>
    %128 = arith.subf %126, %127 : vector<64x1xf32>
    %129 = vector.broadcast %121 : vector<64x1xf32> to vector<64x32xf32>
    %130 = arith.subf %113, %129 : vector<64x32xf32>
    %cst_59 = arith.constant 9.99999974E-6 : f32
    %131 = vector.broadcast %cst_59 : f32 to vector<64x1xf32>
    %132 = arith.addf %128, %131 : vector<64x1xf32>
    %133 = math.rsqrt %132 : vector<64x1xf32>
    %134 = vector.broadcast %133 : vector<64x1xf32> to vector<64x32xf32>
    %135 = arith.mulf %130, %134 : vector<64x32xf32>
    %136 = vector.broadcast %115 : vector<1x32xf32> to vector<64x32xf32>
    %137 = arith.mulf %135, %136 : vector<64x32xf32>
    %138 = vector.broadcast %117 : vector<1x32xf32> to vector<64x32xf32>
    %139 = arith.addf %137, %138 : vector<64x32xf32>
    %140 = arith.truncf %139 : vector<64x32xf32> to vector<64x32xbf16>
    %c0_60 = arith.constant 0 : index
    %c0_61 = arith.constant 0 : index
    %c0_62 = arith.constant 0 : index
    %141 = vector.load %arg11[%c0_60, %c0_61, %c0_62] : memref<2x32x64xbf16, #tpu.memory_space<vmem>>, vector<1x32x64xbf16>
    %142 = vector.shape_cast %141 : vector<1x32x64xbf16> to vector<32x64xbf16>
    %cst_63 = arith.constant dense<0.000000e+00> : vector<64x64xf32>
    %143 = tpu.matmul %140, %142, %cst_63 {dimension_numbers = #tpu.dot_dimension_numbers<[1], [0], [0], [1], [0, 0, 1, 1], [], []>} : vector<64x32xbf16>, vector<32x64xbf16>, vector<64x64xf32> -> vector<64x64xf32>
    %c0_64 = arith.constant 0 : index
    %c0_65 = arith.constant 0 : index
    %c0_66 = arith.constant 0 : index
    %144 = vector.load %arg12[%c0_64, %c0_65, %c0_66] : memref<2x1x64xf32, #tpu.memory_space<vmem>>, vector<1x1x64xf32>
    %145 = vector.shape_cast %144 : vector<1x1x64xf32> to vector<1x64xf32>
    %146 = vector.broadcast %145 : vector<1x64xf32> to vector<64x64xf32>
    %147 = arith.addf %143, %146 : vector<64x64xf32>
    %cst_67 = arith.constant 0.000000e+00 : f32
    %148 = vector.broadcast %cst_67 : f32 to vector<64x64xf32>
    %149 = arith.maximumf %147, %148 : vector<64x64xf32>
    %150 = arith.truncf %149 : vector<64x64xf32> to vector<64x64xbf16>
    %c0_68 = arith.constant 0 : index
    %c0_69 = arith.constant 0 : index
    %c0_70 = arith.constant 0 : index
    %151 = vector.load %arg13[%c0_68, %c0_69, %c0_70] : memref<2x64x32xbf16, #tpu.memory_space<vmem>>, vector<1x64x32xbf16>
    %152 = vector.shape_cast %151 : vector<1x64x32xbf16> to vector<64x32xbf16>
    %cst_71 = arith.constant dense<0.000000e+00> : vector<64x32xf32>
    %153 = tpu.matmul %150, %152, %cst_71 {dimension_numbers = #tpu.dot_dimension_numbers<[1], [0], [0], [1], [0, 0, 1, 1], [], []>} : vector<64x64xbf16>, vector<64x32xbf16>, vector<64x32xf32> -> vector<64x32xf32>
    %c0_72 = arith.constant 0 : index
    %c0_73 = arith.constant 0 : index
    %c0_74 = arith.constant 0 : index
    %154 = vector.load %arg14[%c0_72, %c0_73, %c0_74] : memref<2x1x32xf32, #tpu.memory_space<vmem>>, vector<1x1x32xf32>
    %155 = vector.shape_cast %154 : vector<1x1x32xf32> to vector<1x32xf32>
    %156 = vector.broadcast %155 : vector<1x32xf32> to vector<64x32xf32>
    %157 = arith.addf %153, %156 : vector<64x32xf32>
    %158 = arith.addf %113, %157 : vector<64x32xf32>
    %c1 = arith.constant 1 : index
    %c0_75 = arith.constant 0 : index
    %c0_76 = arith.constant 0 : index
    %159 = vector.load %arg2[%c1, %c0_75, %c0_76] : memref<2x1x32xf32, #tpu.memory_space<vmem>>, vector<1x1x32xf32>
    %160 = vector.shape_cast %159 : vector<1x1x32xf32> to vector<1x32xf32>
    %c1_77 = arith.constant 1 : index
    %c0_78 = arith.constant 0 : index
    %c0_79 = arith.constant 0 : index
    %161 = vector.load %arg3[%c1_77, %c0_78, %c0_79] : memref<2x1x32xf32, #tpu.memory_space<vmem>>, vector<1x1x32xf32>
    %162 = vector.shape_cast %161 : vector<1x1x32xf32> to vector<1x32xf32>
    %cst_80 = arith.constant dense<0.000000e+00> : vector<64xf32>
    %163 = vector.multi_reduction <add>, %158, %cst_80 [1] : vector<64x32xf32> to vector<64xf32>
    %164 = vector.shape_cast %163 : vector<64xf32> to vector<64x1xf32>
    %cst_81 = arith.constant 3.200000e+01 : f32
    %165 = vector.broadcast %cst_81 : f32 to vector<64x1xf32>
    %166 = arith.divf %164, %165 : vector<64x1xf32>
    %167 = arith.mulf %158, %158 : vector<64x32xf32>
    %cst_82 = arith.constant dense<0.000000e+00> : vector<64xf32>
    %168 = vector.multi_reduction <add>, %167, %cst_82 [1] : vector<64x32xf32> to vector<64xf32>
    %169 = vector.shape_cast %168 : vector<64xf32> to vector<64x1xf32>
    %cst_83 = arith.constant 3.200000e+01 : f32
    %170 = vector.broadcast %cst_83 : f32 to vector<64x1xf32>
    %171 = arith.divf %169, %170 : vector<64x1xf32>
    %172 = arith.mulf %166, %166 : vector<64x1xf32>
    %173 = arith.subf %171, %172 : vector<64x1xf32>
    %174 = vector.broadcast %166 : vector<64x1xf32> to vector<64x32xf32>
    %175 = arith.subf %158, %174 : vector<64x32xf32>
    %cst_84 = arith.constant 9.99999974E-6 : f32
    %176 = vector.broadcast %cst_84 : f32 to vector<64x1xf32>
    %177 = arith.addf %173, %176 : vector<64x1xf32>
    %178 = math.rsqrt %177 : vector<64x1xf32>
    %179 = vector.broadcast %178 : vector<64x1xf32> to vector<64x32xf32>
    %180 = arith.mulf %175, %179 : vector<64x32xf32>
    %181 = vector.broadcast %160 : vector<1x32xf32> to vector<64x32xf32>
    %182 = arith.mulf %180, %181 : vector<64x32xf32>
    %183 = vector.broadcast %162 : vector<1x32xf32> to vector<64x32xf32>
    %184 = arith.addf %182, %183 : vector<64x32xf32>
    %185 = arith.truncf %184 : vector<64x32xf32> to vector<64x32xbf16>
    %c1_85 = arith.constant 1 : index
    %c0_86 = arith.constant 0 : index
    %c0_87 = arith.constant 0 : index
    %c0_88 = arith.constant 0 : index
    %186 = vector.load %arg4[%c1_85, %c0_86, %c0_87, %c0_88] : memref<2x2x32x16xbf16, #tpu.memory_space<vmem>>, vector<1x2x32x16xbf16>
    %187 = vector.shape_cast %186 : vector<1x2x32x16xbf16> to vector<2x32x16xbf16>
    %c1_89 = arith.constant 1 : index
    %c0_90 = arith.constant 0 : index
    %c0_91 = arith.constant 0 : index
    %c0_92 = arith.constant 0 : index
    %188 = vector.load %arg5[%c1_89, %c0_90, %c0_91, %c0_92] : memref<2x2x32x16xbf16, #tpu.memory_space<vmem>>, vector<1x2x32x16xbf16>
    %189 = vector.shape_cast %188 : vector<1x2x32x16xbf16> to vector<2x32x16xbf16>
    %c1_93 = arith.constant 1 : index
    %c0_94 = arith.constant 0 : index
    %c0_95 = arith.constant 0 : index
    %c0_96 = arith.constant 0 : index
    %190 = vector.load %arg6[%c1_93, %c0_94, %c0_95, %c0_96] : memref<2x2x32x16xbf16, #tpu.memory_space<vmem>>, vector<1x2x32x16xbf16>
    %191 = vector.shape_cast %190 : vector<1x2x32x16xbf16> to vector<2x32x16xbf16>
    %c1_97 = arith.constant 1 : index
    %c0_98 = arith.constant 0 : index
    %c0_99 = arith.constant 0 : index
    %c0_100 = arith.constant 0 : index
    %192 = vector.load %arg7[%c1_97, %c0_98, %c0_99, %c0_100] : memref<2x2x16x32xbf16, #tpu.memory_space<vmem>>, vector<1x2x16x32xbf16>
    %193 = vector.shape_cast %192 : vector<1x2x16x32xbf16> to vector<2x16x32xbf16>
    %cst_101 = arith.constant 0.000000e+00 : f32
    %194 = vector.broadcast %cst_101 : f32 to vector<64x32xf32>
    %195 = vector.extract_strided_slice %187 {offsets = [0, 0, 0], sizes = [1, 32, 16], strides = [1, 1, 1]} : vector<2x32x16xbf16> to vector<1x32x16xbf16>
    %196 = vector.shape_cast %195 : vector<1x32x16xbf16> to vector<32x16xbf16>
    %cst_102 = arith.constant dense<0.000000e+00> : vector<64x16xf32>
    %197 = tpu.matmul %185, %196, %cst_102 {dimension_numbers = #tpu.dot_dimension_numbers<[1], [0], [0], [1], [0, 0, 1, 1], [], []>} : vector<64x32xbf16>, vector<32x16xbf16>, vector<64x16xf32> -> vector<64x16xf32>
    %198 = vector.extract_strided_slice %189 {offsets = [0, 0, 0], sizes = [1, 32, 16], strides = [1, 1, 1]} : vector<2x32x16xbf16> to vector<1x32x16xbf16>
    %199 = vector.shape_cast %198 : vector<1x32x16xbf16> to vector<32x16xbf16>
    %cst_103 = arith.constant dense<0.000000e+00> : vector<64x16xf32>
    %200 = tpu.matmul %185, %199, %cst_103 {dimension_numbers = #tpu.dot_dimension_numbers<[1], [0], [0], [1], [0, 0, 1, 1], [], []>} : vector<64x32xbf16>, vector<32x16xbf16>, vector<64x16xf32> -> vector<64x16xf32>
    %201 = vector.extract_strided_slice %191 {offsets = [0, 0, 0], sizes = [1, 32, 16], strides = [1, 1, 1]} : vector<2x32x16xbf16> to vector<1x32x16xbf16>
    %202 = vector.shape_cast %201 : vector<1x32x16xbf16> to vector<32x16xbf16>
    %cst_104 = arith.constant dense<0.000000e+00> : vector<64x16xf32>
    %203 = tpu.matmul %185, %202, %cst_104 {dimension_numbers = #tpu.dot_dimension_numbers<[1], [0], [0], [1], [0, 0, 1, 1], [], []>} : vector<64x32xbf16>, vector<32x16xbf16>, vector<64x16xf32> -> vector<64x16xf32>
    %204 = vector.shape_cast %197 : vector<64x16xf32> to vector<8x8x16xf32>
    %205 = vector.shape_cast %200 : vector<64x16xf32> to vector<8x8x16xf32>
    %206 = vector.shape_cast %203 : vector<64x16xf32> to vector<8x8x16xf32>
    %207 = arith.truncf %204 : vector<8x8x16xf32> to vector<8x8x16xbf16>
    %208 = arith.truncf %205 : vector<8x8x16xf32> to vector<8x8x16xbf16>
    "tpu.trace_start"() <{level = 10 : i32, message = "gnd,gmd->gnm"}> : () -> ()
    %cst_105 = arith.constant dense<0.000000e+00> : vector<8x8x8xf32>
    %209 = tpu.matmul %207, %208, %cst_105 {dimension_numbers = #tpu.dot_dimension_numbers<[2], [2], [1], [1], [0, 0, 0, 1, 1, 1], [0], [0]>} : vector<8x8x16xbf16>, vector<8x8x16xbf16>, vector<8x8x8xf32> -> vector<8x8x8xf32>
    "tpu.trace_stop"() : () -> ()
    %cst_106 = arith.constant 2.500000e-01 : f32
    %210 = vector.broadcast %cst_106 : f32 to vector<8x8x8xf32>
    %211 = arith.mulf %209, %210 : vector<8x8x8xf32>
    %cst_107 = arith.constant dense<0xFF800000> : vector<8x8xf32>
    %212 = vector.multi_reduction <maximumf>, %211, %cst_107 [2] : vector<8x8x8xf32> to vector<8x8xf32>
    %213 = vector.shape_cast %212 : vector<8x8xf32> to vector<8x8x1xf32>
    %214 = vector.broadcast %213 : vector<8x8x1xf32> to vector<8x8x8xf32>
    %215 = arith.subf %211, %214 : vector<8x8x8xf32>
    %216 = math.exp %215 : vector<8x8x8xf32>
    %cst_108 = arith.constant dense<0.000000e+00> : vector<8x8xf32>
    %217 = vector.multi_reduction <add>, %216, %cst_108 [2] : vector<8x8x8xf32> to vector<8x8xf32>
    %218 = vector.shape_cast %217 : vector<8x8xf32> to vector<8x8x1xf32>
    %219 = tpu.reciprocal %218 {approx = true} : vector<8x8x1xf32> -> vector<8x8x1xf32>
    %220 = vector.broadcast %219 : vector<8x8x1xf32> to vector<8x8x8xf32>
    %221 = arith.mulf %216, %220 : vector<8x8x8xf32>
    %222 = arith.truncf %221 : vector<8x8x8xf32> to vector<8x8x8xbf16>
    %223 = arith.truncf %206 : vector<8x8x16xf32> to vector<8x8x16xbf16>
    "tpu.trace_start"() <{level = 10 : i32, message = "gnm,gmd->gnd"}> : () -> ()
    %cst_109 = arith.constant dense<0.000000e+00> : vector<8x8x16xf32>
    %224 = tpu.matmul %222, %223, %cst_109 {dimension_numbers = #tpu.dot_dimension_numbers<[2], [1], [1], [2], [0, 0, 0, 1, 1, 2], [0], [0]>} : vector<8x8x8xbf16>, vector<8x8x16xbf16>, vector<8x8x16xf32> -> vector<8x8x16xf32>
    "tpu.trace_stop"() : () -> ()
    %225 = vector.shape_cast %224 : vector<8x8x16xf32> to vector<64x16xf32>
    %226 = arith.truncf %225 : vector<64x16xf32> to vector<64x16xbf16>
    %227 = vector.extract_strided_slice %193 {offsets = [0, 0, 0], sizes = [1, 16, 32], strides = [1, 1, 1]} : vector<2x16x32xbf16> to vector<1x16x32xbf16>
    %228 = vector.shape_cast %227 : vector<1x16x32xbf16> to vector<16x32xbf16>
    %cst_110 = arith.constant dense<0.000000e+00> : vector<64x32xf32>
    %229 = tpu.matmul %226, %228, %cst_110 {dimension_numbers = #tpu.dot_dimension_numbers<[1], [0], [0], [1], [0, 0, 1, 1], [], []>} : vector<64x16xbf16>, vector<16x32xbf16>, vector<64x32xf32> -> vector<64x32xf32>
    %230 = arith.addf %194, %229 : vector<64x32xf32>
    %231 = vector.extract_strided_slice %187 {offsets = [1, 0, 0], sizes = [1, 32, 16], strides = [1, 1, 1]} : vector<2x32x16xbf16> to vector<1x32x16xbf16>
    %232 = vector.shape_cast %231 : vector<1x32x16xbf16> to vector<32x16xbf16>
    %cst_111 = arith.constant dense<0.000000e+00> : vector<64x16xf32>
    %233 = tpu.matmul %185, %232, %cst_111 {dimension_numbers = #tpu.dot_dimension_numbers<[1], [0], [0], [1], [0, 0, 1, 1], [], []>} : vector<64x32xbf16>, vector<32x16xbf16>, vector<64x16xf32> -> vector<64x16xf32>
    %234 = vector.extract_strided_slice %189 {offsets = [1, 0, 0], sizes = [1, 32, 16], strides = [1, 1, 1]} : vector<2x32x16xbf16> to vector<1x32x16xbf16>
    %235 = vector.shape_cast %234 : vector<1x32x16xbf16> to vector<32x16xbf16>
    %cst_112 = arith.constant dense<0.000000e+00> : vector<64x16xf32>
    %236 = tpu.matmul %185, %235, %cst_112 {dimension_numbers = #tpu.dot_dimension_numbers<[1], [0], [0], [1], [0, 0, 1, 1], [], []>} : vector<64x32xbf16>, vector<32x16xbf16>, vector<64x16xf32> -> vector<64x16xf32>
    %237 = vector.extract_strided_slice %191 {offsets = [1, 0, 0], sizes = [1, 32, 16], strides = [1, 1, 1]} : vector<2x32x16xbf16> to vector<1x32x16xbf16>
    %238 = vector.shape_cast %237 : vector<1x32x16xbf16> to vector<32x16xbf16>
    %cst_113 = arith.constant dense<0.000000e+00> : vector<64x16xf32>
    %239 = tpu.matmul %185, %238, %cst_113 {dimension_numbers = #tpu.dot_dimension_numbers<[1], [0], [0], [1], [0, 0, 1, 1], [], []>} : vector<64x32xbf16>, vector<32x16xbf16>, vector<64x16xf32> -> vector<64x16xf32>
    %240 = vector.shape_cast %233 : vector<64x16xf32> to vector<8x8x16xf32>
    %241 = vector.shape_cast %236 : vector<64x16xf32> to vector<8x8x16xf32>
    %242 = vector.shape_cast %239 : vector<64x16xf32> to vector<8x8x16xf32>
    %243 = arith.truncf %240 : vector<8x8x16xf32> to vector<8x8x16xbf16>
    %244 = arith.truncf %241 : vector<8x8x16xf32> to vector<8x8x16xbf16>
    "tpu.trace_start"() <{level = 10 : i32, message = "gnd,gmd->gnm"}> : () -> ()
    %cst_114 = arith.constant dense<0.000000e+00> : vector<8x8x8xf32>
    %245 = tpu.matmul %243, %244, %cst_114 {dimension_numbers = #tpu.dot_dimension_numbers<[2], [2], [1], [1], [0, 0, 0, 1, 1, 1], [0], [0]>} : vector<8x8x16xbf16>, vector<8x8x16xbf16>, vector<8x8x8xf32> -> vector<8x8x8xf32>
    "tpu.trace_stop"() : () -> ()
    %cst_115 = arith.constant 2.500000e-01 : f32
    %246 = vector.broadcast %cst_115 : f32 to vector<8x8x8xf32>
    %247 = arith.mulf %245, %246 : vector<8x8x8xf32>
    %cst_116 = arith.constant dense<0xFF800000> : vector<8x8xf32>
    %248 = vector.multi_reduction <maximumf>, %247, %cst_116 [2] : vector<8x8x8xf32> to vector<8x8xf32>
    %249 = vector.shape_cast %248 : vector<8x8xf32> to vector<8x8x1xf32>
    %250 = vector.broadcast %249 : vector<8x8x1xf32> to vector<8x8x8xf32>
    %251 = arith.subf %247, %250 : vector<8x8x8xf32>
    %252 = math.exp %251 : vector<8x8x8xf32>
    %cst_117 = arith.constant dense<0.000000e+00> : vector<8x8xf32>
    %253 = vector.multi_reduction <add>, %252, %cst_117 [2] : vector<8x8x8xf32> to vector<8x8xf32>
    %254 = vector.shape_cast %253 : vector<8x8xf32> to vector<8x8x1xf32>
    %255 = tpu.reciprocal %254 {approx = true} : vector<8x8x1xf32> -> vector<8x8x1xf32>
    %256 = vector.broadcast %255 : vector<8x8x1xf32> to vector<8x8x8xf32>
    %257 = arith.mulf %252, %256 : vector<8x8x8xf32>
    %258 = arith.truncf %257 : vector<8x8x8xf32> to vector<8x8x8xbf16>
    %259 = arith.truncf %242 : vector<8x8x16xf32> to vector<8x8x16xbf16>
    "tpu.trace_start"() <{level = 10 : i32, message = "gnm,gmd->gnd"}> : () -> ()
    %cst_118 = arith.constant dense<0.000000e+00> : vector<8x8x16xf32>
    %260 = tpu.matmul %258, %259, %cst_118 {dimension_numbers = #tpu.dot_dimension_numbers<[2], [1], [1], [2], [0, 0, 0, 1, 1, 2], [0], [0]>} : vector<8x8x8xbf16>, vector<8x8x16xbf16>, vector<8x8x16xf32> -> vector<8x8x16xf32>
    "tpu.trace_stop"() : () -> ()
    %261 = vector.shape_cast %260 : vector<8x8x16xf32> to vector<64x16xf32>
    %262 = arith.truncf %261 : vector<64x16xf32> to vector<64x16xbf16>
    %263 = vector.extract_strided_slice %193 {offsets = [1, 0, 0], sizes = [1, 16, 32], strides = [1, 1, 1]} : vector<2x16x32xbf16> to vector<1x16x32xbf16>
    %264 = vector.shape_cast %263 : vector<1x16x32xbf16> to vector<16x32xbf16>
    %cst_119 = arith.constant dense<0.000000e+00> : vector<64x32xf32>
    %265 = tpu.matmul %262, %264, %cst_119 {dimension_numbers = #tpu.dot_dimension_numbers<[1], [0], [0], [1], [0, 0, 1, 1], [], []>} : vector<64x16xbf16>, vector<16x32xbf16>, vector<64x32xf32> -> vector<64x32xf32>
    %266 = arith.addf %230, %265 : vector<64x32xf32>
    %267 = arith.addf %158, %266 : vector<64x32xf32>
    %c1_120 = arith.constant 1 : index
    %c0_121 = arith.constant 0 : index
    %c0_122 = arith.constant 0 : index
    %268 = vector.load %arg8[%c1_120, %c0_121, %c0_122] : memref<2x1x32xf32, #tpu.memory_space<vmem>>, vector<1x1x32xf32>
    %269 = vector.shape_cast %268 : vector<1x1x32xf32> to vector<1x32xf32>
    %270 = vector.broadcast %269 : vector<1x32xf32> to vector<64x32xf32>
    %271 = arith.addf %267, %270 : vector<64x32xf32>
    %c1_123 = arith.constant 1 : index
    %c0_124 = arith.constant 0 : index
    %c0_125 = arith.constant 0 : index
    %272 = vector.load %arg9[%c1_123, %c0_124, %c0_125] : memref<2x1x32xf32, #tpu.memory_space<vmem>>, vector<1x1x32xf32>
    %273 = vector.shape_cast %272 : vector<1x1x32xf32> to vector<1x32xf32>
    %c1_126 = arith.constant 1 : index
    %c0_127 = arith.constant 0 : index
    %c0_128 = arith.constant 0 : index
    %274 = vector.load %arg10[%c1_126, %c0_127, %c0_128] : memref<2x1x32xf32, #tpu.memory_space<vmem>>, vector<1x1x32xf32>
    %275 = vector.shape_cast %274 : vector<1x1x32xf32> to vector<1x32xf32>
    %cst_129 = arith.constant dense<0.000000e+00> : vector<64xf32>
    %276 = vector.multi_reduction <add>, %271, %cst_129 [1] : vector<64x32xf32> to vector<64xf32>
    %277 = vector.shape_cast %276 : vector<64xf32> to vector<64x1xf32>
    %cst_130 = arith.constant 3.200000e+01 : f32
    %278 = vector.broadcast %cst_130 : f32 to vector<64x1xf32>
    %279 = arith.divf %277, %278 : vector<64x1xf32>
    %280 = arith.mulf %271, %271 : vector<64x32xf32>
    %cst_131 = arith.constant dense<0.000000e+00> : vector<64xf32>
    %281 = vector.multi_reduction <add>, %280, %cst_131 [1] : vector<64x32xf32> to vector<64xf32>
    %282 = vector.shape_cast %281 : vector<64xf32> to vector<64x1xf32>
    %cst_132 = arith.constant 3.200000e+01 : f32
    %283 = vector.broadcast %cst_132 : f32 to vector<64x1xf32>
    %284 = arith.divf %282, %283 : vector<64x1xf32>
    %285 = arith.mulf %279, %279 : vector<64x1xf32>
    %286 = arith.subf %284, %285 : vector<64x1xf32>
    %287 = vector.broadcast %279 : vector<64x1xf32> to vector<64x32xf32>
    %288 = arith.subf %271, %287 : vector<64x32xf32>
    %cst_133 = arith.constant 9.99999974E-6 : f32
    %289 = vector.broadcast %cst_133 : f32 to vector<64x1xf32>
    %290 = arith.addf %286, %289 : vector<64x1xf32>
    %291 = math.rsqrt %290 : vector<64x1xf32>
    %292 = vector.broadcast %291 : vector<64x1xf32> to vector<64x32xf32>
    %293 = arith.mulf %288, %292 : vector<64x32xf32>
    %294 = vector.broadcast %273 : vector<1x32xf32> to vector<64x32xf32>
    %295 = arith.mulf %293, %294 : vector<64x32xf32>
    %296 = vector.broadcast %275 : vector<1x32xf32> to vector<64x32xf32>
    %297 = arith.addf %295, %296 : vector<64x32xf32>
    %298 = arith.truncf %297 : vector<64x32xf32> to vector<64x32xbf16>
    %c1_134 = arith.constant 1 : index
    %c0_135 = arith.constant 0 : index
    %c0_136 = arith.constant 0 : index
    %299 = vector.load %arg11[%c1_134, %c0_135, %c0_136] : memref<2x32x64xbf16, #tpu.memory_space<vmem>>, vector<1x32x64xbf16>
    %300 = vector.shape_cast %299 : vector<1x32x64xbf16> to vector<32x64xbf16>
    %cst_137 = arith.constant dense<0.000000e+00> : vector<64x64xf32>
    %301 = tpu.matmul %298, %300, %cst_137 {dimension_numbers = #tpu.dot_dimension_numbers<[1], [0], [0], [1], [0, 0, 1, 1], [], []>} : vector<64x32xbf16>, vector<32x64xbf16>, vector<64x64xf32> -> vector<64x64xf32>
    %c1_138 = arith.constant 1 : index
    %c0_139 = arith.constant 0 : index
    %c0_140 = arith.constant 0 : index
    %302 = vector.load %arg12[%c1_138, %c0_139, %c0_140] : memref<2x1x64xf32, #tpu.memory_space<vmem>>, vector<1x1x64xf32>
    %303 = vector.shape_cast %302 : vector<1x1x64xf32> to vector<1x64xf32>
    %304 = vector.broadcast %303 : vector<1x64xf32> to vector<64x64xf32>
    %305 = arith.addf %301, %304 : vector<64x64xf32>
    %cst_141 = arith.constant 0.000000e+00 : f32
    %306 = vector.broadcast %cst_141 : f32 to vector<64x64xf32>
    %307 = arith.maximumf %305, %306 : vector<64x64xf32>
    %308 = arith.truncf %307 : vector<64x64xf32> to vector<64x64xbf16>
    %c1_142 = arith.constant 1 : index
    %c0_143 = arith.constant 0 : index
    %c0_144 = arith.constant 0 : index
    %309 = vector.load %arg13[%c1_142, %c0_143, %c0_144] : memref<2x64x32xbf16, #tpu.memory_space<vmem>>, vector<1x64x32xbf16>
    %310 = vector.shape_cast %309 : vector<1x64x32xbf16> to vector<64x32xbf16>
    %cst_145 = arith.constant dense<0.000000e+00> : vector<64x32xf32>
    %311 = tpu.matmul %308, %310, %cst_145 {dimension_numbers = #tpu.dot_dimension_numbers<[1], [0], [0], [1], [0, 0, 1, 1], [], []>} : vector<64x64xbf16>, vector<64x32xbf16>, vector<64x32xf32> -> vector<64x32xf32>
    %c1_146 = arith.constant 1 : index
    %c0_147 = arith.constant 0 : index
    %c0_148 = arith.constant 0 : index
    %312 = vector.load %arg14[%c1_146, %c0_147, %c0_148] : memref<2x1x32xf32, #tpu.memory_space<vmem>>, vector<1x1x32xf32>
    %313 = vector.shape_cast %312 : vector<1x1x32xf32> to vector<1x32xf32>
    %314 = vector.broadcast %313 : vector<1x32xf32> to vector<64x32xf32>
    %315 = arith.addf %311, %314 : vector<64x32xf32>
    %316 = arith.addf %271, %315 : vector<64x32xf32>
    %c0_149 = arith.constant 0 : index
    %c0_150 = arith.constant 0 : index
    %317 = vector.load %arg15[%c0_149, %c0_150] : memref<64x32xf32, #tpu.memory_space<vmem>>, vector<64x32xf32>
    tpu.vector_store %arg15[%c0_149, %c0_150], %316 {strides = array<i32>} : memref<64x32xf32, #tpu.memory_space<vmem>>, vector<64x32xf32>,
    return
  }
  func.func @transform_0(%arg0: i32) -> (i32, i32) {
    %c0_i32 = arith.constant 0 : i32
    %c0_i32_0 = arith.constant 0 : i32
    return %arg0, %c0_i32 : i32, i32
  }
  func.func @transform_1(%arg0: i32) -> (i32, i32, i32) {
    %c0_i32 = arith.constant 0 : i32
    %c0_i32_0 = arith.constant 0 : i32
    %c0_i32_1 = arith.constant 0 : i32
    %c0_i32_2 = arith.constant 0 : i32
    return %c0_i32, %c0_i32_0, %c0_i32_1 : i32, i32, i32
  }
  func.func @transform_2(%arg0: i32) -> (i32, i32, i32) {
    %c0_i32 = arith.constant 0 : i32
    %c0_i32_0 = arith.constant 0 : i32
    %c0_i32_1 = arith.constant 0 : i32
    %c0_i32_2 = arith.constant 0 : i32
    return %c0_i32, %c0_i32_0, %c0_i32_1 : i32, i32, i32
  }
  func.func @transform_3(%arg0: i32) -> (i32, i32, i32, i32) {
    %c0_i32 = arith.constant 0 : i32
    %c0_i32_0 = arith.constant 0 : i32
    %c0_i32_1 = arith.constant 0 : i32
    %c0_i32_2 = arith.constant 0 : i32
    %c0_i32_3 = arith.constant 0 : i32
    return %c0_i32, %c0_i32_0, %c0_i32_1, %c0_i32_2 : i32, i32, i32, i32
  }
  func.func @transform_4(%arg0: i32) -> (i32, i32, i32, i32) {
    %c0_i32 = arith.constant 0 : i32
    %c0_i32_0 = arith.constant 0 : i32
    %c0_i32_1 = arith.constant 0 : i32
    %c0_i32_2 = arith.constant 0 : i32
    %c0_i32_3 = arith.constant 0 : i32
    return %c0_i32, %c0_i32_0, %c0_i32_1, %c0_i32_2 : i32, i32, i32, i32
  }
  func.func @transform_5(%arg0: i32) -> (i32, i32, i32, i32) {
    %c0_i32 = arith.constant 0 : i32
    %c0_i32_0 = arith.constant 0 : i32
    %c0_i32_1 = arith.constant 0 : i32
    %c0_i32_2 = arith.constant 0 : i32
    %c0_i32_3 = arith.constant 0 : i32
    return %c0_i32, %c0_i32_0, %c0_i32_1, %c0_i32_2 : i32, i32, i32, i32
  }
  func.func @transform_6(%arg0: i32) -> (i32, i32, i32, i32) {
    %c0_i32 = arith.constant 0 : i32
    %c0_i32_0 = arith.constant 0 : i32
    %c0_i32_1 = arith.constant 0 : i32
    %c0_i32_2 = arith.constant 0 : i32
    %c0_i32_3 = arith.constant 0 : i32
    return %c0_i32, %c0_i32_0, %c0_i32_1, %c0_i32_2 : i32, i32, i32, i32
  }
  func.func @transform_7(%arg0: i32) -> (i32, i32, i32) {
    %c0_i32 = arith.constant 0 : i32
    %c0_i32_0 = arith.constant 0 : i32
    %c0_i32_1 = arith.constant 0 : i32
    %c0_i32_2 = arith.constant 0 : i32
    return %c0_i32, %c0_i32_0, %c0_i32_1 : i32, i32, i32
  }
  func.func @transform_8(%arg0: i32) -> (i32, i32, i32) {
    %c0_i32 = arith.constant 0 : i32
    %c0_i32_0 = arith.constant 0 : i32
    %c0_i32_1 = arith.constant 0 : i32
    %c0_i32_2 = arith.constant 0 : i32
    return %c0_i32, %c0_i32_0, %c0_i32_1 : i32, i32, i32
  }
  func.func @transform_9(%arg0: i32) -> (i32, i32, i32) {
    %c0_i32 = arith.constant 0 : i32
    %c0_i32_0 = arith.constant 0 : i32
    %c0_i32_1 = arith.constant 0 : i32
    %c0_i32_2 = arith.constant 0 : i32
    return %c0_i32, %c0_i32_0, %c0_i32_1 : i32, i32, i32
  }
  func.func @transform_10(%arg0: i32) -> (i32, i32, i32) {
    %c0_i32 = arith.constant 0 : i32
    %c0_i32_0 = arith.constant 0 : i32
    %c0_i32_1 = arith.constant 0 : i32
    %c0_i32_2 = arith.constant 0 : i32
    return %c0_i32, %c0_i32_0, %c0_i32_1 : i32, i32, i32
  }
  func.func @transform_11(%arg0: i32) -> (i32, i32, i32) {
    %c0_i32 = arith.constant 0 : i32
    %c0_i32_0 = arith.constant 0 : i32
    %c0_i32_1 = arith.constant 0 : i32
    %c0_i32_2 = arith.constant 0 : i32
    return %c0_i32, %c0_i32_0, %c0_i32_1 : i32, i32, i32
  }
  func.func @transform_12(%arg0: i32) -> (i32, i32, i32) {
    %c0_i32 = arith.constant 0 : i32
    %c0_i32_0 = arith.constant 0 : i32
    %c0_i32_1 = arith.constant 0 : i32
    %c0_i32_2 = arith.constant 0 : i32
    return %c0_i32, %c0_i32_0, %c0_i32_1 : i32, i32, i32
  }
  func.func @transform_13(%arg0: i32) -> (i32, i32, i32) {
    %c0_i32 = arith.constant 0 : i32
    %c0_i32_0 = arith.constant 0 : i32
    %c0_i32_1 = arith.constant 0 : i32
    %c0_i32_2 = arith.constant 0 : i32
    return %c0_i32, %c0_i32_0, %c0_i32_1 : i32, i32, i32
  }
  func.func @transform_14(%arg0: i32) -> (i32, i32) {
    %c0_i32 = arith.constant 0 : i32
    %c0_i32_0 = arith.constant 0 : i32
    return %arg0, %c0_i32 : i32, i32
  }
}

</mosaic_0001>

<bundles_post_ra>
// kernel: tpu_custom_call.1
= control target key start
LH: loop header
LB: loop body
LE: loop exit
PB: predicated region body
PF: predicated region fallthrough
CT: control target
= control target key end

     0   :  { %vm58_vm0 = vcmask 261120   ;;  %vm7405_vm1 = vmmov 0   ;;  %vm499_vm2 = vcmask 130048   ;;  %vm984_vm3 = vcmask 1043456   ;;  %s8944_s0 = inlined_call_operand.vmem [shape: f32[64,32], index: 0, kind: input, shape index: {}]   ;;  %s8945_s3 = inlined_call_operand.vmem [shape: bf16[2,2,32,16], index: 3, kind: input, shape index: {}]   ;;  %s8946_s4 = inlined_call_operand.vmem [shape: bf16[2,2,32,16], index: 4, kind: input, shape index: {}]   ;;  %s8947_s5 = inlined_call_operand.vmem [shape: bf16[2,2,32,16], index: 5, kind: input, shape index: {}]   ;;  %s8948_s1 = inlined_call_operand.vmem [shape: f32[2,1,32], index: 1, kind: input, shape index: {}]   ;;  %s8949_s2 = inlined_call_operand.vmem [shape: f32[2,1,32], index: 2, kind: input, shape index: {}]   ;;  %s8950_s6 = inlined_call_operand.vmem [shape: bf16[2,2,16,32], index: 6, kind: input, shape index: {}]   ;;  %s8951_s7 = inlined_call_operand.vmem [shape: f32[2,1,32], index: 7, kind: input, shape index: {}]   ;;  %s8952_s10 = inlined_call_operand.vmem [shape: bf16[2,32,64], index: 10, kind: input, shape index: {}]   ;;  %s8953_s12 = inlined_call_operand.vmem [shape: bf16[2,64,32], index: 12, kind: input, shape index: {}]   ;;  %s8954_s8 = inlined_call_operand.vmem [shape: f32[2,1,32], index: 8, kind: input, shape index: {}]   ;;  %s8955_s9 = inlined_call_operand.vmem [shape: f32[2,1,32], index: 9, kind: input, shape index: {}]   ;;  %s8956_s11 = inlined_call_operand.vmem [shape: f32[2,1,64], index: 11, kind: input, shape index: {}]   ;;  %s8957_s13 = inlined_call_operand.vmem [shape: f32[2,1,32], index: 13, kind: input, shape index: {}]   ;;  %s8958_s14 = inlined_call_operand.vmem [shape: f32[64,32], index: 14, kind: output, shape index: {}]  }
   0x1   :  { %v7484_v0 = vld [vmem:[%s8944_s0 + $0x10] sm:$0xff]  ;;  %v7489_v1 = vld [vmem:[%s8944_s0] sm:$0xff]  ;;  %v7494_v2 = vld [vmem:[%s8944_s0 + $0x18] sm:$0xff]  ;;  %vm876_vm4 = vcmask 64512   ;;  %vm2947_vm5 = vcmask 523264  }
   0x2   :  { %v65_v3 = vsel %vm58_vm0, %v7484_v0, 0.0  ;;  %v59_v4 = vsel %vm58_vm0, %v7489_v1, 0.0  ;;  %v7503_v5 = vld [vmem:[%s8944_s0 + $0x8] sm:$0xff]  ;;  %v68_v6 = vsel %vm58_vm0, %v7494_v2, 0.0  ;;  %v92_v9 = vmul.f32 %v7489_v1, %v7489_v1  ;;  %v7529_v17 = vld [vmem:[%s8944_s0 + $0x20] sm:$0xff]  ;;  %v7538_v20 = vld [vmem:[%s8944_s0 + $0x38] sm:$0xff] }
   0x3   :  { %66 = vadd.xlane.f32.xlu1 %v65_v3  ;;  %60 = vadd.xlane.f32.xlu0 %v59_v4  ;;  %v62_v7 = vsel %vm58_vm0, %v7503_v5, 0.0  ;;  %v93_v8 = vmul.f32 %v7503_v5, %v7503_v5  ;;  %v95_v12 = vmul.f32 %v7494_v2, %v7494_v2  ;;  %v94_v13 = vmul.f32 %v7484_v0, %v7484_v0  ;;  %v7524_v16 = vld [vmem:[%s8944_s0 + $0x28] sm:$0xff]  ;;  %v7543_v21 = vld [vmem:[%s8944_s0 + $0x30] sm:$0xff]  ;;  %v7164_v32 = vld [vmem:[%s8945_s3] sm:$0xff]  }
   0x4   :  { %v100_v11 = vsel %vm58_vm0, %v92_v9, 0.0  ;;  %v74_v18 = vsel %vm58_vm0, %v7524_v16, 0.0  ;;  %v71_v19 = vsel %vm58_vm0, %v7529_v17, 0.0  ;;  %v80_v22 = vsel %vm58_vm0, %v7538_v20, 0.0  ;;  %v7165_v33 = vld [vmem:[%s8946_s4] sm:$0xff]   ;;  %6522 = vmatprep.subr.bf16.mxu0 %v7164_v32  ;;  %v7166_v34 = vld [vmem:[%s8945_s3 + $0x8] sm:$0xff]  }
   0x5   :  { %v103_v10 = vsel %vm58_vm0, %v93_v8, 0.0  ;;  %v109_v14 = vsel %vm58_vm0, %v95_v12, 0.0  ;;  %v106_v15 = vsel %vm58_vm0, %v94_v13, 0.0  ;;  %v77_v23 = vsel %vm58_vm0, %v7543_v21, 0.0  ;;  %6534 = vmatprep.subr.bf16.mxu1 %v7165_v33  ;;  %6523 = vmatpush3.bf16.msra.mxu0 %v7164_v32  ;;  %v7167_v35 = vld [vmem:[%s8946_s4 + $0x8] sm:$0xff]   ;;  %v7576_v36 = vld [vmem:[%s8947_s5] sm:$0xff]  }
   0x6   :  { %v97_v24 = vmul.f32 %v7524_v16, %v7524_v16  ;;  %v96_v25 = vmul.f32 %v7529_v17, %v7529_v17  ;;  %v99_v28 = vmul.f32 %v7538_v20, %v7538_v20  ;;  %v98_v29 = vmul.f32 %v7543_v21, %v7543_v21  ;;  %6535 = vmatpush3.bf16.msra.mxu1 %v7165_v33  ;;  %v6030_v32 = vld [vmem:[%s8949_s2] ss:$0 sm:$0xff] }
   0x7   :  { %69 = vadd.xlane.f32.xlu1 %v68_v6  ;;  %63 = vadd.xlane.f32.xlu0 %v62_v7 }
   0x8   :  { %v115_v26 = vsel %vm58_vm0, %v97_v24, 0.0  ;;  %v112_v27 = vsel %vm58_vm0, %v96_v25, 0.0  ;;  %v121_v30 = vsel %vm58_vm0, %v99_v28, 0.0  ;;  %v118_v31 = vsel %vm58_vm0, %v98_v29, 0.0  ;;  %6524 = vmatprep.subr.bf16.mxu0 %v7166_v34  ;;  %6536 = vmatprep.subr.bf16.mxu1 %v7167_v35  ;;  %v7604_v24 = vld [vmem:[%s8948_s1] ss:$0 sm:$0xff] }
   0x9   :  { %6525 = vmatpush3.bf16.msra.mxu0 %v7166_v34 }
   0xa   :  { %6537 = vmatpush3.bf16.msra.mxu1 %v7167_v35  ;;  %6546 = vmatprep.subr.bf16.mxu0 %v7576_v36 }
   0xb   :  { %104 = vadd.xlane.f32.xlu1 %v103_v10  ;;  %101 = vadd.xlane.f32.xlu0 %v100_v11 }
   0xf   :  { %110 = vadd.xlane.f32.xlu1 %v109_v14  ;;  %107 = vadd.xlane.f32.xlu0 %v106_v15 }
  0x13   :  { %75 = vadd.xlane.f32.xlu1 %v74_v18  ;;  %72 = vadd.xlane.f32.xlu0 %v71_v19 }
  0x17   :  { %81 = vadd.xlane.f32.xlu1 %v80_v22  ;;  %78 = vadd.xlane.f32.xlu0 %v77_v23 }
  0x1b   :  { %116 = vadd.xlane.f32.xlu1 %v115_v26  ;;  %113 = vadd.xlane.f32.xlu0 %v112_v27 }
  0x1f   :  { %122 = vadd.xlane.f32.xlu1 %v121_v30  ;;  %119 = vadd.xlane.f32.xlu0 %v118_v31 }
  0x90   :  { %v67_v37 = vpop.xlane.xlu1 %66  ;;  %v61_v38 = vpop.xlane.xlu0 %60 }
  0x91   :  { %v84_v41 = vmul.f32 0.03125, %v61_v38  ;;  %v7579_v43 = vmul.f32 0.03125, %v67_v37 }
  0x93   :  { %v132_v47 = vmul.f32 %v84_v41, %v84_v41  ;;  %v134_v53 = vmul.f32 %v7579_v43, %v7579_v43  ;;  %v148_v23 = vsub.f32 %v7489_v1, %v84_v41  ;;  %v150_v1 = vsub.f32 %v7484_v0, %v7579_v43 }
  0x94   :  { %v70_v39 = vpop.xlane.xlu1 %69  ;;  %v64_v40 = vpop.xlane.xlu0 %63 }
  0x95   :  { %v85_v42 = vmul.f32 0.03125, %v64_v40  ;;  %v7581_v44 = vmul.f32 0.03125, %v70_v39 }
  0x97   :  { %v133_v48 = vmul.f32 %v85_v42, %v85_v42  ;;  %v135_v54 = vmul.f32 %v7581_v44, %v7581_v44  ;;  %v149_v14 = vsub.f32 %v7503_v5, %v85_v42  ;;  %v151_v33 = vsub.f32 %v7494_v2, %v7581_v44 }
  0x98   :  { %v105_v45 = vpop.xlane.xlu1 %104  ;;  %v102_v46 = vpop.xlane.xlu0 %101 }
  0x99   :  { %v125_v49 = vmul.f32 0.03125, %v105_v45  ;;  %v124_v50 = vmul.f32 0.03125, %v102_v46 }
  0x9b   :  { %v141_v51 = vsub.f32 %v125_v49, %v133_v48  ;;  %v140_v52 = vsub.f32 %v124_v50, %v132_v47 }
  0x9c   :  { %v111_v55 = vpop.xlane.xlu1 %110  ;;  %v108_v56 = vpop.xlane.xlu0 %107 }
  0x9d   :  { %v157_v57 = vadd.f32 1e-05, %v141_v51  ;;  %v156_v58 = vadd.f32 1e-05, %v140_v52  ;;  %v127_v59 = vmul.f32 0.03125, %v111_v55  ;;  %v126_v60 = vmul.f32 0.03125, %v108_v56 }
  0x9f   :  { %7204 = vrsqrt.f32 %v157_v57  ;;  %v143_v61 = vsub.f32 %v127_v59, %v135_v54  ;;  %v142_v62 = vsub.f32 %v126_v60, %v134_v53 }
  0xa0   :  { %7206 = vrsqrt.f32 %v156_v58  ;;  %v76_v63 = vpop.xlane.xlu1 %75  ;;  %v73_v3 = vpop.xlane.xlu0 %72  ;;  %v7169_v58 = vld [vmem:[%s8947_s5 + $0x8] sm:$0xff]  }
  0xa1   :  { %v159_v4 = vadd.f32 1e-05, %v143_v61  ;;  %v158_v6 = vadd.f32 1e-05, %v142_v62  ;;  %v7587_v7 = vmul.f32 0.03125, %v76_v63  ;;  %v7589_v8 = vmul.f32 0.03125, %v73_v3 }
  0xa3   :  { %7208 = vrsqrt.f32 %v159_v4  ;;  %v137_v11 = vmul.f32 %v7587_v7, %v7587_v7  ;;  %v136_v12 = vmul.f32 %v7589_v8, %v7589_v8  ;;  %v153_v59 = vsub.f32 %v7524_v16, %v7587_v7 }
  0xa4   :  { %7210 = vrsqrt.f32 %v158_v6  ;;  %v82_v9 = vpop.xlane.xlu1 %81  ;;  %v79_v10 = vpop.xlane.xlu0 %78  ;;  %v152_v61 = vsub.f32 %v7529_v17, %v7589_v8 }
  0xa5   :  { %v7595_v13 = vmul.f32 0.03125, %v82_v9  ;;  %v7598_v15 = vmul.f32 0.03125, %v79_v10 }
  0xa7   :  { %v139_v5 = vmul.f32 %v7595_v13, %v7595_v13  ;;  %v138_v35 = vmul.f32 %v7598_v15, %v7598_v15  ;;  %v155_v4 = vsub.f32 %v7538_v20, %v7595_v13  ;;  %v154_v16 = vsub.f32 %v7543_v21, %v7598_v15 }
  0xa8   :  { %v117_v18 = vpop.xlane.xlu1 %116  ;;  %v114_v19 = vpop.xlane.xlu0 %113  ;;  %v7404_v15 = vmov 0.0  }
  0xa9   :  { %v7205_v22 = vpop.eup %7204  ;;  %v129_v25 = vmul.f32 0.03125, %v117_v18  ;;  %v128_v26 = vmul.f32 0.03125, %v114_v19  ;;  %6558 = vmatprep.subr.bf16.mxu1 %v7404_v15 }
  0xaa   :  { %v7207_v27 = vpop.eup %7206  ;;  %v173_v28 = vmul.f32 %v7205_v22, %v149_v14 }
  0xab   :  { %v172_v29 = vmul.f32 %v7207_v27, %v148_v23  ;;  %v145_v30 = vsub.f32 %v129_v25, %v137_v11  ;;  %v144_v31 = vsub.f32 %v128_v26, %v136_v12 }
  0xac   :  { %v187_v34 = vmul.f32 %v7604_v24, %v173_v28  ;;  %v123_v37 = vpop.xlane.xlu1 %122  ;;  %v120_v38 = vpop.xlane.xlu0 %119 }
  0xad   :  { %v7209_v39 = vpop.eup %7208  ;;  %v186_v40 = vmul.f32 %v7604_v24, %v172_v29  ;;  %v161_v41 = vadd.f32 1e-05, %v145_v30  ;;  %v160_v42 = vadd.f32 1e-05, %v144_v31  ;;  %v131_v45 = vmul.f32 0.03125, %v123_v37 }
  0xae   :  { %v7211_v46 = vpop.eup %7210  ;;  %v175_v47 = vmul.f32 %v7209_v39, %v151_v33  ;;  %v130_v48 = vmul.f32 0.03125, %v120_v38  ;;  %v201_v0 = vadd.f32 %v6030_v32, %v187_v34 }
  0xaf   :  { %v174_v43 = vmul.f32 %v7211_v46, %v150_v1  ;;  %7212 = vrsqrt.f32 %v161_v41  ;;  %v147_v2 = vsub.f32 %v131_v45, %v139_v5  ;;  %v200_v44 = vadd.f32 %v6030_v32, %v186_v40 }
  0xb0   :  { %v189_v49 = vmul.f32 %v7604_v24, %v175_v47  ;;  %7214 = vrsqrt.f32 %v160_v42  ;;  %v146_v50 = vsub.f32 %v130_v48, %v138_v35 }
  0xb1   :  { %v188_v51 = vmul.f32 %v7604_v24, %v174_v43  ;;  %v163_v52 = vadd.f32 1e-05, %v147_v2  ;;  %v7621_v53 = vpack.c.bf16 %v201_v0, %v200_v44 }
  0xb2   :  { %v162_v54 = vadd.f32 1e-05, %v146_v50  ;;  %v203_v55 = vadd.f32 %v6030_v32, %v189_v49 }
  0xb3   :  { %7216 = vrsqrt.f32 %v163_v52  ;;  %6526 = vmatprep.mubr.msk.bf16.mxu0 %vm58_vm0, %v7621_v53  ;;  %6538 = vmatprep.mubr.msk.bf16.mxu1 %vm58_vm0, %v7621_v53  ;;  %v202_v56 = vadd.f32 %v6030_v32, %v188_v51 }
  0xb4   :  { %7218 = vrsqrt.f32 %v162_v54 }
  0xb5   :  { %v7627_v57 = vpack.c.bf16 %v203_v55, %v202_v56 }
  0xb7   :  { %6527 = vmatmul.mubr.msk.bf16.vlgmr.msra.gmra.mrb[0].mxu0 %vm58_vm0, %v7627_v57  ;;  %6539 = vmatmul.mubr.msk.bf16.vlgmr.msra.gmra.mrb[0].mxu1 %vm58_vm0, %v7627_v57 }
  0xb8   :  { %6547 = vmatpush3.bf16.msra.mxu0 %v7576_v36 }
  0xb9   :  { %v7213_v60 = vpop.eup %7212  ;;  %6548 = vmatprep.subr.bf16.mxu0 %v7169_v58 }
  0xba   :  { %v7215_v62 = vpop.eup %7214  ;;  %v177_v63 = vmul.f32 %v7213_v60, %v153_v59 }
  0xbb   :  { %v176_v3 = vmul.f32 %v7215_v62, %v152_v61 }
  0xbc   :  { %v191_v6 = vmul.f32 %v7604_v24, %v177_v63  ;;  %6549 = vmatpush3.bf16.msra.mxu0 %v7169_v58 }
  0xbd   :  { %v7217_v9 = vpop.eup %7216  ;;  %v190_v36 = vmul.f32 %v7604_v24, %v176_v3  ;;  %6570 = vmatprep.subr.bf16.mxu0 %v7404_v15 }
  0xbe   :  { %v7219_v7 = vpop.eup %7218  ;;  %v179_v10 = vmul.f32 %v7217_v9, %v155_v4  ;;  %v205_v11 = vadd.f32 %v6030_v32, %v191_v6 }
  0xbf   :  { %v178_v17 = vmul.f32 %v7219_v7, %v154_v16  ;;  %v204_v8 = vadd.f32 %v6030_v32, %v190_v36 }
  0xc0   :  { %v193_v12 = vmul.f32 %v7604_v24, %v179_v10 }
  0xc1   :  { %v192_v14 = vmul.f32 %v7604_v24, %v178_v17  ;;  %v7649_v18 = vpack.c.bf16 %v205_v11, %v204_v8 }
  0xc2   :  { %v207_v20 = vadd.f32 %v6030_v32, %v193_v12 }
  0xc3   :  { %6530 = vmatprep.mubr.msk.bf16.mxu0 %vm58_vm0, %v7649_v18  ;;  %6542 = vmatprep.mubr.msk.bf16.mxu1 %vm58_vm0, %v7649_v18  ;;  %v206_v21 = vadd.f32 %v6030_v32, %v192_v14 }
  0xc5   :  { %v7655_v13 = vpack.c.bf16 %v207_v20, %v206_v21 }
  0xc7   :  { %6531 = vmatmul.mubr.msk.bf16.gmra.mrb[4].mxu0 %vm58_vm0, %v7655_v13  ;;  %6543 = vmatmul.mubr.msk.bf16.gmra.mrb[4].mxu1 %vm58_vm0, %v7655_v13 }
  0xc8   :  { %6550 = vmatprep.mubr.msk.bf16.mxu0 %vm58_vm0, %v7621_v53  ;;  %6560 = vmatprep.mubr.msk.bf16.mxu1 %vm7405_vm1, %v7404_v15 }
  0xcf   :  { %6551 = vmatmul.mubr.msk.bf16.vlgmr.msra.gmra.mrb[8].mxu0 %vm58_vm0, %v7627_v57 }
  0xd0   :  { %6554 = vmatprep.mubr.msk.bf16.mxu0 %vm58_vm0, %v7649_v18 }
  0xd7   :  { %6555 = vmatmul.mubr.msk.bf16.gmra.mrb[12].mxu0 %vm58_vm0, %v7655_v13 }
  0xd8   :  { %6572 = vmatprep.mubr.msk.bf16.mxu0 %vm7405_vm1, %v7404_v15 }
 0x18a   :  { %v6528_v19 = vpop.f32.mrb[0].mxu0  ;;  %v6540_v22 = vpop.f32.mrb[0].mxu1 }
 0x18b   :  { %v493_v23 = vpack.c.bf16 %v6540_v22, %v6540_v22  ;;  %v298_v24 = vpop.f32.mrb[1].mxu0  ;;  %v375_v25 = vpop.f32.mrb[1].mxu1  ;;  %v485_v1 = vpack.c.bf16 %v6528_v19, %v6528_v19 }
 0x18c   :  { %v491_v26 = vpack.c.bf16 %v375_v25, %v375_v25  ;;  %v6529_v27 = vpop.f32.mrb[2].mxu0  ;;  %v6541_v28 = vpop.f32.mrb[2].mxu1  ;;  %v483_v33 = vpack.c.bf16 %v298_v24, %v298_v24 }
 0x18d   :  { %v596_v29 = vsel %vm499_vm2, %v493_v23, 0  ;;  %v301_v5 = vpop.f32.mrb[3].mxu0  ;;  %v378_v30 = vpop.f32.mrb[3].mxu1  ;;  %v494_v35 = vpack.c.bf16 %v6541_v28, %v6541_v28  ;;  %v486_v51 = vpack.c.bf16 %v6529_v27, %v6529_v27 }
 0x18e   :  { %v504_v31 = vsel %vm499_vm2, %v491_v26, 0  ;;  %6571 = vmatpush3.bf16.xpose.msra.mxu0 %v596_v29  ;;  %v492_v32 = vpack.c.bf16 %v378_v30, %v378_v30  ;;  %v484_v41 = vpack.c.bf16 %v301_v5, %v301_v5 }
 0x18f   :  { %6559 = vmatpush3.bf16.xpose.msra.mxu1 %v504_v31  ;;  %6582 = vmatprep.subr.bf16.mxu0 %v7404_v15  ;;  %v642_v0 = vsel %vm499_vm2, %v494_v35, 0 }
 0x190   :  { %6564 = vmatprep.subr.bf16.mxu1 %v7404_v15  ;;  %v550_v34 = vsel %vm499_vm2, %v492_v32, 0 }
 0x195   :  { %6573 = vmatmul.mubr.msk.bf16.vlgmr.msra.gmra.mrb[16].mxu0 %vm499_vm2, %v485_v1 }
 0x196   :  { %6561 = vmatmul.mubr.msk.bf16.vlgmr.msra.gmra.mrb[8].mxu1 %vm499_vm2, %v483_v33  ;;  %6584 = vmatprep.mubr.msk.bf16.mxu0 %vm7405_vm1, %v7404_v15 }
 0x197   :  { %6565 = vmatpush3.bf16.xpose.msra.mxu1 %v550_v34  ;;  %6566 = vmatprep.mubr.msk.bf16.mxu1 %vm7405_vm1, %v7404_v15 }
 0x198   :  { %6576 = vmatprep.subr.bf16.mxu1 %v7404_v15 }
 0x19a   :  { %v6532_v37 = vpop.f32.mrb[4].mxu0  ;;  %v6544_v38 = vpop.f32.mrb[4].mxu1 }
 0x19b   :  { %v314_v39 = vpop.f32.mrb[5].mxu0  ;;  %v391_v40 = vpop.f32.mrb[5].mxu1  ;;  %v497_v2 = vpack.c.bf16 %v6544_v38, %v6544_v38  ;;  %v489_v63 = vpack.c.bf16 %v6532_v37, %v6532_v37 }
 0x19c   :  { %v495_v42 = vpack.c.bf16 %v391_v40, %v391_v40  ;;  %v6533_v45 = vpop.f32.mrb[6].mxu0  ;;  %v6545_v46 = vpop.f32.mrb[6].mxu1  ;;  %v487_v52 = vpack.c.bf16 %v314_v39, %v314_v39 }
 0x19d   :  { %v317_v47 = vpop.f32.mrb[7].mxu0  ;;  %v394_v48 = vpop.f32.mrb[7].mxu1  ;;  %v780_v56 = vsel %vm499_vm2, %v497_v2, 0  ;;  %v498_v59 = vpack.c.bf16 %v6545_v46, %v6545_v46  ;;  %v490_v7 = vpack.c.bf16 %v6533_v45, %v6533_v45 }
 0x19e   :  { %v688_v43 = vsel %vm499_vm2, %v495_v42, 0  ;;  %6567 = vmatmul.mubr.msk.bf16.vlgmr.msra.gmra.mrb[12].mxu1 %vm499_vm2, %v484_v41  ;;  %v496_v44 = vpack.c.bf16 %v394_v48, %v394_v48  ;;  %v488_v3 = vpack.c.bf16 %v317_v47, %v317_v47 }
 0x19f   :  { %6577 = vmatpush3.bf16.xpose.msra.mxu1 %v642_v0  ;;  %6583 = vmatpush3.bf16.xpose.msra.mxu0 %v688_v43  ;;  %v826_v9 = vsel %vm499_vm2, %v498_v59, 0 }
 0x1a0   :  { %6578 = vmatprep.mubr.msk.bf16.mxu1 %vm7405_vm1, %v7404_v15  ;;  %6588 = vmatprep.subr.bf16.mxu1 %v7404_v15  ;;  %v734_v58 = vsel %vm499_vm2, %v496_v44, 0 }
 0x1a1   :  { %6594 = vmatprep.subr.bf16.mxu0 %v7404_v15 }
 0x1a2   :  { %v7694_v49 = vpop.f32.mrb[8].mxu0 }
 0x1a3   :  { %v452_v50 = vpop.f32.mrb[9].mxu0 }
 0x1a4   :  { %v7696_v54 = vpop.f32.mrb[10].mxu0  ;;  %v973_v60 = vpack.c.bf16 %v452_v50, %v452_v50 }
 0x1a5   :  { %v455_v55 = vpop.f32.mrb[11].mxu0 }
 0x1a6   :  { %6579 = vmatmul.mubr.msk.bf16.vlgmr.msra.gmra.mrb[16].mxu1 %vm499_vm2, %v486_v51  ;;  %6585 = vmatmul.mubr.msk.bf16.vlgmr.msra.gmra.mrb[20].mxu0 %vm499_vm2, %v487_v52  ;;  %v986_v16 = vsel %vm984_vm3, %v973_v60, 0  ;;  %v974_v36 = vpack.c.bf16 %v455_v55, %v455_v55 }
 0x1a7   :  { %6589 = vmatpush3.bf16.xpose.msra.mxu1 %v734_v58  ;;  %6595 = vmatpush3.bf16.xpose.msra.mxu0 %v780_v56 }
 0x1a8   :  { %6590 = vmatprep.mubr.msk.bf16.mxu1 %vm7405_vm1, %v7404_v15  ;;  %6596 = vmatprep.mubr.msk.bf16.mxu0 %vm7405_vm1, %v7404_v15  ;;  %v1032_v10 = vsel %vm984_vm3, %v974_v36, 0 }
 0x1a9   :  { %6600 = vmatprep.subr.bf16.mxu1 %v7404_v15  ;;  %6606 = vmatprep.subr.bf16.mxu0 %v7404_v15 }
 0x1aa   :  { %v7708_v61 = vpop.f32.mrb[12].mxu0 }
 0x1ab   :  { %v7710_v62 = vpop.f32.mrb[13].mxu0 }
 0x1ac   :  { %v7712_v4 = vpop.f32.mrb[14].mxu0 }
 0x1ad   :  { %v7714_v6 = vpop.f32.mrb[15].mxu0 }
 0x1ae   :  { %6591 = vmatmul.mubr.msk.bf16.vlgmr.msra.gmra.mrb[20].mxu1 %vm499_vm2, %v488_v3  ;;  %6597 = vmatmul.mubr.msk.bf16.vlgmr.msra.gmra.mrb[24].mxu0 %vm499_vm2, %v489_v63 }
 0x1af   :  { %6601 = vmatpush3.bf16.xpose.msra.mxu1 %v826_v9  ;;  %6607 = vmatpush3.bf16.msra.mxu0 %v986_v16 }
 0x1b0   :  { %6602 = vmatprep.mubr.msk.bf16.mxu1 %vm7405_vm1, %v7404_v15  ;;  %6612 = vmatprep.subr.bf16.mxu1 %v7404_v15 }
 0x1b1   :  { %6608 = vmatprep.mubr.msk.bf16.mxu0 %vm7405_vm1, %v7404_v15  ;;  %6618 = vmatprep.subr.bf16.mxu0 %v7404_v15 }
 0x1b6   :  { %6603 = vmatmul.mubr.msk.bf16.vlgmr.msra.gmra.mrb[24].mxu1 %vm499_vm2, %v490_v7 }
 0x1b7   :  { %6613 = vmatpush3.bf16.msra.mxu1 %v1032_v10  ;;  %6614 = vmatprep.mubr.msk.bf16.mxu1 %vm7405_vm1, %v7404_v15 }
 0x1b8   :  { %6624 = vmatprep.subr.bf16.mxu1 %v7404_v15 }
 0x268   :  { %v632_v11 = vpop.f32.mrb[16].mxu0 }
 0x269   :  { %v540_v17 = vpop.f32.mrb[8].mxu1  ;;  %v6574_v8 = vpop.f32.mrb[17].mxu0  ;;  %v870_v22 = vmul.f32 0.25, %v632_v11 }
 0x26a   :  { %v868_v12 = vmul.f32 0.25, %v540_v17  ;;  %v6562_v14 = vpop.f32.mrb[9].mxu1  ;;  %v635_v20 = vpop.f32.mrb[18].mxu0 }
 0x26b   :  { %v543_v21 = vpop.f32.mrb[10].mxu1  ;;  %v6575_v19 = vpop.f32.mrb[19].mxu0  ;;  %v883_v25 = vsel %vm876_vm4, %v870_v22, -inf }
 0x26c   :  { %v6563_v23 = vpop.f32.mrb[11].mxu1  ;;  %v877_v24 = vsel %vm876_vm4, %v868_v12, -inf }
 0x26d   :  { %878 = vmax.xlane.f32.xlu1 %v877_v24 }
 0x271   :  { %v586_v26 = vpop.f32.mrb[12].mxu1  ;;  %884 = vmax.xlane.f32.xlu1 %v883_v25 }
 0x272   :  { %v869_v27 = vmul.f32 0.25, %v586_v26  ;;  %v6568_v28 = vpop.f32.mrb[13].mxu1 }
 0x273   :  { %v589_v29 = vpop.f32.mrb[14].mxu1 }
 0x274   :  { %v6569_v5 = vpop.f32.mrb[15].mxu1  ;;  %v880_v30 = vsel %vm876_vm4, %v869_v27, -inf }
 0x275   :  { %881 = vmax.xlane.f32.xlu0 %v880_v30 }
 0x279   :  { %v678_v31 = vpop.f32.mrb[16].mxu1  ;;  %v724_v32 = vpop.f32.mrb[20].mxu0 }
 0x27a   :  { %v871_v1 = vmul.f32 0.25, %v678_v31  ;;  %v872_v33 = vmul.f32 0.25, %v724_v32  ;;  %v6580_v34 = vpop.f32.mrb[17].mxu1  ;;  %v6586_v35 = vpop.f32.mrb[21].mxu0 }
 0x27b   :  { %v681_v37 = vpop.f32.mrb[18].mxu1  ;;  %v727_v38 = vpop.f32.mrb[22].mxu0 }
 0x27c   :  { %v6581_v39 = vpop.f32.mrb[19].mxu1  ;;  %v6587_v40 = vpop.f32.mrb[23].mxu0  ;;  %v886_v41 = vsel %vm876_vm4, %v871_v1, -inf  ;;  %v889_v42 = vsel %vm876_vm4, %v872_v33, -inf }
 0x27d   :  { %887 = vmax.xlane.f32.xlu0 %v886_v41  ;;  %890 = vmax.xlane.f32.xlu1 %v889_v42 }
 0x281   :  { %v770_v45 = vpop.f32.mrb[20].mxu1  ;;  %v816_v46 = vpop.f32.mrb[24].mxu0 }
 0x282   :  { %v873_v47 = vmul.f32 0.25, %v770_v45  ;;  %v874_v48 = vmul.f32 0.25, %v816_v46  ;;  %v6592_v0 = vpop.f32.mrb[21].mxu1  ;;  %v6598_v43 = vpop.f32.mrb[25].mxu0 }
 0x283   :  { %v773_v2 = vpop.f32.mrb[22].mxu1  ;;  %v819_v44 = vpop.f32.mrb[26].mxu0 }
 0x284   :  { %v6593_v50 = vpop.f32.mrb[23].mxu1  ;;  %v6599_v51 = vpop.f32.mrb[27].mxu0  ;;  %v892_v52 = vsel %vm876_vm4, %v873_v47, -inf  ;;  %v895_v55 = vsel %vm876_vm4, %v874_v48, -inf }
 0x285   :  { %893 = vmax.xlane.f32.xlu0 %v892_v52  ;;  %896 = vmax.xlane.f32.xlu1 %v895_v55  ;;  %v975_v51 = vpack.c.bf16 %v7694_v49, %v7694_v49  ;;  %v976_v49 = vpack.c.bf16 %v7696_v54, %v7696_v54 }
 0x289   :  { %v862_v56 = vpop.f32.mrb[24].mxu1 }
 0x28a   :  { %v875_v58 = vmul.f32 0.25, %v862_v56  ;;  %v6604_v59 = vpop.f32.mrb[25].mxu1 }
 0x28b   :  { %v865_v60 = vpop.f32.mrb[26].mxu1 }
 0x28c   :  { %v6605_v63 = vpop.f32.mrb[27].mxu1  ;;  %v898_v3 = vsel %vm876_vm4, %v875_v58, -inf }
 0x28d   :  { %899 = vmax.xlane.f32.xlu0 %v898_v3 }
 0x2fa   :  { %v879_v9 = vpop.xlane.xlu1 %878 }
 0x2fb   :  { %v901_v16 = vsub.f32 %v868_v12, %v879_v9  ;;  %v977_v9 = vpack.c.bf16 %v7710_v62, %v7710_v62 }
 0x2fd   :  { %v909_v36 = vmul.f32 1.442695, %v901_v16 }
 0x2fe   :  { %v885_v7 = vpop.xlane.xlu1 %884 }
 0x2ff   :  { %7220 = vpow2.f32 %v909_v36  ;;  %v903_v10 = vsub.f32 %v870_v22, %v885_v7 }
 0x301   :  { %v913_v11 = vmul.f32 1.442695, %v903_v10  ;;  %v1124_v10 = vsel %vm984_vm3, %v976_v49, 0 }
 0x302   :  { %v882_v17 = vpop.xlane.xlu0 %881 }
 0x303   :  { %7222 = vpow2.f32 %v913_v11  ;;  %v902_v8 = vsub.f32 %v869_v27, %v882_v17  ;;  %v1170_v11 = vsel %vm984_vm3, %v977_v9, 0 }
 0x305   :  { %v911_v14 = vmul.f32 1.442695, %v902_v8 }
 0x307   :  { %7224 = vpow2.f32 %v911_v14  ;;  %v978_v14 = vpack.c.bf16 %v7714_v6, %v7714_v6 }
 0x309   :  { %v7221_v20 = vpop.eup %7220 }
 0x30a   :  { %v888_v21 = vpop.xlane.xlu0 %887  ;;  %v891_v19 = vpop.xlane.xlu1 %890  ;;  %v925_v23 = vsel %vm876_vm4, %v7221_v20, 0.0 }
 0x30b   :  { %v904_v24 = vsub.f32 %v871_v1, %v888_v21  ;;  %v905_v25 = vsub.f32 %v872_v33, %v891_v19  ;;  %926 = vadd.xlane.f32.xlu1 %v925_v23  ;;  %v979_v21 = vpack.c.bf16 %v7708_v61, %v7708_v61 }
 0x30d   :  { %v7223_v26 = vpop.eup %7222  ;;  %v915_v12 = vmul.f32 1.442695, %v904_v24  ;;  %v917_v28 = vmul.f32 1.442695, %v905_v25  ;;  %v1216_v25 = vsel %vm984_vm3, %v978_v14, 0  ;;  %v1262_v6 = vsel %vm984_vm3, %v979_v21, 0 }
 0x30e   :  { %v931_v29 = vsel %vm876_vm4, %v7223_v26, 0.0 }
 0x30f   :  { %7226 = vpow2.f32 %v915_v12  ;;  %932 = vadd.xlane.f32.xlu1 %v931_v29  ;;  %v7170_v12 = vld [vmem:[%s8945_s3 + $0x10] sm:$0xff]   ;;  %v980_v29 = vpack.c.bf16 %v7712_v4, %v7712_v4 }
 0x310   :  { %7228 = vpow2.f32 %v917_v28 }
 0x311   :  { %v7225_v22 = vpop.eup %7224 }
 0x312   :  { %v894_v27 = vpop.xlane.xlu0 %893  ;;  %v897_v5 = vpop.xlane.xlu1 %896  ;;  %v928_v30 = vsel %vm876_vm4, %v7225_v22, 0.0 }
 0x313   :  { %v906_v31 = vsub.f32 %v873_v47, %v894_v27  ;;  %v907_v32 = vsub.f32 %v874_v48, %v897_v5  ;;  %929 = vadd.xlane.f32.xlu0 %v928_v30 }
 0x315   :  { %v919_v34 = vmul.f32 1.442695, %v906_v31  ;;  %v921_v1 = vmul.f32 1.442695, %v907_v32  ;;  %v7171_v31 = vld [vmem:[%s8945_s3 + $0x18] sm:$0xff]   ;;  %v1308_v32 = vsel %vm984_vm3, %v980_v29, 0 }
 0x317   :  { %7230 = vpow2.f32 %v919_v34  ;;  %v7172_v34 = vld [vmem:[%s8946_s4 + $0x10] sm:$0xff]  }
 0x318   :  { %7232 = vpow2.f32 %v921_v1  ;;  %v7174_v1 = vld [vmem:[%s8947_s5 + $0x10] sm:$0xff]  }
 0x319   :  { %v7742_v33 = vpop.eup %7226 }
 0x31a   :  { %v7744_v35 = vpop.eup %7228  ;;  %v900_v37 = vpop.xlane.xlu0 %899  ;;  %v934_v38 = vsel %vm876_vm4, %v7742_v33, 0.0 }
 0x31b   :  { %v908_v39 = vsub.f32 %v875_v58, %v900_v37  ;;  %935 = vadd.xlane.f32.xlu0 %v934_v38  ;;  %v937_v40 = vsel %vm876_vm4, %v7744_v35, 0.0  ;;  %v1078_v58 = vsel %vm984_vm3, %v975_v51, 0  ;;  %v7173_v37 = vld [vmem:[%s8946_s4 + $0x18] sm:$0xff]  }
 0x31c   :  { %938 = vadd.xlane.f32.xlu1 %v937_v40  ;;  %v7175_v38 = vld [vmem:[%s8947_s5 + $0x18] sm:$0xff]  }
 0x31d   :  { %v923_v41 = vmul.f32 1.442695, %v908_v39 }
 0x31f   :  { %7234 = vpow2.f32 %v923_v41 }
 0x321   :  { %v7750_v42 = vpop.eup %7230 }
 0x322   :  { %v7752_v45 = vpop.eup %7232  ;;  %v940_v46 = vsel %vm876_vm4, %v7750_v42, 0.0 }
 0x323   :  { %941 = vadd.xlane.f32.xlu0 %v940_v46  ;;  %v943_v47 = vsel %vm876_vm4, %v7752_v45, 0.0 }
 0x324   :  { %944 = vadd.xlane.f32.xlu1 %v943_v47 }
 0x329   :  { %v7758_v48 = vpop.eup %7234 }
 0x32a   :  { %v946_v0 = vsel %vm876_vm4, %v7758_v48, 0.0 }
 0x32b   :  { %947 = vadd.xlane.f32.xlu0 %v946_v0 }
 0x398   :  { %v927_v43 = vpop.xlane.xlu1 %926 }
 0x399   :  { %7236 = vrcp.f32 %v927_v43 }
 0x39c   :  { %v933_v2 = vpop.xlane.xlu1 %932 }
 0x39d   :  { %7238 = vrcp.f32 %v933_v2 }
 0x3a0   :  { %v930_v44 = vpop.xlane.xlu0 %929 }
 0x3a1   :  { %7240 = vrcp.f32 %v930_v44 }
 0x3a3   :  { %v7237_v50 = vpop.eup %7236 }
 0x3a4   :  { %v957_v52 = vmul.f32 %v7237_v50, %v7221_v20 }
 0x3a6   :  { %v965_v55 = vpack.c.bf16 %v957_v52, %v957_v52 }
 0x3a7   :  { %v7239_v56 = vpop.eup %7238 }
 0x3a8   :  { %v936_v59 = vpop.xlane.xlu0 %935  ;;  %6609 = vmatmul.mubr.msk.bf16.vlgmr.msra.gmra.mrb[28].mxu0 %vm876_vm4, %v965_v55  ;;  %v959_v63 = vmul.f32 %v7239_v56, %v7223_v26 }
 0x3a9   :  { %7242 = vrcp.f32 %v936_v59  ;;  %6619 = vmatpush3.bf16.msra.mxu0 %v1078_v58  ;;  %v939_v60 = vpop.xlane.xlu1 %938  ;;  %6620 = vmatprep.mubr.msk.bf16.mxu0 %vm7405_vm1, %v7404_v15 }
 0x3aa   :  { %7244 = vrcp.f32 %v939_v60  ;;  %6630 = vmatprep.subr.bf16.mxu0 %v7404_v15  ;;  %v967_v7 = vpack.c.bf16 %v959_v63, %v959_v63 }
 0x3ab   :  { %v7241_v3 = vpop.eup %7240 }
 0x3ac   :  { %v958_v16 = vmul.f32 %v7241_v3, %v7225_v22 }
 0x3ae   :  { %v966_v36 = vpack.c.bf16 %v958_v16, %v958_v16 }
 0x3b0   :  { %v942_v17 = vpop.xlane.xlu0 %941  ;;  %6615 = vmatmul.mubr.msk.bf16.vlgmr.msra.gmra.mrb[28].mxu1 %vm876_vm4, %v966_v36  ;;  %6621 = vmatmul.mubr.msk.bf16.vlgmr.msra.gmra.mrb[32].mxu0 %vm876_vm4, %v967_v7 }
 0x3b1   :  { %7246 = vrcp.f32 %v942_v17  ;;  %6625 = vmatpush3.bf16.msra.mxu1 %v1124_v10  ;;  %6631 = vmatpush3.bf16.msra.mxu0 %v1170_v11  ;;  %v945_v8 = vpop.xlane.xlu1 %944 }
 0x3b2   :  { %7248 = vrcp.f32 %v945_v8  ;;  %6626 = vmatprep.mubr.msk.bf16.mxu1 %vm7405_vm1, %v7404_v15  ;;  %6632 = vmatprep.mubr.msk.bf16.mxu0 %vm7405_vm1, %v7404_v15 }
 0x3b3   :  { %v7243_v54 = vpop.eup %7242  ;;  %6636 = vmatprep.subr.bf16.mxu1 %v7404_v15  ;;  %6642 = vmatprep.subr.bf16.mxu0 %v7404_v15 }
 0x3b4   :  { %v7245_v62 = vpop.eup %7244  ;;  %v960_v20 = vmul.f32 %v7243_v54, %v7742_v33 }
 0x3b5   :  { %v961_v19 = vmul.f32 %v7245_v62, %v7744_v35 }
 0x3b6   :  { %v968_v23 = vpack.c.bf16 %v960_v20, %v960_v20 }
 0x3b7   :  { %v969_v24 = vpack.c.bf16 %v961_v19, %v961_v19 }
 0x3b8   :  { %v948_v26 = vpop.xlane.xlu0 %947  ;;  %6627 = vmatmul.mubr.msk.bf16.vlgmr.msra.gmra.mrb[32].mxu1 %vm876_vm4, %v968_v23 }
 0x3b9   :  { %7250 = vrcp.f32 %v948_v26  ;;  %6633 = vmatmul.mubr.msk.bf16.vlgmr.msra.gmra.mrb[36].mxu0 %vm876_vm4, %v969_v24  ;;  %6637 = vmatpush3.bf16.msra.mxu1 %v1216_v25 }
 0x3ba   :  { %6643 = vmatpush3.bf16.msra.mxu0 %v1262_v6  ;;  %6638 = vmatprep.mubr.msk.bf16.mxu1 %vm7405_vm1, %v7404_v15 }
 0x3bb   :  { %v7247_v61 = vpop.eup %7246  ;;  %6644 = vmatprep.mubr.msk.bf16.mxu0 %vm7405_vm1, %v7404_v15  ;;  %6648 = vmatprep.subr.bf16.mxu1 %v7404_v15 }
 0x3bc   :  { %v7249_v28 = vpop.eup %7248  ;;  %v962_v22 = vmul.f32 %v7247_v61, %v7750_v42  ;;  %6654 = vmatprep.subr.bf16.mxu0 %v7170_v12 }
 0x3bd   :  { %v963_v27 = vmul.f32 %v7249_v28, %v7752_v45 }
 0x3be   :  { %v970_v5 = vpack.c.bf16 %v962_v22, %v962_v22 }
 0x3bf   :  { %v971_v30 = vpack.c.bf16 %v963_v27, %v963_v27 }
 0x3c0   :  { %6639 = vmatmul.mubr.msk.bf16.vlgmr.msra.gmra.mrb[36].mxu1 %vm876_vm4, %v970_v5 }
 0x3c1   :  { %6645 = vmatmul.mubr.msk.bf16.vlgmr.msra.gmra.mrb[40].mxu0 %vm876_vm4, %v971_v30  ;;  %6649 = vmatpush3.bf16.msra.mxu1 %v1308_v32 }
 0x3c2   :  { %6655 = vmatpush3.bf16.msra.mxu0 %v7170_v12  ;;  %6658 = vmatprep.mubr.msk.bf16.mxu0 %vm58_vm0, %v7621_v53 }
 0x3c3   :  { %v7251_v4 = vpop.eup %7250  ;;  %6656 = vmatprep.subr.bf16.mxu0 %v7171_v31  ;;  %6650 = vmatprep.mubr.msk.bf16.mxu1 %vm7405_vm1, %v7404_v15 }
 0x3c4   :  { %v964_v33 = vmul.f32 %v7251_v4, %v7758_v48  ;;  %6666 = vmatprep.subr.bf16.mxu1 %v7172_v34 }
 0x3c6   :  { %6657 = vmatpush3.bf16.msra.mxu0 %v7171_v31  ;;  %v972_v35 = vpack.c.bf16 %v964_v33, %v964_v33 }
 0x3c7   :  { %6678 = vmatprep.subr.bf16.mxu0 %v7174_v1 }
 0x3c8   :  { %6651 = vmatmul.mubr.msk.bf16.vlgmr.msra.gmra.mrb[40].mxu1 %vm876_vm4, %v972_v35 }
 0x3c9   :  { %6659 = vmatmul.mubr.msk.bf16.vlgmr.msra.gmra.mrb[44].mxu0 %vm58_vm0, %v7627_v57  ;;  %6667 = vmatpush3.bf16.msra.mxu1 %v7172_v34 }
 0x3ca   :  { %6662 = vmatprep.mubr.msk.bf16.mxu0 %vm58_vm0, %v7649_v18  ;;  %6670 = vmatprep.mubr.msk.bf16.mxu1 %vm58_vm0, %v7621_v53 }
 0x3cb   :  { %6668 = vmatprep.subr.bf16.mxu1 %v7173_v37  ;;  %6679 = vmatpush3.bf16.msra.mxu0 %v7174_v1 }
 0x3cc   :  { %6680 = vmatprep.subr.bf16.mxu0 %v7175_v38 }
 0x3cd   :  { %6669 = vmatpush3.bf16.msra.mxu1 %v7173_v37 }
 0x3ce   :  { %6690 = vmatprep.subr.bf16.mxu1 %v7404_v15 }
 0x3cf   :  { %6681 = vmatpush3.bf16.msra.mxu0 %v7175_v38 }
 0x3d0   :  { %6671 = vmatmul.mubr.msk.bf16.vlgmr.msra.gmra.mrb[44].mxu1 %vm58_vm0, %v7627_v57  ;;  %6702 = vmatprep.subr.bf16.mxu0 %v7404_v15 }
 0x3d1   :  { %6663 = vmatmul.mubr.msk.bf16.gmra.mrb[48].mxu0 %vm58_vm0, %v7655_v13  ;;  %6674 = vmatprep.mubr.msk.bf16.mxu1 %vm58_vm0, %v7649_v18 }
 0x3d2   :  { %6682 = vmatprep.mubr.msk.bf16.mxu0 %vm58_vm0, %v7621_v53 }
 0x3d8   :  { %6675 = vmatmul.mubr.msk.bf16.gmra.mrb[48].mxu1 %vm58_vm0, %v7655_v13 }
 0x3d9   :  { %6683 = vmatmul.mubr.msk.bf16.vlgmr.msra.gmra.mrb[52].mxu0 %vm58_vm0, %v7627_v57  ;;  %6692 = vmatprep.mubr.msk.bf16.mxu1 %vm7405_vm1, %v7404_v15 }
 0x3da   :  { %6686 = vmatprep.mubr.msk.bf16.mxu0 %vm58_vm0, %v7649_v18 }
 0x3e1   :  { %6687 = vmatmul.mubr.msk.bf16.gmra.mrb[56].mxu0 %vm58_vm0, %v7655_v13 }
 0x3e2   :  { %6704 = vmatprep.mubr.msk.bf16.mxu0 %vm7405_vm1, %v7404_v15 }
 0x47b   :  { %v7857_v39 = vpop.f32.mrb[28].mxu0 }
 0x47c   :  { %v6610_v53 = vpop.f32.mrb[29].mxu0 }
 0x47d   :  { %v1025_v40 = vpop.f32.mrb[30].mxu0 }
 0x47e   :  { %v6611_v41 = vpop.f32.mrb[31].mxu0 }
 0x483   :  { %v7859_v42 = vpop.f32.mrb[28].mxu1  ;;  %v7861_v57 = vpop.f32.mrb[32].mxu0 }
 0x484   :  { %v1350_v45 = vpack.c.bf16 %v7859_v42, %v7857_v39  ;;  %v6616_v46 = vpop.f32.mrb[29].mxu1  ;;  %v6622_v18 = vpop.f32.mrb[33].mxu0  ;;  %v6109_v39 = vld [vmem:[%s8951_s7] ss:$0 sm:$0xff]  ;;  %v7396_v42 = vld [vmem:[%s8944_s0 + $0x10] sm:$0xff] }
 0x485   :  { %v1071_v47 = vpop.f32.mrb[30].mxu1  ;;  %v1117_v48 = vpop.f32.mrb[34].mxu0 }
 0x486   :  { %v6617_v13 = vpop.f32.mrb[31].mxu1  ;;  %v6623_v0 = vpop.f32.mrb[35].mxu0 }
 0x48b   :  { %v7865_v43 = vpop.f32.mrb[32].mxu1 }
 0x48c   :  { %v1351_v2 = vpack.c.bf16 %v7865_v43, %v7861_v57  ;;  %v7869_v44 = vpop.f32.mrb[36].mxu0  ;;  %v6628_v50 = vpop.f32.mrb[33].mxu1  ;;  %v7397_v43 = vld [vmem:[%s8944_s0] sm:$0xff] }
 0x48d   :  { %v6634_v51 = vpop.f32.mrb[37].mxu0  ;;  %v1163_v52 = vpop.f32.mrb[34].mxu1 }
 0x48e   :  { %v1209_v55 = vpop.f32.mrb[38].mxu0  ;;  %v6629_v56 = vpop.f32.mrb[35].mxu1 }
 0x48f   :  { %v6635_v58 = vpop.f32.mrb[39].mxu0 }
 0x493   :  { %v7871_v59 = vpop.f32.mrb[36].mxu1 }
 0x494   :  { %v1352_v60 = vpack.c.bf16 %v7871_v59, %v7869_v44  ;;  %v7875_v63 = vpop.f32.mrb[40].mxu0  ;;  %v6640_v3 = vpop.f32.mrb[37].mxu1 }
 0x495   :  { %v6646_v49 = vpop.f32.mrb[41].mxu0  ;;  %v1255_v9 = vpop.f32.mrb[38].mxu1 }
 0x496   :  { %v1301_v16 = vpop.f32.mrb[42].mxu0  ;;  %v6641_v36 = vpop.f32.mrb[39].mxu1 }
 0x497   :  { %v6647_v7 = vpop.f32.mrb[43].mxu0 }
 0x49b   :  { %v7877_v10 = vpop.f32.mrb[40].mxu1 }
 0x49c   :  { %v1353_v11 = vpack.c.bf16 %v7877_v10, %v7875_v63  ;;  %v6660_v17 = vpop.f32.mrb[44].mxu0  ;;  %v6652_v8 = vpop.f32.mrb[41].mxu1 }
 0x49d   :  { %v1400_v54 = vpop.f32.mrb[45].mxu0  ;;  %v1347_v62 = vpop.f32.mrb[42].mxu1  ;;  %v1587_v31 = vpack.c.bf16 %v6660_v17, %v6660_v17 }
 0x49e   :  { %v7881_v14 = vpop.f32.mrb[46].mxu0  ;;  %v6653_v20 = vpop.f32.mrb[43].mxu1  ;;  %v1585_v4 = vpack.c.bf16 %v1400_v54, %v1400_v54 }
 0x49f   :  { %v1403_v21 = vpop.f32.mrb[47].mxu0  ;;  %v1588_v3 = vpack.c.bf16 %v7881_v14, %v7881_v14 }
 0x4a0   :  { %v1586_v48 = vpack.c.bf16 %v1403_v21, %v1403_v21 }
 0x4a3   :  { %v6672_v19 = vpop.f32.mrb[44].mxu1 }
 0x4a4   :  { %v7883_v23 = vpop.f32.mrb[48].mxu0  ;;  %v1595_v24 = vpack.c.bf16 %v6672_v19, %v6672_v19  ;;  %v1477_v25 = vpop.f32.mrb[45].mxu1 }
 0x4a5   :  { %v1416_v26 = vpop.f32.mrb[49].mxu0  ;;  %v1593_v12 = vpack.c.bf16 %v1477_v25, %v1477_v25  ;;  %v6673_v6 = vpop.f32.mrb[46].mxu1  ;;  %v1591_v49 = vpack.c.bf16 %v7883_v23, %v7883_v23 }
 0x4a6   :  { %v1697_v61 = vsel %vm499_vm2, %v1595_v24, 0  ;;  %v7886_v28 = vpop.f32.mrb[50].mxu0  ;;  %v1480_v29 = vpop.f32.mrb[47].mxu1  ;;  %v1596_v46 = vpack.c.bf16 %v6673_v6, %v6673_v6  ;;  %v1589_v13 = vpack.c.bf16 %v1416_v26, %v1416_v26 }
 0x4a7   :  { %v1605_v22 = vsel %vm499_vm2, %v1593_v12, 0  ;;  %v7889_v27 = vpop.f32.mrb[51].mxu0  ;;  %6703 = vmatpush3.bf16.xpose.msra.mxu0 %v1697_v61  ;;  %v1594_v5 = vpack.c.bf16 %v1480_v29, %v1480_v29  ;;  %v1592_v54 = vpack.c.bf16 %v7886_v28, %v7886_v28 }
 0x4a8   :  { %6691 = vmatpush3.bf16.xpose.msra.mxu1 %v1605_v22  ;;  %6714 = vmatprep.subr.bf16.mxu0 %v7404_v15  ;;  %v1743_v51 = vsel %vm499_vm2, %v1596_v46, 0  ;;  %v1590_v7 = vpack.c.bf16 %v7889_v27, %v7889_v27 }
 0x4a9   :  { %6696 = vmatprep.subr.bf16.mxu1 %v7404_v15  ;;  %v1651_v53 = vsel %vm499_vm2, %v1594_v5, 0 }
 0x4ab   :  { %v6676_v30 = vpop.f32.mrb[48].mxu1 }
 0x4ac   :  { %v7893_v32 = vpop.f32.mrb[52].mxu0  ;;  %v1493_v34 = vpop.f32.mrb[49].mxu1  ;;  %v1599_v18 = vpack.c.bf16 %v6676_v30, %v6676_v30 }
 0x4ad   :  { %v1597_v1 = vpack.c.bf16 %v1493_v34, %v1493_v34  ;;  %v1554_v33 = vpop.f32.mrb[53].mxu0  ;;  %v6677_v35 = vpop.f32.mrb[50].mxu1 }
 0x4ae   :  { %v7895_v37 = vpop.f32.mrb[54].mxu0  ;;  %v1496_v38 = vpop.f32.mrb[51].mxu1  ;;  %6705 = vmatmul.mubr.msk.bf16.vlgmr.msra.gmra.mrb[60].mxu0 %vm499_vm2, %v1587_v31  ;;  %v1881_v52 = vsel %vm499_vm2, %v1599_v18, 0  ;;  %v2073_v56 = vpack.c.bf16 %v1554_v33, %v1554_v33  ;;  %v1600_v36 = vpack.c.bf16 %v6677_v35, %v6677_v35 }
 0x4af   :  { %v1789_v40 = vsel %vm499_vm2, %v1597_v1, 0  ;;  %v1557_v41 = vpop.f32.mrb[55].mxu0  ;;  %6693 = vmatmul.mubr.msk.bf16.vlgmr.msra.gmra.mrb[52].mxu1 %vm499_vm2, %v1585_v4  ;;  %6716 = vmatprep.mubr.msk.bf16.mxu0 %vm7405_vm1, %v7404_v15  ;;  %v1598_v58 = vpack.c.bf16 %v1496_v38, %v1496_v38 }
 0x4b0   :  { %6697 = vmatpush3.bf16.xpose.msra.mxu1 %v1651_v53  ;;  %6715 = vmatpush3.bf16.xpose.msra.mxu0 %v1789_v40  ;;  %v2085_v9 = vsel %vm984_vm3, %v2073_v56, 0  ;;  %v1927_v17 = vsel %vm499_vm2, %v1600_v36, 0  ;;  %v2074_v8 = vpack.c.bf16 %v1557_v41, %v1557_v41 }
 0x4b1   :  { %6698 = vmatprep.mubr.msk.bf16.mxu1 %vm7405_vm1, %v7404_v15  ;;  %6708 = vmatprep.subr.bf16.mxu1 %v7404_v15  ;;  %v1835_v16 = vsel %vm499_vm2, %v1598_v58, 0 }
 0x4b2   :  { %6726 = vmatprep.subr.bf16.mxu0 %v7404_v15  ;;  %v2131_v62 = vsel %vm984_vm3, %v2074_v8, 0 }
 0x4b4   :  { %v7907_v47 = vpop.f32.mrb[56].mxu0 }
 0x4b5   :  { %v7909_v0 = vpop.f32.mrb[57].mxu0 }
 0x4b6   :  { %v7911_v50 = vpop.f32.mrb[58].mxu0 }
 0x4b7   :  { %v7915_v55 = vpop.f32.mrb[59].mxu0  ;;  %6699 = vmatmul.mubr.msk.bf16.vlgmr.msra.gmra.mrb[56].mxu1 %vm499_vm2, %v1586_v48  ;;  %6717 = vmatmul.mubr.msk.bf16.vlgmr.msra.gmra.mrb[64].mxu0 %vm499_vm2, %v1589_v13 }
 0x4b8   :  { %6709 = vmatpush3.bf16.xpose.msra.mxu1 %v1743_v51  ;;  %6727 = vmatpush3.bf16.xpose.msra.mxu0 %v1881_v52 }
 0x4b9   :  { %6710 = vmatprep.mubr.msk.bf16.mxu1 %vm7405_vm1, %v7404_v15  ;;  %6728 = vmatprep.mubr.msk.bf16.mxu0 %vm7405_vm1, %v7404_v15 }
 0x4ba   :  { %6720 = vmatprep.subr.bf16.mxu1 %v7404_v15  ;;  %6738 = vmatprep.subr.bf16.mxu0 %v7404_v15 }
 0x4bf   :  { %6711 = vmatmul.mubr.msk.bf16.vlgmr.msra.gmra.mrb[60].mxu1 %vm499_vm2, %v1588_v3  ;;  %6729 = vmatmul.mubr.msk.bf16.vlgmr.msra.gmra.mrb[68].mxu0 %vm499_vm2, %v1591_v49 }
 0x4c0   :  { %6721 = vmatpush3.bf16.xpose.msra.mxu1 %v1835_v16  ;;  %6739 = vmatpush3.bf16.msra.mxu0 %v2085_v9 }
 0x4c1   :  { %6722 = vmatprep.mubr.msk.bf16.mxu1 %vm7405_vm1, %v7404_v15  ;;  %6732 = vmatprep.subr.bf16.mxu1 %v7404_v15 }
 0x4c2   :  { %6740 = vmatprep.mubr.msk.bf16.mxu0 %vm7405_vm1, %v7404_v15  ;;  %6750 = vmatprep.subr.bf16.mxu0 %v7404_v15 }
 0x4c7   :  { %6723 = vmatmul.mubr.msk.bf16.vlgmr.msra.gmra.mrb[64].mxu1 %vm499_vm2, %v1590_v7 }
 0x4c8   :  { %6733 = vmatpush3.bf16.xpose.msra.mxu1 %v1927_v17  ;;  %6734 = vmatprep.mubr.msk.bf16.mxu1 %vm7405_vm1, %v7404_v15 }
 0x4c9   :  { %6744 = vmatprep.subr.bf16.mxu1 %v7404_v15 }
 0x4cf   :  { %6735 = vmatmul.mubr.msk.bf16.vlgmr.msra.gmra.mrb[68].mxu1 %vm499_vm2, %v1592_v54 }
 0x4d0   :  { %6745 = vmatpush3.bf16.msra.mxu1 %v2131_v62  ;;  %6746 = vmatprep.mubr.msk.bf16.mxu1 %vm7405_vm1, %v7404_v15 }
 0x4d1   :  { %6756 = vmatprep.subr.bf16.mxu1 %v7404_v15 }
 0x581   :  { %v1733_v14 = vpop.f32.mrb[60].mxu0 }
 0x582   :  { %v1641_v20 = vpop.f32.mrb[52].mxu1  ;;  %v6706_v21 = vpop.f32.mrb[61].mxu0  ;;  %v1971_v12 = vmul.f32 0.25, %v1733_v14 }
 0x583   :  { %v1969_v19 = vmul.f32 0.25, %v1641_v20  ;;  %v6694_v23 = vpop.f32.mrb[53].mxu1  ;;  %v1736_v24 = vpop.f32.mrb[62].mxu0 }
 0x584   :  { %v1644_v25 = vpop.f32.mrb[54].mxu1  ;;  %v6707_v26 = vpop.f32.mrb[63].mxu0  ;;  %v1983_v28 = vsel %vm876_vm4, %v1971_v12, -inf }
 0x585   :  { %v6695_v6 = vpop.f32.mrb[55].mxu1  ;;  %v1977_v61 = vsel %vm876_vm4, %v1969_v19, -inf }
 0x586   :  { %1978 = vmax.xlane.f32.xlu0 %v1977_v61 }
 0x58a   :  { %v1687_v29 = vpop.f32.mrb[56].mxu1  ;;  %1984 = vmax.xlane.f32.xlu0 %v1983_v28  ;;  %v1825_v22 = vpop.f32.mrb[64].mxu0 }
 0x58b   :  { %v1970_v27 = vmul.f32 0.25, %v1687_v29  ;;  %v1973_v5 = vmul.f32 0.25, %v1825_v22  ;;  %v6700_v30 = vpop.f32.mrb[57].mxu1  ;;  %v6718_v31 = vpop.f32.mrb[65].mxu0 }
 0x58c   :  { %v1690_v34 = vpop.f32.mrb[58].mxu1  ;;  %v1828_v4 = vpop.f32.mrb[66].mxu0 }
 0x58d   :  { %v6701_v1 = vpop.f32.mrb[59].mxu1  ;;  %v6719_v33 = vpop.f32.mrb[67].mxu0  ;;  %v1980_v35 = vsel %vm876_vm4, %v1970_v27, -inf  ;;  %v1989_v38 = vsel %vm876_vm4, %v1973_v5, -inf }
 0x58e   :  { %1981 = vmax.xlane.f32.xlu1 %v1980_v35  ;;  %1990 = vmax.xlane.f32.xlu0 %v1989_v38 }
 0x592   :  { %v1779_v53 = vpop.f32.mrb[60].mxu1  ;;  %v1917_v40 = vpop.f32.mrb[68].mxu0 }
 0x593   :  { %v1972_v41 = vmul.f32 0.25, %v1779_v53  ;;  %v1975_v46 = vmul.f32 0.25, %v1917_v40  ;;  %v6712_v18 = vpop.f32.mrb[61].mxu1  ;;  %v6730_v48 = vpop.f32.mrb[69].mxu0 }
 0x594   :  { %v1782_v13 = vpop.f32.mrb[62].mxu1  ;;  %v1920_v51 = vpop.f32.mrb[70].mxu0 }
 0x595   :  { %v6713_v52 = vpop.f32.mrb[63].mxu1  ;;  %v6731_v56 = vpop.f32.mrb[71].mxu0  ;;  %v1986_v58 = vsel %vm876_vm4, %v1972_v41, -inf  ;;  %v1995_v3 = vsel %vm876_vm4, %v1975_v46, -inf }
 0x596   :  { %1987 = vmax.xlane.f32.xlu1 %v1986_v58  ;;  %1996 = vmax.xlane.f32.xlu0 %v1995_v3 }
 0x59a   :  { %v1871_v49 = vpop.f32.mrb[64].mxu1 }
 0x59b   :  { %v1974_v9 = vmul.f32 0.25, %v1871_v49  ;;  %v6724_v16 = vpop.f32.mrb[65].mxu1 }
 0x59c   :  { %v1874_v36 = vpop.f32.mrb[66].mxu1 }
 0x59d   :  { %v6725_v7 = vpop.f32.mrb[67].mxu1  ;;  %v1992_v17 = vsel %vm876_vm4, %v1974_v9, -inf }
 0x59e   :  { %1993 = vmax.xlane.f32.xlu1 %v1992_v17 }
 0x5a2   :  { %v1963_v8 = vpop.f32.mrb[68].mxu1 }
 0x5a3   :  { %v1976_v54 = vmul.f32 0.25, %v1963_v8  ;;  %v6736_v62 = vpop.f32.mrb[69].mxu1 }
 0x5a4   :  { %v1966_v14 = vpop.f32.mrb[70].mxu1 }
 0x5a5   :  { %v6737_v20 = vpop.f32.mrb[71].mxu1  ;;  %v1998_v21 = vsel %vm876_vm4, %v1976_v54, -inf }
 0x5a6   :  { %1999 = vmax.xlane.f32.xlu1 %v1998_v21 }
 0x613   :  { %v1979_v23 = vpop.xlane.xlu0 %1978 }
 0x614   :  { %v2001_v24 = vsub.f32 %v1969_v19, %v1979_v23  ;;  %v2075_v23 = vpack.c.bf16 %v7893_v32, %v7893_v32  ;;  %v2076_v32 = vpack.c.bf16 %v7895_v37, %v7895_v37 }
 0x616   :  { %v2009_v25 = vmul.f32 1.442695, %v2001_v24 }
 0x617   :  { %v1985_v26 = vpop.xlane.xlu0 %1984 }
 0x618   :  { %7252 = vpow2.f32 %v2009_v25  ;;  %v2003_v6 = vsub.f32 %v1971_v12, %v1985_v26 }
 0x61a   :  { %v2013_v61 = vmul.f32 1.442695, %v2003_v6  ;;  %v2177_v6 = vsel %vm984_vm3, %v2075_v23, 0 }
 0x61b   :  { %v1982_v28 = vpop.xlane.xlu1 %1981  ;;  %v1991_v29 = vpop.xlane.xlu0 %1990 }
 0x61c   :  { %7254 = vpow2.f32 %v2013_v61  ;;  %v2002_v22 = vsub.f32 %v1970_v27, %v1982_v28  ;;  %v2005_v30 = vsub.f32 %v1973_v5, %v1991_v29 }
 0x61e   :  { %v2011_v31 = vmul.f32 1.442695, %v2002_v22  ;;  %v2017_v34 = vmul.f32 1.442695, %v2005_v30  ;;  %v2077_v30 = vpack.c.bf16 %v7909_v0, %v7909_v0 }
 0x620   :  { %7256 = vpow2.f32 %v2011_v31 }
 0x621   :  { %7258 = vpow2.f32 %v2017_v34 }
 0x622   :  { %v7253_v4 = vpop.eup %7252 }
 0x623   :  { %v1988_v1 = vpop.xlane.xlu1 %1987  ;;  %v1997_v33 = vpop.xlane.xlu0 %1996  ;;  %v2025_v35 = vsel %vm876_vm4, %v7253_v4, 0.0 }
 0x624   :  { %v2004_v19 = vsub.f32 %v1972_v41, %v1988_v1  ;;  %v2007_v38 = vsub.f32 %v1975_v46, %v1997_v33  ;;  %2026 = vadd.xlane.f32.xlu0 %v2025_v35  ;;  %v2223_v33 = vsel %vm984_vm3, %v2076_v32, 0  ;;  %v2269_v35 = vsel %vm984_vm3, %v2077_v30, 0 }
 0x626   :  { %v7255_v53 = vpop.eup %7254  ;;  %v2015_v12 = vmul.f32 1.442695, %v2004_v19  ;;  %v2021_v40 = vmul.f32 1.442695, %v2007_v38  ;;  %v2079_v38 = vpack.c.bf16 %v7907_v47, %v7907_v47 }
 0x627   :  { %v2031_v18 = vsel %vm876_vm4, %v7255_v53, 0.0 }
 0x628   :  { %7260 = vpow2.f32 %v2015_v12  ;;  %2032 = vadd.xlane.f32.xlu0 %v2031_v18 }
 0x629   :  { %7262 = vpow2.f32 %v2021_v40 }
 0x62a   :  { %v7257_v27 = vpop.eup %7256 }
 0x62b   :  { %v7963_v5 = vpop.eup %7258  ;;  %v1994_v48 = vpop.xlane.xlu1 %1993  ;;  %v2028_v13 = vsel %vm876_vm4, %v7257_v27, 0.0 }
 0x62c   :  { %v2006_v51 = vsub.f32 %v1974_v9, %v1994_v48  ;;  %2029 = vadd.xlane.f32.xlu1 %v2028_v13  ;;  %v2037_v41 = vsel %vm876_vm4, %v7963_v5, 0.0 }
 0x62d   :  { %2038 = vadd.xlane.f32.xlu0 %v2037_v41 }
 0x62e   :  { %v2019_v46 = vmul.f32 1.442695, %v2006_v51  ;;  %v2080_v51 = vpack.c.bf16 %v7911_v50, %v7911_v50  ;;  %v7176_v50 = vld [vmem:[%s8950_s6 + $0x8] sm:$0xff]  }
 0x630   :  { %7264 = vpow2.f32 %v2019_v46 }
 0x632   :  { %v7261_v52 = vpop.eup %7260 }
 0x633   :  { %v7968_v56 = vpop.eup %7262  ;;  %v2000_v58 = vpop.xlane.xlu1 %1999  ;;  %v2034_v3 = vsel %vm876_vm4, %v7261_v52, 0.0 }
 0x634   :  { %v2008_v49 = vsub.f32 %v1976_v54, %v2000_v58  ;;  %2035 = vadd.xlane.f32.xlu1 %v2034_v3  ;;  %v2043_v16 = vsel %vm876_vm4, %v7968_v56, 0.0  ;;  %v2407_v58 = vsel %vm984_vm3, %v2080_v51, 0 }
 0x635   :  { %2044 = vadd.xlane.f32.xlu0 %v2043_v16  ;;  %v7177_v16 = vld [vmem:[%s8950_s6] sm:$0xff]  }
 0x636   :  { %v2023_v9 = vmul.f32 1.442695, %v2008_v49 }
 0x638   :  { %7266 = vpow2.f32 %v2023_v9 }
 0x63a   :  { %v7973_v36 = vpop.eup %7264 }
 0x63b   :  { %v2040_v7 = vsel %vm876_vm4, %v7973_v36, 0.0 }
 0x63c   :  { %2041 = vadd.xlane.f32.xlu1 %v2040_v7 }
 0x642   :  { %v7977_v17 = vpop.eup %7266 }
 0x643   :  { %v2046_v8 = vsel %vm876_vm4, %v7977_v17, 0.0 }
 0x644   :  { %2047 = vadd.xlane.f32.xlu1 %v2046_v8 }
 0x6b1   :  { %v2027_v54 = vpop.xlane.xlu0 %2026 }
 0x6b2   :  { %7268 = vrcp.f32 %v2027_v54 }
 0x6b5   :  { %v2033_v62 = vpop.xlane.xlu0 %2032 }
 0x6b6   :  { %7270 = vrcp.f32 %v2033_v62 }
 0x6b9   :  { %v2030_v14 = vpop.xlane.xlu1 %2029 }
 0x6ba   :  { %7272 = vrcp.f32 %v2030_v14  ;;  %v2039_v20 = vpop.xlane.xlu0 %2038 }
 0x6bb   :  { %7274 = vrcp.f32 %v2039_v20 }
 0x6bc   :  { %v7269_v21 = vpop.eup %7268 }
 0x6bd   :  { %v2057_v24 = vmul.f32 %v7269_v21, %v7253_v4 }
 0x6bf   :  { %v2065_v25 = vpack.c.bf16 %v2057_v24, %v2057_v24 }
 0x6c0   :  { %v7271_v26 = vpop.eup %7270 }
 0x6c1   :  { %v2036_v61 = vpop.xlane.xlu1 %2035  ;;  %6741 = vmatmul.mubr.msk.bf16.vlgmr.msra.gmra.mrb[72].mxu0 %vm876_vm4, %v2065_v25  ;;  %v2059_v28 = vmul.f32 %v7271_v26, %v7255_v53  ;;  %v2078_v53 = vpack.c.bf16 %v7915_v55, %v7915_v55 }
 0x6c2   :  { %7276 = vrcp.f32 %v2036_v61  ;;  %6751 = vmatpush3.bf16.msra.mxu0 %v2177_v6  ;;  %6752 = vmatprep.mubr.msk.bf16.mxu0 %vm7405_vm1, %v7404_v15  ;;  %v2045_v29 = vpop.xlane.xlu0 %2044 }
 0x6c3   :  { %6762 = vmatprep.subr.bf16.mxu0 %v7404_v15  ;;  %7278 = vrcp.f32 %v2045_v29  ;;  %v2067_v4 = vpack.c.bf16 %v2059_v28, %v2059_v28  ;;  %v2315_v48 = vsel %vm984_vm3, %v2078_v53, 0 }
 0x6c4   :  { %v7273_v22 = vpop.eup %7272 }
 0x6c5   :  { %v2058_v31 = vmul.f32 %v7273_v22, %v7257_v27  ;;  %v7275_v1 = vpop.eup %7274 }
 0x6c6   :  { %v2061_v37 = vmul.f32 %v7275_v1, %v7963_v5  ;;  %v2361_v5 = vsel %vm984_vm3, %v2079_v38, 0 }
 0x6c7   :  { %v2066_v34 = vpack.c.bf16 %v2058_v31, %v2058_v31 }
 0x6c8   :  { %v2069_v18 = vpack.c.bf16 %v2061_v37, %v2061_v37 }
 0x6c9   :  { %v2042_v19 = vpop.xlane.xlu1 %2041  ;;  %6747 = vmatmul.mubr.msk.bf16.vlgmr.msra.gmra.mrb[72].mxu1 %vm876_vm4, %v2066_v34  ;;  %6753 = vmatmul.mubr.msk.bf16.vlgmr.msra.gmra.mrb[76].mxu0 %vm876_vm4, %v2067_v4 }
 0x6ca   :  { %7280 = vrcp.f32 %v2042_v19  ;;  %6757 = vmatpush3.bf16.msra.mxu1 %v2223_v33  ;;  %6763 = vmatpush3.bf16.msra.mxu0 %v2269_v35 }
 0x6cb   :  { %6758 = vmatprep.mubr.msk.bf16.mxu1 %vm7405_vm1, %v7404_v15  ;;  %6764 = vmatprep.mubr.msk.bf16.mxu0 %vm7405_vm1, %v7404_v15 }
 0x6cc   :  { %v7277_v0 = vpop.eup %7276  ;;  %6768 = vmatprep.subr.bf16.mxu1 %v7404_v15  ;;  %6774 = vmatprep.subr.bf16.mxu0 %v7404_v15 }
 0x6cd   :  { %v2060_v12 = vmul.f32 %v7277_v0, %v7261_v52  ;;  %v7279_v27 = vpop.eup %7278 }
 0x6ce   :  { %v2063_v47 = vmul.f32 %v7279_v27, %v7968_v56 }
 0x6cf   :  { %v2068_v40 = vpack.c.bf16 %v2060_v12, %v2060_v12 }
 0x6d0   :  { %v2071_v52 = vpack.c.bf16 %v2063_v47, %v2063_v47 }
 0x6d1   :  { %v2048_v13 = vpop.xlane.xlu1 %2047  ;;  %6759 = vmatmul.mubr.msk.bf16.vlgmr.msra.gmra.mrb[76].mxu1 %vm876_vm4, %v2068_v40  ;;  %6765 = vmatmul.mubr.msk.bf16.vlgmr.msra.gmra.mrb[80].mxu0 %vm876_vm4, %v2069_v18 }
 0x6d2   :  { %7282 = vrcp.f32 %v2048_v13  ;;  %6769 = vmatpush3.bf16.msra.mxu1 %v2315_v48  ;;  %6775 = vmatpush3.bf16.msra.mxu0 %v2361_v5 }
 0x6d3   :  { %6770 = vmatprep.mubr.msk.bf16.mxu1 %vm7405_vm1, %v7404_v15  ;;  %6776 = vmatprep.mubr.msk.bf16.mxu0 %vm7405_vm1, %v7404_v15 }
 0x6d4   :  { %v7281_v55 = vpop.eup %7280  ;;  %6780 = vmatprep.subr.bf16.mxu1 %v7404_v15  ;;  %6786 = vmatprep.subr.bf16.mxu0 %v7176_v50 }
 0x6d5   :  { %v2062_v41 = vmul.f32 %v7281_v55, %v7973_v36 }
 0x6d7   :  { %v2070_v46 = vpack.c.bf16 %v2062_v41, %v2062_v41 }
 0x6d9   :  { %6771 = vmatmul.mubr.msk.bf16.vlgmr.msra.gmra.mrb[80].mxu1 %vm876_vm4, %v2070_v46  ;;  %6777 = vmatmul.mubr.msk.bf16.vlgmr.msra.gmra.mrb[84].mxu0 %vm876_vm4, %v2071_v52 }
 0x6da   :  { %6781 = vmatpush3.bf16.msra.mxu1 %v2407_v58  ;;  %6782 = vmatprep.mubr.msk.bf16.mxu1 %vm7405_vm1, %v7404_v15 }
 0x6db   :  { %6787 = vmatpush3.bf16.msra.mxu0 %v7176_v50 }
 0x6dc   :  { %v7283_v56 = vpop.eup %7282  ;;  %6796 = vmatprep.subr.bf16.mxu0 %v7177_v16 }
 0x6dd   :  { %v2064_v3 = vmul.f32 %v7283_v56, %v7977_v17 }
 0x6df   :  { %v2072_v49 = vpack.c.bf16 %v2064_v3, %v2064_v3 }
 0x6e1   :  { %6783 = vmatmul.mubr.msk.bf16.vlgmr.msra.gmra.mrb[84].mxu1 %vm876_vm4, %v2072_v49 }
 0x794   :  { %v2121_v9 = vpop.f32.mrb[72].mxu0 }
 0x795   :  { %v6742_v36 = vpop.f32.mrb[73].mxu0 }
 0x796   :  { %v2124_v7 = vpop.f32.mrb[74].mxu0 }
 0x797   :  { %v6743_v8 = vpop.f32.mrb[75].mxu0 }
 0x79c   :  { %v2167_v54 = vpop.f32.mrb[72].mxu1  ;;  %v2213_v17 = vpop.f32.mrb[76].mxu0 }
 0x79d   :  { %v2449_v62 = vpack.c.bf16 %v2167_v54, %v2121_v9  ;;  %v6748_v14 = vpop.f32.mrb[73].mxu1  ;;  %v6754_v20 = vpop.f32.mrb[77].mxu0  ;;  %v7400_v9 = vld [vmem:[%s8944_s0 + $0x30] sm:$0xff]  ;;  %v7401_v54 = vld [vmem:[%s8944_s0 + $0x38] sm:$0xff] }
 0x79e   :  { %v2170_v21 = vpop.f32.mrb[74].mxu1  ;;  %v2216_v23 = vpop.f32.mrb[78].mxu0 }
 0x79f   :  { %v6749_v24 = vpop.f32.mrb[75].mxu1  ;;  %v6755_v25 = vpop.f32.mrb[79].mxu0  ;;  %6788 = vmatprep.mubr.msk.bf16.mxu0 %vm499_vm2, %v2449_v62  ;;  %v7402_v21 = vld [vmem:[%s8944_s0 + $0x20] sm:$0xff] }
 0x7a4   :  { %v2259_v26 = vpop.f32.mrb[76].mxu1  ;;  %v2305_v6 = vpop.f32.mrb[80].mxu0 }
 0x7a5   :  { %v2450_v61 = vpack.c.bf16 %v2259_v26, %v2213_v17  ;;  %v6760_v28 = vpop.f32.mrb[77].mxu1  ;;  %v6766_v29 = vpop.f32.mrb[81].mxu0  ;;  %v7403_v26 = vld [vmem:[%s8944_s0 + $0x28] sm:$0xff] }
 0x7a6   :  { %v2262_v22 = vpop.f32.mrb[78].mxu1  ;;  %v2308_v32 = vpop.f32.mrb[82].mxu0 }
 0x7a7   :  { %v6761_v30 = vpop.f32.mrb[79].mxu1  ;;  %v6767_v31 = vpop.f32.mrb[83].mxu0  ;;  %6789 = vmatmul.mubr.msk.bf16.vlgmr.msra.gmra.mrb[88].mxu0 %vm499_vm2, %v2450_v61 }
 0x7a8   :  { %6797 = vmatpush3.bf16.msra.mxu0 %v7177_v16 }
 0x7ac   :  { %v2351_v34 = vpop.f32.mrb[80].mxu1  ;;  %v2397_v4 = vpop.f32.mrb[84].mxu0 }
 0x7ad   :  { %v2451_v1 = vpack.c.bf16 %v2351_v34, %v2305_v6  ;;  %v6772_v33 = vpop.f32.mrb[81].mxu1  ;;  %v6778_v35 = vpop.f32.mrb[85].mxu0 }
 0x7ae   :  { %v2354_v19 = vpop.f32.mrb[82].mxu1  ;;  %v2400_v37 = vpop.f32.mrb[86].mxu0 }
 0x7af   :  { %v6773_v0 = vpop.f32.mrb[83].mxu1  ;;  %v6779_v38 = vpop.f32.mrb[87].mxu0  ;;  %6792 = vmatprep.mubr.msk.bf16.mxu0 %vm499_vm2, %v2451_v1 }
 0x7b0   :  { %v7178_v38 = vld [vmem:[%s8952_s10] sm:$0xff]  }
 0x7b1   :  { %6806 = vmatprep.subr.bf16.mxu1 %v7178_v38 }
 0x7b2   :  { %6807 = vmatpush3.bf16.msra.mxu1 %v7178_v38 }
 0x7b4   :  { %v2443_v53 = vpop.f32.mrb[84].mxu1 }
 0x7b5   :  { %v2452_v12 = vpack.c.bf16 %v2443_v53, %v2397_v4  ;;  %v6784_v40 = vpop.f32.mrb[85].mxu1  ;;  %v7179_v53 = vld [vmem:[%s8952_s10 + $0x8] sm:$0xff]  }
 0x7b6   :  { %v2446_v18 = vpop.f32.mrb[86].mxu1  ;;  %6808 = vmatprep.subr.bf16.mxu1 %v7179_v53 }
 0x7b7   :  { %v6785_v27 = vpop.f32.mrb[87].mxu1  ;;  %6793 = vmatmul.mubr.msk.bf16.gmra.mrb[92].mxu0 %vm499_vm2, %v2452_v12  ;;  %6809 = vmatpush3.bf16.msra.mxu1 %v7179_v53  ;;  %v8145_v12 = vld [vmem:[%s8953_s12] sm:$0xff]  }
 0x7b8   :  { %6798 = vmatprep.mubr.msk.bf16.mxu0 %vm499_vm2, %v1350_v45  ;;  %6818 = vmatprep.subr.bf16.mxu1 %v8145_v12 }
 0x7bf   :  { %6799 = vmatmul.mubr.msk.bf16.vlgmr.msra.gmra.mrb[88].mxu0 %vm499_vm2, %v1351_v2 }
 0x7c0   :  { %6802 = vmatprep.mubr.msk.bf16.mxu0 %vm499_vm2, %v1352_v60  ;;  %v7398_v60 = vld [vmem:[%s8944_s0 + $0x18] sm:$0xff] }
 0x7c7   :  { %6803 = vmatmul.mubr.msk.bf16.gmra.mrb[92].mxu0 %vm499_vm2, %v1353_v11  ;;  %v7399_v11 = vld [vmem:[%s8944_s0 + $0x8] sm:$0xff] }
 0x892   :  { %v6800_v5 = vpop.f32.mrb[88].mxu0 }
 0x893   :  { %v2621_v57 = vadd.f32 %v7396_v42, %v6800_v5  ;;  %v2588_v45 = vpop.f32.mrb[89].mxu0 }
 0x894   :  { %v2619_v2 = vadd.f32 %v7397_v43, %v2588_v45  ;;  %v6801_v44 = vpop.f32.mrb[90].mxu0 }
 0x895   :  { %v8062_v59 = vadd.f32 %v6109_v39, %v2621_v57  ;;  %v2622_v63 = vadd.f32 %v7398_v60, %v6801_v44  ;;  %v2591_v10 = vpop.f32.mrb[91].mxu0 }
 0x896   :  { %v2620_v48 = vadd.f32 %v7399_v11, %v2591_v10  ;;  %v8070_v13 = vadd.f32 %v6109_v39, %v2619_v2 }
 0x897   :  { %v8072_v47 = vadd.f32 %v6109_v39, %v2622_v63  ;;  %v2650_v55 = vsel %vm58_vm0, %v8062_v59, 0.0  ;;  %v2678_v8 = vmul.f32 %v8062_v59, %v8062_v59 }
 0x898   :  { %2651 = vadd.xlane.f32.xlu0 %v2650_v55  ;;  %v8076_v51 = vadd.f32 %v6109_v39, %v2620_v48  ;;  %v2644_v58 = vsel %vm58_vm0, %v8070_v13, 0.0  ;;  %v2676_v56 = vmul.f32 %v8070_v13, %v8070_v13 }
 0x899   :  { %v2653_v41 = vsel %vm58_vm0, %v8072_v47, 0.0  ;;  %v2679_v14 = vmul.f32 %v8072_v47, %v8072_v47  ;;  %v2690_v24 = vsel %vm58_vm0, %v2678_v8, 0.0 }
 0x89a   :  { %2654 = vadd.xlane.f32.xlu1 %v2653_v41  ;;  %v6804_v46 = vpop.f32.mrb[92].mxu0  ;;  %v2647_v50 = vsel %vm58_vm0, %v8076_v51, 0.0  ;;  %v2677_v16 = vmul.f32 %v8076_v51, %v8076_v51  ;;  %v2684_v7 = vsel %vm58_vm0, %v2676_v56, 0.0 }
 0x89b   :  { %v2604_v52 = vpop.f32.mrb[93].mxu0  ;;  %v2625_v36 = vadd.f32 %v7400_v9, %v6804_v46  ;;  %v2693_v61 = vsel %vm58_vm0, %v2679_v14, 0.0 }
 0x89c   :  { %2645 = vadd.xlane.f32.xlu0 %v2644_v58  ;;  %v6805_v3 = vpop.f32.mrb[94].mxu0  ;;  %v2687_v62 = vsel %vm58_vm0, %v2677_v16, 0.0  ;;  %v2623_v23 = vadd.f32 %v7402_v21, %v2604_v52 }
 0x89d   :  { %v2607_v49 = vpop.f32.mrb[95].mxu0  ;;  %v2626_v17 = vadd.f32 %v7401_v54, %v6805_v3  ;;  %v8100_v20 = vadd.f32 %v6109_v39, %v2625_v36 }
 0x89e   :  { %2648 = vadd.xlane.f32.xlu1 %v2647_v50  ;;  %v2624_v6 = vadd.f32 %v7403_v26, %v2607_v49  ;;  %v8112_v28 = vadd.f32 %v6109_v39, %v2623_v23 }
 0x89f   :  { %v8106_v25 = vadd.f32 %v6109_v39, %v2626_v17  ;;  %v2662_v29 = vsel %vm58_vm0, %v8100_v20, 0.0  ;;  %v2682_v33 = vmul.f32 %v8100_v20, %v8100_v20 }
 0x8a0   :  { %2685 = vadd.xlane.f32.xlu0 %v2684_v7  ;;  %v8116_v22 = vadd.f32 %v6109_v39, %v2624_v6  ;;  %v2656_v30 = vsel %vm58_vm0, %v8112_v28, 0.0  ;;  %v2680_v31 = vmul.f32 %v8112_v28, %v8112_v28 }
 0x8a1   :  { %v2665_v32 = vsel %vm58_vm0, %v8106_v25, 0.0  ;;  %v2683_v19 = vmul.f32 %v8106_v25, %v8106_v25  ;;  %v2702_v37 = vsel %vm58_vm0, %v2682_v33, 0.0 }
 0x8a2   :  { %2688 = vadd.xlane.f32.xlu1 %v2687_v62  ;;  %v2659_v34 = vsel %vm58_vm0, %v8116_v22, 0.0  ;;  %v2681_v4 = vmul.f32 %v8116_v22, %v8116_v22  ;;  %v2696_v1 = vsel %vm58_vm0, %v2680_v31, 0.0 }
 0x8a3   :  { %v2705_v0 = vsel %vm58_vm0, %v2683_v19, 0.0 }
 0x8a4   :  { %2691 = vadd.xlane.f32.xlu0 %v2690_v24  ;;  %v2699_v35 = vsel %vm58_vm0, %v2681_v4, 0.0 }
 0x8a6   :  { %2694 = vadd.xlane.f32.xlu1 %v2693_v61 }
 0x8a8   :  { %2663 = vadd.xlane.f32.xlu0 %v2662_v29  ;;  %v8164_v29 = vld [vmem:[%s8954_s8] ss:$0 sm:$0xff] }
 0x8aa   :  { %2666 = vadd.xlane.f32.xlu1 %v2665_v32 }
 0x8ac   :  { %2657 = vadd.xlane.f32.xlu0 %v2656_v30 }
 0x8ae   :  { %2660 = vadd.xlane.f32.xlu1 %v2659_v34 }
 0x8b0   :  { %2697 = vadd.xlane.f32.xlu0 %v2696_v1 }
 0x8b2   :  { %2700 = vadd.xlane.f32.xlu1 %v2699_v35 }
 0x8b4   :  { %2703 = vadd.xlane.f32.xlu0 %v2702_v37 }
 0x8b6   :  { %2706 = vadd.xlane.f32.xlu1 %v2705_v0 }
 0x925   :  { %v2652_v40 = vpop.xlane.xlu0 %2651 }
 0x926   :  { %v2670_v45 = vmul.f32 0.03125, %v2652_v40 }
 0x927   :  { %v2655_v18 = vpop.xlane.xlu1 %2654 }
 0x928   :  { %v8148_v44 = vmul.f32 0.03125, %v2655_v18  ;;  %v2718_v55 = vmul.f32 %v2670_v45, %v2670_v45  ;;  %v2734_v19 = vsub.f32 %v8062_v59, %v2670_v45 }
 0x929   :  { %v2646_v27 = vpop.xlane.xlu0 %2645 }
 0x92a   :  { %v2668_v5 = vmul.f32 0.03125, %v2646_v27  ;;  %v2719_v58 = vmul.f32 %v8148_v44, %v8148_v44 }
 0x92b   :  { %v2649_v39 = vpop.xlane.xlu1 %2648 }
 0x92c   :  { %v2669_v42 = vmul.f32 0.03125, %v2649_v39  ;;  %v2716_v43 = vmul.f32 %v2668_v5, %v2668_v5  ;;  %v2732_v21 = vsub.f32 %v8070_v13, %v2668_v5  ;;  %v6111_v39 = vld [vmem:[%s8955_s9] ss:$0 sm:$0xff] }
 0x92d   :  { %v2686_v57 = vpop.xlane.xlu0 %2685 }
 0x92e   :  { %v2708_v2 = vmul.f32 0.03125, %v2686_v57  ;;  %v2717_v63 = vmul.f32 %v2669_v42, %v2669_v42  ;;  %v2733_v32 = vsub.f32 %v8076_v51, %v2669_v42  ;;  %v2735_v42 = vsub.f32 %v8072_v47, %v8148_v44 }
 0x92f   :  { %v2689_v60 = vpop.xlane.xlu1 %2688 }
 0x930   :  { %v2724_v10 = vsub.f32 %v2708_v2, %v2716_v43  ;;  %v2709_v11 = vmul.f32 0.03125, %v2689_v60 }
 0x931   :  { %v2692_v48 = vpop.xlane.xlu0 %2691 }
 0x932   :  { %v2740_v41 = vadd.f32 1e-05, %v2724_v10  ;;  %v2725_v46 = vsub.f32 %v2709_v11, %v2717_v63  ;;  %v2710_v52 = vmul.f32 0.03125, %v2692_v48 }
 0x933   :  { %v2695_v56 = vpop.xlane.xlu1 %2694 }
 0x934   :  { %7284 = vrsqrt.f32 %v2740_v41  ;;  %v2741_v3 = vadd.f32 1e-05, %v2725_v46  ;;  %v2726_v49 = vsub.f32 %v2710_v52, %v2718_v55  ;;  %v2711_v50 = vmul.f32 0.03125, %v2695_v56 }
 0x935   :  { %v2664_v16 = vpop.xlane.xlu0 %2663 }
 0x936   :  { %7286 = vrsqrt.f32 %v2741_v3  ;;  %v2742_v9 = vadd.f32 1e-05, %v2726_v49  ;;  %v2727_v36 = vsub.f32 %v2711_v50, %v2719_v58  ;;  %v8157_v26 = vmul.f32 0.03125, %v2664_v16 }
 0x937   :  { %v2667_v7 = vpop.xlane.xlu1 %2666 }
 0x938   :  { %7288 = vrsqrt.f32 %v2742_v9  ;;  %v2743_v8 = vadd.f32 1e-05, %v2727_v36  ;;  %v8167_v30 = vmul.f32 0.03125, %v2667_v7  ;;  %v2722_v40 = vmul.f32 %v8157_v26, %v8157_v26  ;;  %v7181_v9 = vld [vmem:[%s8953_s12 + $0x8] sm:$0xff]  }
 0x939   :  { %v2658_v54 = vpop.xlane.xlu0 %2657 }
 0x93a   :  { %7290 = vrsqrt.f32 %v2743_v8  ;;  %v8152_v17 = vmul.f32 0.03125, %v2658_v54  ;;  %v2723_v45 = vmul.f32 %v8167_v30, %v8167_v30 }
 0x93b   :  { %v2661_v62 = vpop.xlane.xlu1 %2660 }
 0x93c   :  { %v8154_v14 = vmul.f32 0.03125, %v2661_v62  ;;  %v2720_v6 = vmul.f32 %v8152_v17, %v8152_v17  ;;  %v2736_v36 = vsub.f32 %v8112_v28, %v8152_v17  ;;  %v2739_v17 = vsub.f32 %v8106_v25, %v8167_v30  ;;  %v7182_v30 = vld [vmem:[%s8953_s12 + $0x10] sm:$0xff]  }
 0x93d   :  { %v2698_v23 = vpop.xlane.xlu0 %2697 }
 0x93e   :  { %v7285_v24 = vpop.eup %7284  ;;  %v2712_v61 = vmul.f32 0.03125, %v2698_v23  ;;  %v2721_v1 = vmul.f32 %v8154_v14, %v8154_v14  ;;  %v2737_v8 = vsub.f32 %v8116_v22, %v8154_v14 }
 0x93f   :  { %v2701_v31 = vpop.xlane.xlu1 %2700  ;;  %v2756_v34 = vmul.f32 %v7285_v24, %v2732_v21  ;;  %v2738_v21 = vsub.f32 %v8100_v20, %v8157_v26 }
 0x940   :  { %v7287_v4 = vpop.eup %7286  ;;  %v2728_v33 = vsub.f32 %v2712_v61, %v2720_v6  ;;  %v2713_v35 = vmul.f32 0.03125, %v2701_v31 }
 0x941   :  { %v2704_v37 = vpop.xlane.xlu0 %2703  ;;  %v2757_v0 = vmul.f32 %v7287_v4, %v2733_v32  ;;  %v2770_v38 = vmul.f32 %v8164_v29, %v2756_v34 }
 0x942   :  { %v7289_v53 = vpop.eup %7288  ;;  %v2744_v18 = vadd.f32 1e-05, %v2728_v33  ;;  %v2729_v27 = vsub.f32 %v2713_v35, %v2721_v1  ;;  %v2714_v5 = vmul.f32 0.03125, %v2704_v37  ;;  %v7183_v37 = vld [vmem:[%s8953_s12 + $0x18] sm:$0xff]  }
 0x943   :  { %v2758_v57 = vmul.f32 %v7289_v53, %v2734_v19  ;;  %v2707_v43 = vpop.xlane.xlu1 %2706  ;;  %v2771_v2 = vmul.f32 %v8164_v29, %v2757_v0  ;;  %v2784_v55 = vadd.f32 %v6111_v39, %v2770_v38 }
 0x944   :  { %v7291_v60 = vpop.eup %7290  ;;  %7292 = vrsqrt.f32 %v2744_v18  ;;  %v2745_v63 = vadd.f32 1e-05, %v2729_v27  ;;  %v2730_v10 = vsub.f32 %v2714_v5, %v2722_v40  ;;  %v2715_v11 = vmul.f32 0.03125, %v2707_v43 }
 0x945   :  { %v2759_v48 = vmul.f32 %v7291_v60, %v2735_v42  ;;  %v2785_v41 = vadd.f32 %v6111_v39, %v2771_v2  ;;  %v2772_v46 = vmul.f32 %v8164_v29, %v2758_v57 }
 0x946   :  { %7294 = vrsqrt.f32 %v2745_v63  ;;  %v2746_v52 = vadd.f32 1e-05, %v2730_v10  ;;  %v2731_v44 = vsub.f32 %v2715_v11, %v2723_v45 }
 0x947   :  { %v2792_v58 = vpack.c.bf16 %v2785_v41, %v2784_v55  ;;  %v2773_v56 = vmul.f32 %v8164_v29, %v2759_v48  ;;  %v2786_v49 = vadd.f32 %v6111_v39, %v2772_v46 }
 0x948   :  { %7296 = vrsqrt.f32 %v2746_v52  ;;  %v2747_v3 = vadd.f32 1e-05, %v2731_v44 }
 0x949   :  { %6810 = vmatprep.mubr.msk.bf16.mxu1 %vm58_vm0, %v2792_v58  ;;  %v2787_v50 = vadd.f32 %v6111_v39, %v2773_v56 }
 0x94a   :  { %7298 = vrsqrt.f32 %v2747_v3 }
 0x94b   :  { %v2793_v16 = vpack.c.bf16 %v2787_v50, %v2786_v49 }
 0x94d   :  { %6811 = vmatmul.mubr.msk.bf16.vlgmr.msra.gmra.mrb[88].mxu1 %vm58_vm0, %v2793_v16  ;;  %v6119_v16 = vld [vmem:[%s8957_s13] ss:$0 sm:$0xff] }
 0x94e   :  { %v7293_v7 = vpop.eup %7292  ;;  %6819 = vmatpush3.bf16.msra.mxu1 %v8145_v12 }
 0x94f   :  { %v2760_v54 = vmul.f32 %v7293_v7, %v2736_v36  ;;  %6820 = vmatprep.subr.bf16.mxu1 %v7181_v9 }
 0x950   :  { %v7295_v62 = vpop.eup %7294 }
 0x951   :  { %v2761_v23 = vmul.f32 %v7295_v62, %v2737_v8  ;;  %v2774_v24 = vmul.f32 %v8164_v29, %v2760_v54 }
 0x952   :  { %v7297_v6 = vpop.eup %7296  ;;  %6821 = vmatpush3.bf16.msra.mxu1 %v7181_v9 }
 0x953   :  { %v2775_v61 = vmul.f32 %v8164_v29, %v2761_v23  ;;  %v2762_v12 = vmul.f32 %v7297_v6, %v2738_v21  ;;  %v2788_v31 = vadd.f32 %v6111_v39, %v2774_v24  ;;  %6822 = vmatprep.subr.bf16.mxu1 %v7182_v30 }
 0x954   :  { %v7299_v32 = vpop.eup %7298 }
 0x955   :  { %v2789_v14 = vadd.f32 %v6111_v39, %v2775_v61  ;;  %v2763_v34 = vmul.f32 %v7299_v32, %v2739_v17  ;;  %v2776_v4 = vmul.f32 %v8164_v29, %v2762_v12 }
 0x956   :  { %6823 = vmatpush3.bf16.msra.mxu1 %v7182_v30 }
 0x957   :  { %v2794_v1 = vpack.c.bf16 %v2789_v14, %v2788_v31  ;;  %v2777_v26 = vmul.f32 %v8164_v29, %v2763_v34  ;;  %v2790_v33 = vadd.f32 %v6111_v39, %v2776_v4  ;;  %6824 = vmatprep.subr.bf16.mxu1 %v7183_v37  ;;  %v6112_v29 = vld [vmem:[%s8956_s11] ss:$0 sm:$0xff] }
 0x959   :  { %6814 = vmatprep.mubr.msk.bf16.mxu1 %vm58_vm0, %v2794_v1  ;;  %v2791_v35 = vadd.f32 %v6111_v39, %v2777_v26 }
 0x95a   :  { %6825 = vmatpush3.bf16.msra.mxu1 %v7183_v37 }
 0x95b   :  { %v2795_v19 = vpack.c.bf16 %v2791_v35, %v2790_v33 }
 0x95d   :  { %6815 = vmatmul.mubr.msk.bf16.gmra.mrb[92].mxu1 %vm58_vm0, %v2795_v19 }
 0xa20   :  { %v6812_v0 = vpop.f32.mrb[88].mxu1 }
 0xa21   :  { %v2874_v38 = vadd.f32 %v6812_v0, %v6112_v29  ;;  %v2865_v53 = vpop.f32.mrb[89].mxu1 }
 0xa22   :  { %v2866_v40 = vadd.f32 %v6112_v29, %v2865_v53  ;;  %v6813_v18 = vpop.f32.mrb[90].mxu1 }
 0xa23   :  { %v2877_v27 = vadd.f32 %v6813_v18, %v6112_v29  ;;  %v2868_v5 = vpop.f32.mrb[91].mxu1  ;;  %v2898_v42 = vmax.f32 %v2874_v38, 0.0 }
 0xa24   :  { %v2869_v39 = vadd.f32 %v6112_v29, %v2868_v5  ;;  %v2896_v45 = vmax.f32 %v2866_v40, 0.0 }
 0xa25   :  { %v2899_v57 = vmax.f32 %v2877_v27, 0.0 }
 0xa26   :  { %v2897_v43 = vmax.f32 %v2869_v39, 0.0 }
 0xa27   :  { %v2905_v2 = vpack.c.bf16 %v2899_v57, %v2898_v42 }
 0xa28   :  { %v2904_v60 = vpack.c.bf16 %v2897_v43, %v2896_v45 }
 0xa2a   :  { %6826 = vmatprep.mubr.msk.bf16.mxu1 %vm2947_vm5, %v2904_v60 }
 0xa2b   :  { %6827 = vmatmul.mubr.msk.bf16.vlgmr.msra.gmra.mrb[96].mxu1 %vm2947_vm5, %v2905_v2 }
 0xa30   :  { %v6816_v63 = vpop.f32.mrb[92].mxu1 }
 0xa31   :  { %v2890_v10 = vadd.f32 %v6816_v63, %v6112_v29  ;;  %v2881_v11 = vpop.f32.mrb[93].mxu1  ;;  %v7184_v63 = vld [vmem:[%s8945_s3 + $0x20] sm:$0xff]  }
 0xa32   :  { %v2882_v48 = vadd.f32 %v6112_v29, %v2881_v11  ;;  %v6817_v55 = vpop.f32.mrb[94].mxu1  ;;  %6834 = vmatprep.subr.bf16.mxu0 %v7184_v63  ;;  %v7186_v11 = vld [vmem:[%s8945_s3 + $0x28] sm:$0xff]  }
 0xa33   :  { %v2893_v41 = vadd.f32 %v6817_v55, %v6112_v29  ;;  %v2884_v46 = vpop.f32.mrb[95].mxu1  ;;  %v2902_v44 = vmax.f32 %v2890_v10, 0.0  ;;  %v7185_v10 = vld [vmem:[%s8946_s4 + $0x20] sm:$0xff]   ;;  %6835 = vmatpush3.bf16.msra.mxu0 %v7184_v63 }
 0xa34   :  { %v2885_v52 = vadd.f32 %v6112_v29, %v2884_v46  ;;  %v2900_v56 = vmax.f32 %v2882_v48, 0.0  ;;  %6846 = vmatprep.subr.bf16.mxu1 %v7185_v10  ;;  %v7187_v48 = vld [vmem:[%s8946_s4 + $0x28] sm:$0xff]   ;;  %6836 = vmatprep.subr.bf16.mxu0 %v7186_v11  ;;  %v8301_v55 = vld [vmem:[%s8947_s5 + $0x20] sm:$0xff]  }
 0xa35   :  { %v2903_v58 = vmax.f32 %v2893_v41, 0.0  ;;  %6847 = vmatpush3.bf16.msra.mxu1 %v7185_v10 }
 0xa36   :  { %v2901_v3 = vmax.f32 %v2885_v52, 0.0  ;;  %6848 = vmatprep.subr.bf16.mxu1 %v7187_v48 }
 0xa37   :  { %v2907_v49 = vpack.c.bf16 %v2903_v58, %v2902_v44  ;;  %6837 = vmatpush3.bf16.msra.mxu0 %v7186_v11 }
 0xa38   :  { %v2906_v50 = vpack.c.bf16 %v2901_v3, %v2900_v56  ;;  %6858 = vmatprep.subr.bf16.mxu0 %v8301_v55 }
 0xa39   :  { %6849 = vmatpush3.bf16.msra.mxu1 %v7187_v48 }
 0xa3a   :  { %6830 = vmatprep.mubr.msk.bf16.mxu1 %vm2947_vm5, %v2906_v50  ;;  %6870 = vmatprep.subr.bf16.mxu1 %v7404_v15 }
 0xa3b   :  { %6831 = vmatmul.mubr.msk.bf16.gmra.mrb[100].mxu1 %vm2947_vm5, %v2907_v49 }
 0xafe   :  { %v6828_v9 = vpop.f32.mrb[96].mxu1 }
 0xaff   :  { %v3003_v36 = vadd.f32 %v6828_v9, %v6119_v16  ;;  %v2994_v7 = vpop.f32.mrb[97].mxu1 }
 0xb00   :  { %v2995_v8 = vadd.f32 %v6119_v16, %v2994_v7  ;;  %v6829_v54 = vpop.f32.mrb[98].mxu1 }
 0xb01   :  { %v8222_v62 = vadd.f32 %v3003_v36, %v8062_v59  ;;  %v3006_v21 = vadd.f32 %v6829_v54, %v6119_v16  ;;  %v2997_v23 = vpop.f32.mrb[99].mxu1 }
 0xb02   :  { %v2998_v24 = vadd.f32 %v6119_v16, %v2997_v23  ;;  %v8225_v6 = vadd.f32 %v2995_v8, %v8070_v13 }
 0xb03   :  { %v8228_v17 = vadd.f32 %v3006_v21, %v8072_v47  ;;  %v3043_v61 = vsel %vm58_vm0, %v8222_v62, 0.0  ;;  %v3071_v14 = vmul.f32 %v8222_v62, %v8222_v62 }
 0xb04   :  { %3044 = vadd.xlane.f32.xlu0 %v3043_v61  ;;  %v8233_v12 = vadd.f32 %v2998_v24, %v8076_v51  ;;  %v3037_v32 = vsel %vm58_vm0, %v8225_v6, 0.0  ;;  %v3069_v13 = vmul.f32 %v8225_v6, %v8225_v6 }
 0xb05   :  { %v3046_v59 = vsel %vm58_vm0, %v8228_v17, 0.0  ;;  %v3072_v4 = vmul.f32 %v8228_v17, %v8228_v17  ;;  %v3083_v35 = vsel %vm58_vm0, %v3071_v14, 0.0 }
 0xb06   :  { %3047 = vadd.xlane.f32.xlu1 %v3046_v59  ;;  %v3040_v47 = vsel %vm58_vm0, %v8233_v12, 0.0  ;;  %v3070_v31 = vmul.f32 %v8233_v12, %v8233_v12  ;;  %v3077_v51 = vsel %vm58_vm0, %v3069_v13, 0.0 }
 0xb07   :  { %v3086_v38 = vsel %vm58_vm0, %v3072_v4, 0.0 }
 0xb08   :  { %3038 = vadd.xlane.f32.xlu0 %v3037_v32  ;;  %v3080_v34 = vsel %vm58_vm0, %v3070_v31, 0.0 }
 0xb0a   :  { %3041 = vadd.xlane.f32.xlu1 %v3040_v47 }
 0xb0c   :  { %3078 = vadd.xlane.f32.xlu0 %v3077_v51 }
 0xb0e   :  { %3081 = vadd.xlane.f32.xlu1 %v3080_v34  ;;  %v6832_v1 = vpop.f32.mrb[100].mxu1 }
 0xb0f   :  { %v3019_v26 = vadd.f32 %v6832_v1, %v6119_v16  ;;  %v3010_v33 = vpop.f32.mrb[101].mxu1 }
 0xb10   :  { %v3011_v19 = vadd.f32 %v6119_v16, %v3010_v33  ;;  %3084 = vadd.xlane.f32.xlu0 %v3083_v35  ;;  %v6833_v30 = vpop.f32.mrb[102].mxu1 }
 0xb11   :  { %v8253_v37 = vadd.f32 %v3019_v26, %v8100_v20  ;;  %v3022_v29 = vadd.f32 %v6833_v30, %v6119_v16  ;;  %v3013_v0 = vpop.f32.mrb[103].mxu1 }
 0xb12   :  { %v3014_v53 = vadd.f32 %v6119_v16, %v3013_v0  ;;  %3087 = vadd.xlane.f32.xlu1 %v3086_v38  ;;  %v8257_v40 = vadd.f32 %v3011_v19, %v8112_v28 }
 0xb13   :  { %v8260_v18 = vadd.f32 %v3022_v29, %v8106_v25  ;;  %v3055_v27 = vsel %vm58_vm0, %v8253_v37, 0.0  ;;  %v3075_v57 = vmul.f32 %v8253_v37, %v8253_v37 }
 0xb14   :  { %3056 = vadd.xlane.f32.xlu0 %v3055_v27  ;;  %v8265_v5 = vadd.f32 %v3014_v53, %v8116_v22  ;;  %v3049_v39 = vsel %vm58_vm0, %v8257_v40, 0.0  ;;  %v3073_v28 = vmul.f32 %v8257_v40, %v8257_v40  ;;  %v8316_v53 = vld [vmem:[%s8948_s1 + $0x1] ss:$0 sm:$0xff] }
 0xb15   :  { %v3058_v20 = vsel %vm58_vm0, %v8260_v18, 0.0  ;;  %v3076_v43 = vmul.f32 %v8260_v18, %v8260_v18  ;;  %v3095_v2 = vsel %vm58_vm0, %v3075_v57, 0.0 }
 0xb16   :  { %3059 = vadd.xlane.f32.xlu1 %v3058_v20  ;;  %v3052_v25 = vsel %vm58_vm0, %v8265_v5, 0.0  ;;  %v3074_v42 = vmul.f32 %v8265_v5, %v8265_v5  ;;  %v3089_v22 = vsel %vm58_vm0, %v3073_v28, 0.0 }
 0xb17   :  { %v3098_v60 = vsel %vm58_vm0, %v3076_v43, 0.0 }
 0xb18   :  { %3050 = vadd.xlane.f32.xlu0 %v3049_v39  ;;  %v3092_v45 = vsel %vm58_vm0, %v3074_v42, 0.0 }
 0xb1a   :  { %3053 = vadd.xlane.f32.xlu1 %v3052_v25 }
 0xb1c   :  { %3090 = vadd.xlane.f32.xlu0 %v3089_v22 }
 0xb1e   :  { %3093 = vadd.xlane.f32.xlu1 %v3092_v45 }
 0xb20   :  { %3096 = vadd.xlane.f32.xlu0 %v3095_v2 }
 0xb22   :  { %3099 = vadd.xlane.f32.xlu1 %v3098_v60 }
 0xb91   :  { %v3045_v41 = vpop.xlane.xlu0 %3044 }
 0xb92   :  { %v3063_v49 = vmul.f32 0.03125, %v3045_v41  ;;  %v6131_v41 = vld [vmem:[%s8949_s2 + $0x1] ss:$0 sm:$0xff] }
 0xb93   :  { %v3048_v46 = vpop.xlane.xlu1 %3047 }
 0xb94   :  { %v8304_v9 = vmul.f32 0.03125, %v3048_v46  ;;  %v3111_v23 = vmul.f32 %v3063_v49, %v3063_v49  ;;  %v3127_v60 = vsub.f32 %v8222_v62, %v3063_v49 }
 0xb95   :  { %v3039_v52 = vpop.xlane.xlu0 %3038 }
 0xb96   :  { %v3061_v44 = vmul.f32 0.03125, %v3039_v52  ;;  %v3112_v32 = vmul.f32 %v8304_v9, %v8304_v9 }
 0xb97   :  { %v3042_v58 = vpop.xlane.xlu1 %3041 }
 0xb98   :  { %v3062_v56 = vmul.f32 0.03125, %v3042_v58  ;;  %v3109_v50 = vmul.f32 %v3061_v44, %v3061_v44  ;;  %v3125_v29 = vsub.f32 %v8225_v6, %v3061_v44 }
 0xb99   :  { %v3079_v3 = vpop.xlane.xlu0 %3078 }
 0xb9a   :  { %v3101_v16 = vmul.f32 0.03125, %v3079_v3  ;;  %v3110_v7 = vmul.f32 %v3062_v56, %v3062_v56  ;;  %v3126_v28 = vsub.f32 %v8233_v12, %v3062_v56  ;;  %v3128_v56 = vsub.f32 %v8228_v17, %v8304_v9 }
 0xb9b   :  { %v3082_v36 = vpop.xlane.xlu1 %3081 }
 0xb9c   :  { %v3117_v8 = vsub.f32 %v3101_v16, %v3109_v50  ;;  %v3102_v54 = vmul.f32 0.03125, %v3082_v36 }
 0xb9d   :  { %v3085_v21 = vpop.xlane.xlu0 %3084 }
 0xb9e   :  { %v3133_v24 = vadd.f32 1e-05, %v3117_v8  ;;  %v3118_v61 = vsub.f32 %v3102_v54, %v3110_v7  ;;  %v3103_v59 = vmul.f32 0.03125, %v3085_v21 }
 0xb9f   :  { %v3088_v13 = vpop.xlane.xlu1 %3087 }
 0xba0   :  { %7300 = vrsqrt.f32 %v3133_v24  ;;  %v3134_v47 = vadd.f32 1e-05, %v3118_v61  ;;  %v3119_v31 = vsub.f32 %v3103_v59, %v3111_v23  ;;  %v3104_v51 = vmul.f32 0.03125, %v3088_v13 }
 0xba1   :  { %v3057_v14 = vpop.xlane.xlu0 %3056 }
 0xba2   :  { %7302 = vrsqrt.f32 %v3134_v47  ;;  %v3135_v34 = vadd.f32 1e-05, %v3119_v31  ;;  %v3120_v4 = vsub.f32 %v3104_v51, %v3112_v32  ;;  %v8318_v27 = vmul.f32 0.03125, %v3057_v14 }
 0xba3   :  { %v3060_v1 = vpop.xlane.xlu1 %3059 }
 0xba4   :  { %7304 = vrsqrt.f32 %v3135_v34  ;;  %v3136_v26 = vadd.f32 1e-05, %v3120_v4  ;;  %v8323_v42 = vmul.f32 0.03125, %v3060_v1  ;;  %v3115_v46 = vmul.f32 %v8318_v27, %v8318_v27  ;;  %v7189_v34 = vld [vmem:[%s8947_s5 + $0x28] sm:$0xff]  }
 0xba5   :  { %v3051_v33 = vpop.xlane.xlu0 %3050 }
 0xba6   :  { %7306 = vrsqrt.f32 %v3136_v26  ;;  %v8308_v35 = vmul.f32 0.03125, %v3051_v33  ;;  %v3116_v50 = vmul.f32 %v8323_v42, %v8323_v42 }
 0xba7   :  { %v3054_v19 = vpop.xlane.xlu1 %3053 }
 0xba8   :  { %v8310_v30 = vmul.f32 0.03125, %v3054_v19  ;;  %v3113_v20 = vmul.f32 %v8308_v35, %v8308_v35  ;;  %v3129_v4 = vsub.f32 %v8257_v40, %v8308_v35 }
 0xba9   :  { %v3091_v0 = vpop.xlane.xlu0 %3090 }
 0xbaa   :  { %v7301_v38 = vpop.eup %7300  ;;  %v3105_v39 = vmul.f32 0.03125, %v3091_v0  ;;  %v3114_v45 = vmul.f32 %v8310_v30, %v8310_v30  ;;  %v3130_v26 = vsub.f32 %v8265_v5, %v8310_v30 }
 0xbab   :  { %v3149_v25 = vmul.f32 %v7301_v38, %v3125_v29  ;;  %v3094_v22 = vpop.xlane.xlu1 %3093  ;;  %v3131_v29 = vsub.f32 %v8253_v37, %v8318_v27 }
 0xbac   :  { %v7303_v57 = vpop.eup %7302  ;;  %v3121_v43 = vsub.f32 %v3105_v39, %v3113_v20  ;;  %v3106_v2 = vmul.f32 0.03125, %v3094_v22  ;;  %v3132_v20 = vsub.f32 %v8260_v18, %v8323_v42 }
 0xbad   :  { %v3163_v63 = vmul.f32 %v8316_v53, %v3149_v25  ;;  %v3150_v10 = vmul.f32 %v7303_v57, %v3126_v28  ;;  %v3097_v11 = vpop.xlane.xlu0 %3096 }
 0xbae   :  { %v7305_v48 = vpop.eup %7304  ;;  %v3137_v52 = vadd.f32 1e-05, %v3121_v43  ;;  %v3122_v44 = vsub.f32 %v3106_v2, %v3114_v45  ;;  %v3107_v58 = vmul.f32 0.03125, %v3097_v11 }
 0xbaf   :  { %v3164_v3 = vmul.f32 %v8316_v53, %v3150_v10  ;;  %v3151_v49 = vmul.f32 %v7305_v48, %v3127_v60  ;;  %v3100_v16 = vpop.xlane.xlu1 %3099  ;;  %v3177_v21 = vadd.f32 %v6131_v41, %v3163_v63 }
 0xbb0   :  { %v7307_v36 = vpop.eup %7306  ;;  %7308 = vrsqrt.f32 %v3137_v52  ;;  %v3138_v7 = vadd.f32 1e-05, %v3122_v44  ;;  %v3123_v8 = vsub.f32 %v3107_v58, %v3115_v46  ;;  %v3108_v54 = vmul.f32 0.03125, %v3100_v16 }
 0xbb1   :  { %v3178_v23 = vadd.f32 %v6131_v41, %v3164_v3  ;;  %v3165_v24 = vmul.f32 %v8316_v53, %v3151_v49  ;;  %v3152_v61 = vmul.f32 %v7307_v36, %v3128_v56 }
 0xbb2   :  { %7310 = vrsqrt.f32 %v3138_v7  ;;  %v3139_v59 = vadd.f32 1e-05, %v3123_v8  ;;  %v3124_v9 = vsub.f32 %v3108_v54, %v3116_v50 }
 0xbb3   :  { %v3166_v32 = vmul.f32 %v8316_v53, %v3152_v61  ;;  %v8341_v13 = vpack.c.bf16 %v3178_v23, %v3177_v21  ;;  %v3179_v31 = vadd.f32 %v6131_v41, %v3165_v24 }
 0xbb4   :  { %7312 = vrsqrt.f32 %v3139_v59  ;;  %v3140_v47 = vadd.f32 1e-05, %v3124_v9 }
 0xbb5   :  { %v3180_v51 = vadd.f32 %v6131_v41, %v3166_v32  ;;  %6838 = vmatprep.mubr.msk.bf16.mxu0 %vm58_vm0, %v8341_v13  ;;  %6850 = vmatprep.mubr.msk.bf16.mxu1 %vm58_vm0, %v8341_v13 }
 0xbb6   :  { %7314 = vrsqrt.f32 %v3140_v47 }
 0xbb7   :  { %v8347_v14 = vpack.c.bf16 %v3180_v51, %v3179_v31 }
 0xbb9   :  { %6839 = vmatmul.mubr.msk.bf16.vlgmr.msra.gmra.mrb[96].mxu0 %vm58_vm0, %v8347_v14  ;;  %6851 = vmatmul.mubr.msk.bf16.vlgmr.msra.gmra.mrb[104].mxu1 %vm58_vm0, %v8347_v14 }
 0xbba   :  { %v7309_v1 = vpop.eup %7308  ;;  %6859 = vmatpush3.bf16.msra.mxu0 %v8301_v55 }
 0xbbb   :  { %v3153_v33 = vmul.f32 %v7309_v1, %v3129_v4  ;;  %6860 = vmatprep.subr.bf16.mxu0 %v7189_v34 }
 0xbbc   :  { %v7311_v19 = vpop.eup %7310 }
 0xbbd   :  { %v3167_v35 = vmul.f32 %v8316_v53, %v3153_v33  ;;  %v3154_v0 = vmul.f32 %v7311_v19, %v3130_v26 }
 0xbbe   :  { %v7313_v38 = vpop.eup %7312  ;;  %6861 = vmatpush3.bf16.msra.mxu0 %v7189_v34 }
 0xbbf   :  { %v3168_v39 = vmul.f32 %v8316_v53, %v3154_v0  ;;  %v3155_v55 = vmul.f32 %v7313_v38, %v3131_v29  ;;  %6882 = vmatprep.subr.bf16.mxu0 %v7404_v15  ;;  %v3181_v28 = vadd.f32 %v6131_v41, %v3167_v35 }
 0xbc0   :  { %v7315_v30 = vpop.eup %7314 }
 0xbc1   :  { %v3182_v25 = vadd.f32 %v6131_v41, %v3168_v39  ;;  %v3169_v22 = vmul.f32 %v8316_v53, %v3155_v55  ;;  %v3156_v57 = vmul.f32 %v7315_v30, %v3132_v20 }
 0xbc3   :  { %v3170_v27 = vmul.f32 %v8316_v53, %v3156_v57  ;;  %v8370_v45 = vpack.c.bf16 %v3182_v25, %v3181_v28  ;;  %v3183_v43 = vadd.f32 %v6131_v41, %v3169_v22 }
 0xbc5   :  { %v3184_v2 = vadd.f32 %v6131_v41, %v3170_v27  ;;  %6842 = vmatprep.mubr.msk.bf16.mxu0 %vm58_vm0, %v8370_v45  ;;  %6854 = vmatprep.mubr.msk.bf16.mxu1 %vm58_vm0, %v8370_v45 }
 0xbc7   :  { %v8376_v42 = vpack.c.bf16 %v3184_v2, %v3183_v43 }
 0xbc9   :  { %6843 = vmatmul.mubr.msk.bf16.gmra.mrb[100].mxu0 %vm58_vm0, %v8376_v42  ;;  %6855 = vmatmul.mubr.msk.bf16.gmra.mrb[108].mxu1 %vm58_vm0, %v8376_v42 }
 0xbca   :  { %6862 = vmatprep.mubr.msk.bf16.mxu0 %vm58_vm0, %v8341_v13  ;;  %6872 = vmatprep.mubr.msk.bf16.mxu1 %vm7405_vm1, %v7404_v15 }
 0xbd1   :  { %6863 = vmatmul.mubr.msk.bf16.vlgmr.msra.gmra.mrb[104].mxu0 %vm58_vm0, %v8347_v14 }
 0xbd2   :  { %6866 = vmatprep.mubr.msk.bf16.mxu0 %vm58_vm0, %v8370_v45 }
 0xbd9   :  { %6867 = vmatmul.mubr.msk.bf16.gmra.mrb[108].mxu0 %vm58_vm0, %v8376_v42 }
 0xbda   :  { %6884 = vmatprep.mubr.msk.bf16.mxu0 %vm7405_vm1, %v7404_v15 }
 0xc8c   :  { %v6840_v53 = vpop.f32.mrb[96].mxu0  ;;  %v6852_v60 = vpop.f32.mrb[104].mxu1 }
 0xc8d   :  { %v3474_v63 = vpack.c.bf16 %v6852_v60, %v6852_v60  ;;  %v3279_v10 = vpop.f32.mrb[97].mxu0  ;;  %v3356_v11 = vpop.f32.mrb[105].mxu1  ;;  %v3466_v49 = vpack.c.bf16 %v6840_v53, %v6840_v53 }
 0xc8e   :  { %v3472_v48 = vpack.c.bf16 %v3356_v11, %v3356_v11  ;;  %v6841_v41 = vpop.f32.mrb[98].mxu0  ;;  %v6853_v46 = vpop.f32.mrb[106].mxu1  ;;  %v3464_v50 = vpack.c.bf16 %v3279_v10, %v3279_v10 }
 0xc8f   :  { %v3576_v52 = vsel %vm499_vm2, %v3474_v63, 0  ;;  %v3282_v44 = vpop.f32.mrb[99].mxu0  ;;  %v3359_v58 = vpop.f32.mrb[107].mxu1  ;;  %v3475_v36 = vpack.c.bf16 %v6853_v46, %v6853_v46  ;;  %v3467_v26 = vpack.c.bf16 %v6841_v41, %v6841_v41 }
 0xc90   :  { %v3484_v56 = vsel %vm499_vm2, %v3472_v48, 0  ;;  %6883 = vmatpush3.bf16.xpose.msra.mxu0 %v3576_v52  ;;  %v3473_v3 = vpack.c.bf16 %v3359_v58, %v3359_v58  ;;  %v3465_v23 = vpack.c.bf16 %v3282_v44, %v3282_v44 }
 0xc91   :  { %6871 = vmatpush3.bf16.xpose.msra.mxu1 %v3484_v56  ;;  %6894 = vmatprep.subr.bf16.mxu0 %v7404_v15  ;;  %v3622_v47 = vsel %vm499_vm2, %v3475_v36, 0 }
 0xc92   :  { %6876 = vmatprep.subr.bf16.mxu1 %v7404_v15  ;;  %v3530_v16 = vsel %vm499_vm2, %v3473_v3, 0 }
 0xc97   :  { %6885 = vmatmul.mubr.msk.bf16.vlgmr.msra.gmra.mrb[112].mxu0 %vm499_vm2, %v3466_v49 }
 0xc98   :  { %6873 = vmatmul.mubr.msk.bf16.vlgmr.msra.gmra.mrb[112].mxu1 %vm499_vm2, %v3464_v50  ;;  %6896 = vmatprep.mubr.msk.bf16.mxu0 %vm7405_vm1, %v7404_v15 }
 0xc99   :  { %6877 = vmatpush3.bf16.xpose.msra.mxu1 %v3530_v16  ;;  %6878 = vmatprep.mubr.msk.bf16.mxu1 %vm7405_vm1, %v7404_v15 }
 0xc9a   :  { %6888 = vmatprep.subr.bf16.mxu1 %v7404_v15 }
 0xc9c   :  { %v6844_v7 = vpop.f32.mrb[100].mxu0  ;;  %v6856_v8 = vpop.f32.mrb[108].mxu1 }
 0xc9d   :  { %v3295_v54 = vpop.f32.mrb[101].mxu0  ;;  %v3372_v21 = vpop.f32.mrb[109].mxu1  ;;  %v3478_v51 = vpack.c.bf16 %v6856_v8, %v6856_v8  ;;  %v3470_v30 = vpack.c.bf16 %v6844_v7, %v6844_v7 }
 0xc9e   :  { %v3476_v24 = vpack.c.bf16 %v3372_v21, %v3372_v21  ;;  %v6845_v61 = vpop.f32.mrb[102].mxu0  ;;  %v6857_v59 = vpop.f32.mrb[110].mxu1  ;;  %v3468_v33 = vpack.c.bf16 %v3295_v54, %v3295_v54 }
 0xc9f   :  { %v3298_v9 = vpop.f32.mrb[103].mxu0  ;;  %v3375_v32 = vpop.f32.mrb[111].mxu1  ;;  %v3760_v35 = vsel %vm499_vm2, %v3478_v51, 0  ;;  %v3479_v38 = vpack.c.bf16 %v6857_v59, %v6857_v59  ;;  %v3471_v2 = vpack.c.bf16 %v6845_v61, %v6845_v61 }
 0xca0   :  { %v3668_v31 = vsel %vm499_vm2, %v3476_v24, 0  ;;  %6879 = vmatmul.mubr.msk.bf16.vlgmr.msra.gmra.mrb[116].mxu1 %vm499_vm2, %v3465_v23  ;;  %v3477_v34 = vpack.c.bf16 %v3375_v32, %v3375_v32  ;;  %v3469_v28 = vpack.c.bf16 %v3298_v9, %v3298_v9 }
 0xca1   :  { %6889 = vmatpush3.bf16.xpose.msra.mxu1 %v3622_v47  ;;  %6895 = vmatpush3.bf16.xpose.msra.mxu0 %v3668_v31  ;;  %v3806_v57 = vsel %vm499_vm2, %v3479_v38, 0 }
 0xca2   :  { %6890 = vmatprep.mubr.msk.bf16.mxu1 %vm7405_vm1, %v7404_v15  ;;  %6900 = vmatprep.subr.bf16.mxu1 %v7404_v15  ;;  %v3714_v0 = vsel %vm499_vm2, %v3477_v34, 0 }
 0xca3   :  { %6906 = vmatprep.subr.bf16.mxu0 %v7404_v15 }
 0xca4   :  { %v8413_v4 = vpop.f32.mrb[104].mxu0 }
 0xca5   :  { %v3433_v1 = vpop.f32.mrb[105].mxu0 }
 0xca6   :  { %v8415_v19 = vpop.f32.mrb[106].mxu0  ;;  %v3952_v20 = vpack.c.bf16 %v3433_v1, %v3433_v1 }
 0xca7   :  { %v3436_v29 = vpop.f32.mrb[107].mxu0 }
 0xca8   :  { %6891 = vmatmul.mubr.msk.bf16.vlgmr.msra.gmra.mrb[120].mxu1 %vm499_vm2, %v3467_v26  ;;  %6897 = vmatmul.mubr.msk.bf16.vlgmr.msra.gmra.mrb[116].mxu0 %vm499_vm2, %v3468_v33  ;;  %v3964_v27 = vsel %vm984_vm3, %v3952_v20, 0  ;;  %v3953_v43 = vpack.c.bf16 %v3436_v29, %v3436_v29 }
 0xca9   :  { %6901 = vmatpush3.bf16.xpose.msra.mxu1 %v3714_v0  ;;  %6907 = vmatpush3.bf16.xpose.msra.mxu0 %v3760_v35 }
 0xcaa   :  { %6902 = vmatprep.mubr.msk.bf16.mxu1 %vm7405_vm1, %v7404_v15  ;;  %6908 = vmatprep.mubr.msk.bf16.mxu0 %vm7405_vm1, %v7404_v15  ;;  %v4010_v53 = vsel %vm984_vm3, %v3953_v43, 0 }
 0xcab   :  { %6912 = vmatprep.subr.bf16.mxu1 %v7404_v15  ;;  %6918 = vmatprep.subr.bf16.mxu0 %v7404_v15 }
 0xcac   :  { %v8427_v39 = vpop.f32.mrb[108].mxu0 }
 0xcad   :  { %v8429_v55 = vpop.f32.mrb[109].mxu0 }
 0xcae   :  { %v8431_v25 = vpop.f32.mrb[110].mxu0 }
 0xcaf   :  { %v8433_v22 = vpop.f32.mrb[111].mxu0 }
 0xcb0   :  { %6903 = vmatmul.mubr.msk.bf16.vlgmr.msra.gmra.mrb[124].mxu1 %vm499_vm2, %v3469_v28  ;;  %6909 = vmatmul.mubr.msk.bf16.vlgmr.msra.gmra.mrb[120].mxu0 %vm499_vm2, %v3470_v30 }
 0xcb1   :  { %6913 = vmatpush3.bf16.xpose.msra.mxu1 %v3806_v57  ;;  %6919 = vmatpush3.bf16.msra.mxu0 %v3964_v27 }
 0xcb2   :  { %6914 = vmatprep.mubr.msk.bf16.mxu1 %vm7405_vm1, %v7404_v15  ;;  %6924 = vmatprep.subr.bf16.mxu1 %v7404_v15 }
 0xcb3   :  { %6920 = vmatprep.mubr.msk.bf16.mxu0 %vm7405_vm1, %v7404_v15  ;;  %6930 = vmatprep.subr.bf16.mxu0 %v7404_v15 }
 0xcb8   :  { %6915 = vmatmul.mubr.msk.bf16.vlgmr.msra.gmra.mrb[128].mxu1 %vm499_vm2, %v3471_v2 }
 0xcb9   :  { %6925 = vmatpush3.bf16.msra.mxu1 %v4010_v53  ;;  %6926 = vmatprep.mubr.msk.bf16.mxu1 %vm7405_vm1, %v7404_v15 }
 0xcba   :  { %6936 = vmatprep.subr.bf16.mxu1 %v7404_v15 }
 0xd6a   :  { %v3612_v60 = vpop.f32.mrb[112].mxu0 }
 0xd6b   :  { %v3520_v63 = vpop.f32.mrb[112].mxu1  ;;  %v6886_v10 = vpop.f32.mrb[113].mxu0  ;;  %v3850_v44 = vmul.f32 0.25, %v3612_v60 }
 0xd6c   :  { %v3848_v11 = vmul.f32 0.25, %v3520_v63  ;;  %v6874_v48 = vpop.f32.mrb[113].mxu1  ;;  %v3615_v41 = vpop.f32.mrb[114].mxu0 }
 0xd6d   :  { %v3523_v46 = vpop.f32.mrb[114].mxu1  ;;  %v6887_v52 = vpop.f32.mrb[115].mxu0  ;;  %v3862_v3 = vsel %vm876_vm4, %v3850_v44, -inf }
 0xd6e   :  { %v6875_v58 = vpop.f32.mrb[115].mxu1  ;;  %v3856_v56 = vsel %vm876_vm4, %v3848_v11, -inf }
 0xd6f   :  { %3857 = vmax.xlane.f32.xlu1 %v3856_v56 }
 0xd73   :  { %v3566_v49 = vpop.f32.mrb[116].mxu1  ;;  %3863 = vmax.xlane.f32.xlu1 %v3862_v3 }
 0xd74   :  { %v3849_v50 = vmul.f32 0.25, %v3566_v49  ;;  %v6880_v16 = vpop.f32.mrb[117].mxu1 }
 0xd75   :  { %v3569_v36 = vpop.f32.mrb[118].mxu1 }
 0xd76   :  { %v6881_v7 = vpop.f32.mrb[119].mxu1  ;;  %v3859_v8 = vsel %vm876_vm4, %v3849_v50, -inf }
 0xd77   :  { %3860 = vmax.xlane.f32.xlu0 %v3859_v8 }
 0xd7b   :  { %v3658_v54 = vpop.f32.mrb[120].mxu1  ;;  %v3704_v21 = vpop.f32.mrb[116].mxu0 }
 0xd7c   :  { %v3851_v23 = vmul.f32 0.25, %v3658_v54  ;;  %v3852_v24 = vmul.f32 0.25, %v3704_v21  ;;  %v6892_v61 = vpop.f32.mrb[121].mxu1  ;;  %v6898_v59 = vpop.f32.mrb[117].mxu0 }
 0xd7d   :  { %v3661_v9 = vpop.f32.mrb[122].mxu1  ;;  %v3707_v32 = vpop.f32.mrb[118].mxu0 }
 0xd7e   :  { %v6893_v47 = vpop.f32.mrb[123].mxu1  ;;  %v6899_v31 = vpop.f32.mrb[119].mxu0  ;;  %v3865_v51 = vsel %vm876_vm4, %v3851_v23, -inf  ;;  %v3868_v34 = vsel %vm876_vm4, %v3852_v24, -inf }
 0xd7f   :  { %3866 = vmax.xlane.f32.xlu0 %v3865_v51  ;;  %3869 = vmax.xlane.f32.xlu1 %v3868_v34 }
 0xd83   :  { %v3750_v1 = vpop.f32.mrb[124].mxu1  ;;  %v3796_v26 = vpop.f32.mrb[120].mxu0 }
 0xd84   :  { %v3853_v33 = vmul.f32 0.25, %v3750_v1  ;;  %v3854_v29 = vmul.f32 0.25, %v3796_v26  ;;  %v6904_v35 = vpop.f32.mrb[125].mxu1  ;;  %v6910_v0 = vpop.f32.mrb[121].mxu0 }
 0xd85   :  { %v3753_v38 = vpop.f32.mrb[126].mxu1  ;;  %v3799_v20 = vpop.f32.mrb[122].mxu0 }
 0xd86   :  { %v6905_v30 = vpop.f32.mrb[127].mxu1  ;;  %v6911_v28 = vpop.f32.mrb[123].mxu0  ;;  %v3871_v57 = vsel %vm876_vm4, %v3853_v33, -inf  ;;  %v3874_v27 = vsel %vm876_vm4, %v3854_v29, -inf }
 0xd87   :  { %3872 = vmax.xlane.f32.xlu0 %v3871_v57  ;;  %3875 = vmax.xlane.f32.xlu1 %v3874_v27 }
 0xd8b   :  { %v3842_v43 = vpop.f32.mrb[128].mxu1 }
 0xd8c   :  { %v3855_v2 = vmul.f32 0.25, %v3842_v43  ;;  %v6916_v53 = vpop.f32.mrb[129].mxu1 }
 0xd8d   :  { %v3845_v60 = vpop.f32.mrb[130].mxu1 }
 0xd8e   :  { %v6917_v63 = vpop.f32.mrb[131].mxu1  ;;  %v3877_v10 = vsel %vm876_vm4, %v3855_v2, -inf }
 0xd8f   :  { %3878 = vmax.xlane.f32.xlu0 %v3877_v10  ;;  %v3954_v10 = vpack.c.bf16 %v8413_v4, %v8413_v4  ;;  %v3955_v4 = vpack.c.bf16 %v8415_v19, %v8415_v19 }
 0xdfc   :  { %v3858_v48 = vpop.xlane.xlu1 %3857 }
 0xdfd   :  { %v3880_v41 = vsub.f32 %v3848_v11, %v3858_v48 }
 0xdff   :  { %v3888_v46 = vmul.f32 1.442695, %v3880_v41 }
 0xe00   :  { %v3864_v52 = vpop.xlane.xlu1 %3863 }
 0xe01   :  { %7316 = vpow2.f32 %v3888_v46  ;;  %v3882_v58 = vsub.f32 %v3850_v44, %v3864_v52  ;;  %v4056_v52 = vsel %vm984_vm3, %v3954_v10, 0 }
 0xe03   :  { %v3892_v56 = vmul.f32 1.442695, %v3882_v58 }
 0xe04   :  { %v3861_v3 = vpop.xlane.xlu0 %3860 }
 0xe05   :  { %7318 = vpow2.f32 %v3892_v56  ;;  %v3881_v49 = vsub.f32 %v3849_v50, %v3861_v3 }
 0xe07   :  { %v3890_v16 = vmul.f32 1.442695, %v3881_v49 }
 0xe09   :  { %7320 = vpow2.f32 %v3890_v16  ;;  %v3956_v16 = vpack.c.bf16 %v8429_v55, %v8429_v55 }
 0xe0b   :  { %v7317_v36 = vpop.eup %7316 }
 0xe0c   :  { %v3867_v7 = vpop.xlane.xlu0 %3866  ;;  %v3870_v8 = vpop.xlane.xlu1 %3869  ;;  %v3904_v54 = vsel %vm876_vm4, %v7317_v36, 0.0 }
 0xe0d   :  { %v3883_v21 = vsub.f32 %v3851_v23, %v3867_v7  ;;  %v3884_v61 = vsub.f32 %v3852_v24, %v3870_v8  ;;  %3905 = vadd.xlane.f32.xlu1 %v3904_v54  ;;  %v4102_v54 = vsel %vm984_vm3, %v3955_v4, 0 }
 0xe0f   :  { %v7319_v59 = vpop.eup %7318  ;;  %v3894_v11 = vmul.f32 1.442695, %v3883_v21  ;;  %v3896_v9 = vmul.f32 1.442695, %v3884_v61  ;;  %v4148_v21 = vsel %vm984_vm3, %v3956_v16, 0 }
 0xe10   :  { %v3910_v32 = vsel %vm876_vm4, %v7319_v59, 0.0 }
 0xe11   :  { %7322 = vpow2.f32 %v3894_v11  ;;  %3911 = vadd.xlane.f32.xlu1 %v3910_v32  ;;  %v3957_v11 = vpack.c.bf16 %v8433_v22, %v8433_v22  ;;  %v3958_v32 = vpack.c.bf16 %v8427_v39, %v8427_v39 }
 0xe12   :  { %7324 = vpow2.f32 %v3896_v9 }
 0xe13   :  { %v7321_v44 = vpop.eup %7320  ;;  %v4240_v22 = vsel %vm984_vm3, %v3958_v32, 0 }
 0xe14   :  { %v3873_v50 = vpop.xlane.xlu0 %3872  ;;  %v3876_v47 = vpop.xlane.xlu1 %3875  ;;  %v3907_v31 = vsel %vm876_vm4, %v7321_v44, 0.0 }
 0xe15   :  { %v3885_v51 = vsub.f32 %v3853_v33, %v3873_v50  ;;  %v3886_v34 = vsub.f32 %v3854_v29, %v3876_v47  ;;  %3908 = vadd.xlane.f32.xlu0 %v3907_v31  ;;  %v4194_v31 = vsel %vm984_vm3, %v3957_v11, 0 }
 0xe17   :  { %v3898_v1 = vmul.f32 1.442695, %v3885_v51  ;;  %v3900_v23 = vmul.f32 1.442695, %v3886_v34  ;;  %v7190_v34 = vld [vmem:[%s8945_s3 + $0x30] sm:$0xff]  }
 0xe19   :  { %7326 = vpow2.f32 %v3898_v1 }
 0xe1a   :  { %7328 = vpow2.f32 %v3900_v23  ;;  %v3959_v23 = vpack.c.bf16 %v8431_v25, %v8431_v25 }
 0xe1b   :  { %v8461_v24 = vpop.eup %7322 }
 0xe1c   :  { %v8463_v26 = vpop.eup %7324  ;;  %v3879_v35 = vpop.xlane.xlu0 %3878  ;;  %v3913_v0 = vsel %vm876_vm4, %v8461_v24, 0.0 }
 0xe1d   :  { %v3887_v38 = vsub.f32 %v3855_v2, %v3879_v35  ;;  %3914 = vadd.xlane.f32.xlu0 %v3913_v0  ;;  %v3916_v20 = vsel %vm876_vm4, %v8463_v26, 0.0 }
 0xe1e   :  { %3917 = vadd.xlane.f32.xlu1 %v3916_v20  ;;  %v4286_v20 = vsel %vm984_vm3, %v3959_v23, 0 }
 0xe1f   :  { %v3902_v33 = vmul.f32 1.442695, %v3887_v38  ;;  %v7191_v38 = vld [vmem:[%s8945_s3 + $0x38] sm:$0xff]  }
 0xe21   :  { %7330 = vpow2.f32 %v3902_v33  ;;  %v7192_v33 = vld [vmem:[%s8946_s4 + $0x30] sm:$0xff]  }
 0xe23   :  { %v8469_v29 = vpop.eup %7326 }
 0xe24   :  { %v8471_v30 = vpop.eup %7328  ;;  %v3919_v28 = vsel %vm876_vm4, %v8469_v29, 0.0 }
 0xe25   :  { %3920 = vadd.xlane.f32.xlu0 %v3919_v28  ;;  %v3922_v57 = vsel %vm876_vm4, %v8471_v30, 0.0 }
 0xe26   :  { %3923 = vadd.xlane.f32.xlu1 %v3922_v57  ;;  %v7193_v57 = vld [vmem:[%s8946_s4 + $0x38] sm:$0xff]  }
 0xe2b   :  { %v8477_v27 = vpop.eup %7330 }
 0xe2c   :  { %v3925_v43 = vsel %vm876_vm4, %v8477_v27, 0.0 }
 0xe2d   :  { %3926 = vadd.xlane.f32.xlu0 %v3925_v43  ;;  %v7195_v43 = vld [vmem:[%s8947_s5 + $0x38] sm:$0xff]  }
 0xe9a   :  { %v3906_v2 = vpop.xlane.xlu1 %3905 }
 0xe9b   :  { %7332 = vrcp.f32 %v3906_v2 }
 0xe9e   :  { %v3912_v53 = vpop.xlane.xlu1 %3911 }
 0xe9f   :  { %7334 = vrcp.f32 %v3912_v53 }
 0xea2   :  { %v3909_v60 = vpop.xlane.xlu0 %3908 }
 0xea3   :  { %7336 = vrcp.f32 %v3909_v60 }
 0xea5   :  { %v7333_v63 = vpop.eup %7332 }
 0xea6   :  { %v3936_v48 = vmul.f32 %v7333_v63, %v7317_v36 }
 0xea8   :  { %v3944_v41 = vpack.c.bf16 %v3936_v48, %v3936_v48 }
 0xea9   :  { %v7335_v46 = vpop.eup %7334 }
 0xeaa   :  { %v3915_v58 = vpop.xlane.xlu0 %3914  ;;  %6921 = vmatmul.mubr.msk.bf16.vlgmr.msra.gmra.mrb[124].mxu0 %vm876_vm4, %v3944_v41  ;;  %v3938_v3 = vmul.f32 %v7335_v46, %v7319_v59 }
 0xeab   :  { %7338 = vrcp.f32 %v3915_v58  ;;  %6931 = vmatpush3.bf16.msra.mxu0 %v4056_v52  ;;  %v3918_v56 = vpop.xlane.xlu1 %3917  ;;  %6932 = vmatprep.mubr.msk.bf16.mxu0 %vm7405_vm1, %v7404_v15 }
 0xeac   :  { %7340 = vrcp.f32 %v3918_v56  ;;  %6942 = vmatprep.subr.bf16.mxu0 %v7404_v15  ;;  %v3946_v8 = vpack.c.bf16 %v3938_v3, %v3938_v3 }
 0xead   :  { %v7337_v49 = vpop.eup %7336 }
 0xeae   :  { %v3937_v36 = vmul.f32 %v7337_v49, %v7321_v44 }
 0xeb0   :  { %v3945_v7 = vpack.c.bf16 %v3937_v36, %v3937_v36 }
 0xeb2   :  { %v3921_v61 = vpop.xlane.xlu0 %3920  ;;  %6927 = vmatmul.mubr.msk.bf16.vlgmr.msra.gmra.mrb[132].mxu1 %vm876_vm4, %v3945_v7  ;;  %6933 = vmatmul.mubr.msk.bf16.vlgmr.msra.gmra.mrb[128].mxu0 %vm876_vm4, %v3946_v8 }
 0xeb3   :  { %7342 = vrcp.f32 %v3921_v61  ;;  %6937 = vmatpush3.bf16.msra.mxu1 %v4102_v54  ;;  %6943 = vmatpush3.bf16.msra.mxu0 %v4148_v21  ;;  %v3924_v59 = vpop.xlane.xlu1 %3923 }
 0xeb4   :  { %7344 = vrcp.f32 %v3924_v59  ;;  %6938 = vmatprep.mubr.msk.bf16.mxu1 %vm7405_vm1, %v7404_v15  ;;  %6944 = vmatprep.mubr.msk.bf16.mxu0 %vm7405_vm1, %v7404_v15 }
 0xeb5   :  { %v7339_v19 = vpop.eup %7338  ;;  %6948 = vmatprep.subr.bf16.mxu1 %v7404_v15  ;;  %6954 = vmatprep.subr.bf16.mxu0 %v7404_v15 }
 0xeb6   :  { %v7341_v55 = vpop.eup %7340  ;;  %v3939_v9 = vmul.f32 %v7339_v19, %v8461_v24 }
 0xeb7   :  { %v3940_v44 = vmul.f32 %v7341_v55, %v8463_v26 }
 0xeb8   :  { %v3947_v50 = vpack.c.bf16 %v3939_v9, %v3939_v9 }
 0xeb9   :  { %v3948_v47 = vpack.c.bf16 %v3940_v44, %v3940_v44 }
 0xeba   :  { %v3927_v51 = vpop.xlane.xlu0 %3926  ;;  %6939 = vmatmul.mubr.msk.bf16.vlgmr.msra.gmra.mrb[136].mxu1 %vm876_vm4, %v3947_v50 }
 0xebb   :  { %7346 = vrcp.f32 %v3927_v51  ;;  %6945 = vmatmul.mubr.msk.bf16.vlgmr.msra.gmra.mrb[132].mxu0 %vm876_vm4, %v3948_v47  ;;  %6949 = vmatpush3.bf16.msra.mxu1 %v4194_v31 }
 0xebc   :  { %6955 = vmatpush3.bf16.msra.mxu0 %v4240_v22  ;;  %6950 = vmatprep.mubr.msk.bf16.mxu1 %vm7405_vm1, %v7404_v15 }
 0xebd   :  { %v7343_v39 = vpop.eup %7342  ;;  %6956 = vmatprep.mubr.msk.bf16.mxu0 %vm7405_vm1, %v7404_v15  ;;  %6960 = vmatprep.subr.bf16.mxu1 %v7404_v15 }
 0xebe   :  { %v7345_v1 = vpop.eup %7344  ;;  %v3941_v24 = vmul.f32 %v7343_v39, %v8469_v29  ;;  %6966 = vmatprep.subr.bf16.mxu0 %v7190_v34  ;;  %v7194_v29 = vld [vmem:[%s8947_s5 + $0x30] sm:$0xff]  }
 0xebf   :  { %v3942_v26 = vmul.f32 %v7345_v1, %v8471_v30 }
 0xec0   :  { %v3949_v35 = vpack.c.bf16 %v3941_v24, %v3941_v24 }
 0xec1   :  { %v3950_v0 = vpack.c.bf16 %v3942_v26, %v3942_v26 }
 0xec2   :  { %6951 = vmatmul.mubr.msk.bf16.vlgmr.msra.gmra.mrb[140].mxu1 %vm876_vm4, %v3949_v35 }
 0xec3   :  { %6957 = vmatmul.mubr.msk.bf16.vlgmr.msra.gmra.mrb[136].mxu0 %vm876_vm4, %v3950_v0  ;;  %6961 = vmatpush3.bf16.msra.mxu1 %v4286_v20 }
 0xec4   :  { %6967 = vmatpush3.bf16.msra.mxu0 %v7190_v34  ;;  %6970 = vmatprep.mubr.msk.bf16.mxu0 %vm58_vm0, %v8341_v13 }
 0xec5   :  { %v7347_v25 = vpop.eup %7346  ;;  %6968 = vmatprep.subr.bf16.mxu0 %v7191_v38  ;;  %6962 = vmatprep.mubr.msk.bf16.mxu1 %vm7405_vm1, %v7404_v15 }
 0xec6   :  { %v3943_v30 = vmul.f32 %v7347_v25, %v8477_v27  ;;  %6978 = vmatprep.subr.bf16.mxu1 %v7192_v33 }
 0xec8   :  { %6969 = vmatpush3.bf16.msra.mxu0 %v7191_v38  ;;  %v3951_v28 = vpack.c.bf16 %v3943_v30, %v3943_v30 }
 0xec9   :  { %6990 = vmatprep.subr.bf16.mxu0 %v7194_v29 }
 0xeca   :  { %6963 = vmatmul.mubr.msk.bf16.vlgmr.msra.gmra.mrb[144].mxu1 %vm876_vm4, %v3951_v28 }
 0xecb   :  { %6971 = vmatmul.mubr.msk.bf16.vlgmr.msra.gmra.mrb[140].mxu0 %vm58_vm0, %v8347_v14  ;;  %6979 = vmatpush3.bf16.msra.mxu1 %v7192_v33 }
 0xecc   :  { %6974 = vmatprep.mubr.msk.bf16.mxu0 %vm58_vm0, %v8370_v45  ;;  %6982 = vmatprep.mubr.msk.bf16.mxu1 %vm58_vm0, %v8341_v13 }
 0xecd   :  { %6980 = vmatprep.subr.bf16.mxu1 %v7193_v57  ;;  %6991 = vmatpush3.bf16.msra.mxu0 %v7194_v29 }
 0xece   :  { %6992 = vmatprep.subr.bf16.mxu0 %v7195_v43 }
 0xecf   :  { %6981 = vmatpush3.bf16.msra.mxu1 %v7193_v57 }
 0xed0   :  { %7002 = vmatprep.subr.bf16.mxu1 %v7404_v15 }
 0xed1   :  { %6993 = vmatpush3.bf16.msra.mxu0 %v7195_v43 }
 0xed2   :  { %6983 = vmatmul.mubr.msk.bf16.vlgmr.msra.gmra.mrb[148].mxu1 %vm58_vm0, %v8347_v14  ;;  %7014 = vmatprep.subr.bf16.mxu0 %v7404_v15 }
 0xed3   :  { %6975 = vmatmul.mubr.msk.bf16.gmra.mrb[144].mxu0 %vm58_vm0, %v8376_v42  ;;  %6986 = vmatprep.mubr.msk.bf16.mxu1 %vm58_vm0, %v8370_v45 }
 0xed4   :  { %6994 = vmatprep.mubr.msk.bf16.mxu0 %vm58_vm0, %v8341_v13 }
 0xeda   :  { %6987 = vmatmul.mubr.msk.bf16.gmra.mrb[152].mxu1 %vm58_vm0, %v8376_v42 }
 0xedb   :  { %6995 = vmatmul.mubr.msk.bf16.vlgmr.msra.gmra.mrb[148].mxu0 %vm58_vm0, %v8347_v14  ;;  %7004 = vmatprep.mubr.msk.bf16.mxu1 %vm7405_vm1, %v7404_v15 }
 0xedc   :  { %6998 = vmatprep.mubr.msk.bf16.mxu0 %vm58_vm0, %v8370_v45 }
 0xee3   :  { %6999 = vmatmul.mubr.msk.bf16.gmra.mrb[152].mxu0 %vm58_vm0, %v8376_v42 }
 0xee4   :  { %7016 = vmatprep.mubr.msk.bf16.mxu0 %vm7405_vm1, %v7404_v15 }
 0xf7d   :  { %v8576_v27 = vpop.f32.mrb[124].mxu0 }
 0xf7e   :  { %v6922_v13 = vpop.f32.mrb[125].mxu0 }
 0xf7f   :  { %v4003_v2 = vpop.f32.mrb[126].mxu0 }
 0xf80   :  { %v6923_v53 = vpop.f32.mrb[127].mxu0 }
 0xf85   :  { %v8578_v60 = vpop.f32.mrb[132].mxu1  ;;  %v8580_v14 = vpop.f32.mrb[128].mxu0 }
 0xf86   :  { %v4328_v63 = vpack.c.bf16 %v8578_v60, %v8576_v27  ;;  %v6928_v10 = vpop.f32.mrb[133].mxu1  ;;  %v6934_v45 = vpop.f32.mrb[129].mxu0  ;;  %v6239_v27 = vld [vmem:[%s8951_s7 + $0x1] ss:$0 sm:$0xff] }
 0xf87   :  { %v4049_v48 = vpop.f32.mrb[134].mxu1  ;;  %v4095_v41 = vpop.f32.mrb[130].mxu0 }
 0xf88   :  { %v6929_v42 = vpop.f32.mrb[135].mxu1  ;;  %v6935_v46 = vpop.f32.mrb[131].mxu0 }
 0xf8d   :  { %v8584_v52 = vpop.f32.mrb[136].mxu1 }
 0xf8e   :  { %v4329_v58 = vpack.c.bf16 %v8584_v52, %v8580_v14  ;;  %v8588_v56 = vpop.f32.mrb[132].mxu0  ;;  %v6940_v3 = vpop.f32.mrb[137].mxu1 }
 0xf8f   :  { %v6946_v49 = vpop.f32.mrb[133].mxu0  ;;  %v4141_v4 = vpop.f32.mrb[138].mxu1 }
 0xf90   :  { %v4187_v16 = vpop.f32.mrb[134].mxu0  ;;  %v6941_v36 = vpop.f32.mrb[139].mxu1 }
 0xf91   :  { %v6947_v7 = vpop.f32.mrb[135].mxu0 }
 0xf95   :  { %v8590_v8 = vpop.f32.mrb[140].mxu1 }
 0xf96   :  { %v4330_v54 = vpack.c.bf16 %v8590_v8, %v8588_v56  ;;  %v8594_v21 = vpop.f32.mrb[136].mxu0  ;;  %v6952_v61 = vpop.f32.mrb[141].mxu1 }
 0xf97   :  { %v6958_v59 = vpop.f32.mrb[137].mxu0  ;;  %v4233_v19 = vpop.f32.mrb[142].mxu1 }
 0xf98   :  { %v4279_v55 = vpop.f32.mrb[138].mxu0  ;;  %v6953_v11 = vpop.f32.mrb[143].mxu1 }
 0xf99   :  { %v6959_v9 = vpop.f32.mrb[139].mxu0 }
 0xf9d   :  { %v8596_v32 = vpop.f32.mrb[144].mxu1 }
 0xf9e   :  { %v4331_v44 = vpack.c.bf16 %v8596_v32, %v8594_v21  ;;  %v6972_v50 = vpop.f32.mrb[140].mxu0  ;;  %v6964_v47 = vpop.f32.mrb[145].mxu1 }
 0xf9f   :  { %v4378_v31 = vpop.f32.mrb[141].mxu0  ;;  %v4325_v51 = vpop.f32.mrb[146].mxu1  ;;  %v4565_v43 = vpack.c.bf16 %v6972_v50, %v6972_v50 }
 0xfa0   :  { %v8600_v34 = vpop.f32.mrb[142].mxu0  ;;  %v6965_v22 = vpop.f32.mrb[147].mxu1  ;;  %v4563_v53 = vpack.c.bf16 %v4378_v31, %v4378_v31 }
 0xfa1   :  { %v4381_v39 = vpop.f32.mrb[143].mxu0  ;;  %v4566_v31 = vpack.c.bf16 %v8600_v34, %v8600_v34 }
 0xfa2   :  { %v4564_v7 = vpack.c.bf16 %v4381_v39, %v4381_v39 }
 0xfa5   :  { %v6984_v1 = vpop.f32.mrb[148].mxu1 }
 0xfa6   :  { %v8602_v23 = vpop.f32.mrb[144].mxu0  ;;  %v4573_v24 = vpack.c.bf16 %v6984_v1, %v6984_v1  ;;  %v4455_v26 = vpop.f32.mrb[149].mxu1 }
 0xfa7   :  { %v4394_v35 = vpop.f32.mrb[145].mxu0  ;;  %v4571_v0 = vpack.c.bf16 %v4455_v26, %v4455_v26  ;;  %v6985_v38 = vpop.f32.mrb[150].mxu1  ;;  %v4569_v51 = vpack.c.bf16 %v8602_v23, %v8602_v23 }
 0xfa8   :  { %v4675_v20 = vsel %vm499_vm2, %v4573_v24, 0  ;;  %v8605_v33 = vpop.f32.mrb[146].mxu0  ;;  %v4458_v25 = vpop.f32.mrb[151].mxu1  ;;  %v4574_v4 = vpack.c.bf16 %v6985_v38, %v6985_v38  ;;  %v4567_v61 = vpack.c.bf16 %v4394_v35, %v4394_v35 }
 0xfa9   :  { %v4583_v29 = vsel %vm499_vm2, %v4571_v0, 0  ;;  %v8608_v30 = vpop.f32.mrb[147].mxu0  ;;  %7015 = vmatpush3.bf16.xpose.msra.mxu0 %v4675_v20  ;;  %v4572_v28 = vpack.c.bf16 %v4458_v25, %v4458_v25  ;;  %v4570_v26 = vpack.c.bf16 %v8605_v33, %v8605_v33 }
 0xfaa   :  { %7003 = vmatpush3.bf16.xpose.msra.mxu1 %v4583_v29  ;;  %7026 = vmatprep.subr.bf16.mxu0 %v7404_v15  ;;  %v4721_v55 = vsel %vm499_vm2, %v4574_v4, 0  ;;  %v4568_v1 = vpack.c.bf16 %v8608_v30, %v8608_v30 }
 0xfab   :  { %7008 = vmatprep.subr.bf16.mxu1 %v7404_v15  ;;  %v4629_v46 = vsel %vm499_vm2, %v4572_v28, 0 }
 0xfad   :  { %v6988_v57 = vpop.f32.mrb[152].mxu1 }
 0xfae   :  { %v8612_v13 = vpop.f32.mrb[148].mxu0  ;;  %v4471_v2 = vpop.f32.mrb[153].mxu1  ;;  %v4577_v16 = vpack.c.bf16 %v6988_v57, %v6988_v57 }
 0xfaf   :  { %v4575_v10 = vpack.c.bf16 %v4471_v2, %v4471_v2  ;;  %v4532_v45 = vpop.f32.mrb[149].mxu0  ;;  %v6989_v48 = vpop.f32.mrb[154].mxu1 }
 0xfb0   :  { %v8614_v41 = vpop.f32.mrb[150].mxu0  ;;  %v4474_v42 = vpop.f32.mrb[155].mxu1  ;;  %7017 = vmatmul.mubr.msk.bf16.vlgmr.msra.gmra.mrb[156].mxu0 %vm499_vm2, %v4565_v43  ;;  %v4859_v11 = vsel %vm499_vm2, %v4577_v16, 0  ;;  %v5051_v50 = vpack.c.bf16 %v4532_v45, %v4532_v45  ;;  %v4578_v34 = vpack.c.bf16 %v6989_v48, %v6989_v48 }
 0xfb1   :  { %v4767_v3 = vsel %vm499_vm2, %v4575_v10, 0  ;;  %v4535_v49 = vpop.f32.mrb[151].mxu0  ;;  %7005 = vmatmul.mubr.msk.bf16.vlgmr.msra.gmra.mrb[156].mxu1 %vm499_vm2, %v4563_v53  ;;  %7028 = vmatprep.mubr.msk.bf16.mxu0 %vm7405_vm1, %v7404_v15  ;;  %v4576_v47 = vpack.c.bf16 %v4474_v42, %v4474_v42 }
 0xfb2   :  { %7009 = vmatpush3.bf16.xpose.msra.mxu1 %v4629_v46  ;;  %7027 = vmatpush3.bf16.xpose.msra.mxu0 %v4767_v3  ;;  %v5063_v22 = vsel %vm984_vm3, %v5051_v50, 0  ;;  %v4905_v23 = vsel %vm499_vm2, %v4578_v34, 0  ;;  %v5052_v24 = vpack.c.bf16 %v4535_v49, %v4535_v49 }
 0xfb3   :  { %7010 = vmatprep.mubr.msk.bf16.mxu1 %vm7405_vm1, %v7404_v15  ;;  %7020 = vmatprep.subr.bf16.mxu1 %v7404_v15  ;;  %v4813_v39 = vsel %vm499_vm2, %v4576_v47, 0 }
 0xfb4   :  { %7038 = vmatprep.subr.bf16.mxu0 %v7404_v15  ;;  %v5109_v35 = vsel %vm984_vm3, %v5052_v24, 0 }
 0xfb6   :  { %v8626_v36 = vpop.f32.mrb[152].mxu0 }
 0xfb7   :  { %v8628_v59 = vpop.f32.mrb[153].mxu0 }
 0xfb8   :  { %v8630_v19 = vpop.f32.mrb[154].mxu0 }
 0xfb9   :  { %v8634_v9 = vpop.f32.mrb[155].mxu0  ;;  %7011 = vmatmul.mubr.msk.bf16.vlgmr.msra.gmra.mrb[160].mxu1 %vm499_vm2, %v4564_v7  ;;  %7029 = vmatmul.mubr.msk.bf16.vlgmr.msra.gmra.mrb[160].mxu0 %vm499_vm2, %v4567_v61 }
 0xfba   :  { %7021 = vmatpush3.bf16.xpose.msra.mxu1 %v4721_v55  ;;  %7039 = vmatpush3.bf16.xpose.msra.mxu0 %v4859_v11 }
 0xfbb   :  { %7022 = vmatprep.mubr.msk.bf16.mxu1 %vm7405_vm1, %v7404_v15  ;;  %7040 = vmatprep.mubr.msk.bf16.mxu0 %vm7405_vm1, %v7404_v15 }
 0xfbc   :  { %7032 = vmatprep.subr.bf16.mxu1 %v7404_v15  ;;  %7050 = vmatprep.subr.bf16.mxu0 %v7404_v15 }
 0xfc1   :  { %7023 = vmatmul.mubr.msk.bf16.vlgmr.msra.gmra.mrb[164].mxu1 %vm499_vm2, %v4566_v31  ;;  %7041 = vmatmul.mubr.msk.bf16.vlgmr.msra.gmra.mrb[164].mxu0 %vm499_vm2, %v4569_v51 }
 0xfc2   :  { %7033 = vmatpush3.bf16.xpose.msra.mxu1 %v4813_v39  ;;  %7051 = vmatpush3.bf16.msra.mxu0 %v5063_v22 }
 0xfc3   :  { %7034 = vmatprep.mubr.msk.bf16.mxu1 %vm7405_vm1, %v7404_v15  ;;  %7044 = vmatprep.subr.bf16.mxu1 %v7404_v15 }
 0xfc4   :  { %7052 = vmatprep.mubr.msk.bf16.mxu0 %vm7405_vm1, %v7404_v15  ;;  %7062 = vmatprep.subr.bf16.mxu0 %v7404_v15 }
 0xfc9   :  { %7035 = vmatmul.mubr.msk.bf16.vlgmr.msra.gmra.mrb[168].mxu1 %vm499_vm2, %v4568_v1 }
 0xfca   :  { %7045 = vmatpush3.bf16.xpose.msra.mxu1 %v4905_v23  ;;  %7046 = vmatprep.mubr.msk.bf16.mxu1 %vm7405_vm1, %v7404_v15 }
 0xfcb   :  { %7056 = vmatprep.subr.bf16.mxu1 %v7404_v15 }
 0xfd1   :  { %7047 = vmatmul.mubr.msk.bf16.vlgmr.msra.gmra.mrb[172].mxu1 %vm499_vm2, %v4570_v26 }
 0xfd2   :  { %7057 = vmatpush3.bf16.msra.mxu1 %v5109_v35  ;;  %7058 = vmatprep.mubr.msk.bf16.mxu1 %vm7405_vm1, %v7404_v15 }
 0xfd3   :  { %7068 = vmatprep.subr.bf16.mxu1 %v7404_v15 }
0x1083   :  { %v4711_v0 = vpop.f32.mrb[156].mxu0 }
0x1084   :  { %v4619_v38 = vpop.f32.mrb[156].mxu1  ;;  %v7018_v20 = vpop.f32.mrb[157].mxu0  ;;  %v4949_v43 = vmul.f32 0.25, %v4711_v0 }
0x1085   :  { %v4947_v25 = vmul.f32 0.25, %v4619_v38  ;;  %v7006_v29 = vpop.f32.mrb[157].mxu1  ;;  %v4714_v30 = vpop.f32.mrb[158].mxu0 }
0x1086   :  { %v4622_v28 = vpop.f32.mrb[158].mxu1  ;;  %v7019_v57 = vpop.f32.mrb[159].mxu0  ;;  %v4961_v53 = vsel %vm876_vm4, %v4949_v43, -inf }
0x1087   :  { %v7007_v33 = vpop.f32.mrb[159].mxu1  ;;  %v4955_v2 = vsel %vm876_vm4, %v4947_v25, -inf }
0x1088   :  { %4956 = vmax.xlane.f32.xlu0 %v4955_v2 }
0x108c   :  { %v4665_v10 = vpop.f32.mrb[160].mxu1  ;;  %4962 = vmax.xlane.f32.xlu0 %v4961_v53  ;;  %v4803_v45 = vpop.f32.mrb[160].mxu0 }
0x108d   :  { %v4948_v48 = vmul.f32 0.25, %v4665_v10  ;;  %v4951_v42 = vmul.f32 0.25, %v4803_v45  ;;  %v7012_v46 = vpop.f32.mrb[161].mxu1  ;;  %v7030_v3 = vpop.f32.mrb[161].mxu0 }
0x108e   :  { %v4668_v49 = vpop.f32.mrb[162].mxu1  ;;  %v4806_v4 = vpop.f32.mrb[162].mxu0 }
0x108f   :  { %v7013_v16 = vpop.f32.mrb[163].mxu1  ;;  %v7031_v7 = vpop.f32.mrb[163].mxu0  ;;  %v4958_v61 = vsel %vm876_vm4, %v4948_v48, -inf  ;;  %v4967_v55 = vsel %vm876_vm4, %v4951_v42, -inf }
0x1090   :  { %4959 = vmax.xlane.f32.xlu1 %v4958_v61  ;;  %4968 = vmax.xlane.f32.xlu0 %v4967_v55 }
0x1094   :  { %v4757_v11 = vpop.f32.mrb[164].mxu1  ;;  %v4895_v50 = vpop.f32.mrb[164].mxu0 }
0x1095   :  { %v4950_v47 = vmul.f32 0.25, %v4757_v11  ;;  %v4953_v31 = vmul.f32 0.25, %v4895_v50  ;;  %v7024_v51 = vpop.f32.mrb[165].mxu1  ;;  %v7042_v22 = vpop.f32.mrb[165].mxu0 }
0x1096   :  { %v4760_v39 = vpop.f32.mrb[166].mxu1  ;;  %v4898_v34 = vpop.f32.mrb[166].mxu0 }
0x1097   :  { %v7025_v1 = vpop.f32.mrb[167].mxu1  ;;  %v7043_v23 = vpop.f32.mrb[167].mxu0  ;;  %v4964_v24 = vsel %vm876_vm4, %v4950_v47, -inf  ;;  %v4973_v26 = vsel %vm876_vm4, %v4953_v31, -inf }
0x1098   :  { %4965 = vmax.xlane.f32.xlu1 %v4964_v24  ;;  %4974 = vmax.xlane.f32.xlu0 %v4973_v26 }
0x109c   :  { %v4849_v35 = vpop.f32.mrb[168].mxu1 }
0x109d   :  { %v4952_v0 = vmul.f32 0.25, %v4849_v35  ;;  %v7036_v38 = vpop.f32.mrb[169].mxu1 }
0x109e   :  { %v4852_v20 = vpop.f32.mrb[170].mxu1 }
0x109f   :  { %v7037_v29 = vpop.f32.mrb[171].mxu1  ;;  %v4970_v30 = vsel %vm876_vm4, %v4952_v0, -inf }
0x10a0   :  { %4971 = vmax.xlane.f32.xlu1 %v4970_v30 }
0x10a4   :  { %v4941_v28 = vpop.f32.mrb[172].mxu1 }
0x10a5   :  { %v4954_v57 = vmul.f32 0.25, %v4941_v28  ;;  %v7048_v33 = vpop.f32.mrb[173].mxu1 }
0x10a6   :  { %v4944_v2 = vpop.f32.mrb[174].mxu1 }
0x10a7   :  { %v7049_v53 = vpop.f32.mrb[175].mxu1  ;;  %v4976_v10 = vsel %vm876_vm4, %v4954_v57, -inf }
0x10a8   :  { %4977 = vmax.xlane.f32.xlu1 %v4976_v10 }
0x1115   :  { %v4957_v45 = vpop.xlane.xlu0 %4956 }
0x1116   :  { %v4979_v46 = vsub.f32 %v4947_v25, %v4957_v45 }
0x1118   :  { %v4987_v3 = vmul.f32 1.442695, %v4979_v46 }
0x1119   :  { %v4963_v49 = vpop.xlane.xlu0 %4962 }
0x111a   :  { %7348 = vpow2.f32 %v4987_v3  ;;  %v4981_v4 = vsub.f32 %v4949_v43, %v4963_v49 }
0x111c   :  { %v4991_v16 = vmul.f32 1.442695, %v4981_v4 }
0x111d   :  { %v4960_v7 = vpop.xlane.xlu1 %4959  ;;  %v4969_v61 = vpop.xlane.xlu0 %4968 }
0x111e   :  { %7350 = vpow2.f32 %v4991_v16  ;;  %v4980_v55 = vsub.f32 %v4948_v48, %v4960_v7  ;;  %v4983_v11 = vsub.f32 %v4951_v42, %v4969_v61 }
0x1120   :  { %v4989_v50 = vmul.f32 1.442695, %v4980_v55  ;;  %v4995_v51 = vmul.f32 1.442695, %v4983_v11  ;;  %v5053_v55 = vpack.c.bf16 %v8612_v13, %v8612_v13  ;;  %v5054_v13 = vpack.c.bf16 %v8614_v41, %v8614_v41 }
0x1122   :  { %7352 = vpow2.f32 %v4989_v50 }
0x1123   :  { %7354 = vpow2.f32 %v4995_v51 }
0x1124   :  { %v7349_v22 = vpop.eup %7348 }
0x1125   :  { %v4966_v39 = vpop.xlane.xlu1 %4965  ;;  %v4975_v34 = vpop.xlane.xlu0 %4974  ;;  %v5003_v1 = vsel %vm876_vm4, %v7349_v22, 0.0 }
0x1126   :  { %v4982_v25 = vsub.f32 %v4950_v47, %v4966_v39  ;;  %v4985_v23 = vsub.f32 %v4953_v31, %v4975_v34  ;;  %5004 = vadd.xlane.f32.xlu0 %v5003_v1  ;;  %v5155_v39 = vsel %vm984_vm3, %v5053_v55, 0 }
0x1128   :  { %v7351_v24 = vpop.eup %7350  ;;  %v4993_v43 = vmul.f32 1.442695, %v4982_v25  ;;  %v4999_v26 = vmul.f32 1.442695, %v4985_v23 }
0x1129   :  { %v5009_v35 = vsel %vm876_vm4, %v7351_v24, 0.0 }
0x112a   :  { %7356 = vpow2.f32 %v4993_v43  ;;  %5010 = vadd.xlane.f32.xlu0 %v5009_v35 }
0x112b   :  { %7358 = vpow2.f32 %v4999_v26 }
0x112c   :  { %v7353_v48 = vpop.eup %7352 }
0x112d   :  { %v8682_v42 = vpop.eup %7354  ;;  %v4972_v38 = vpop.xlane.xlu1 %4971  ;;  %v5006_v20 = vsel %vm876_vm4, %v7353_v48, 0.0 }
0x112e   :  { %v4984_v29 = vsub.f32 %v4952_v0, %v4972_v38  ;;  %5007 = vadd.xlane.f32.xlu1 %v5006_v20  ;;  %v5015_v47 = vsel %vm876_vm4, %v8682_v42, 0.0  ;;  %v5201_v20 = vsel %vm984_vm3, %v5054_v13, 0 }
0x112f   :  { %5016 = vadd.xlane.f32.xlu0 %v5015_v47  ;;  %v5056_v47 = vpack.c.bf16 %v8634_v9, %v8634_v9 }
0x1130   :  { %v4997_v31 = vmul.f32 1.442695, %v4984_v29 }
0x1132   :  { %7360 = vpow2.f32 %v4997_v31 }
0x1134   :  { %v7357_v30 = vpop.eup %7356 }
0x1135   :  { %v8687_v28 = vpop.eup %7358  ;;  %v4978_v33 = vpop.xlane.xlu1 %4977  ;;  %v5012_v2 = vsel %vm876_vm4, %v7357_v30, 0.0 }
0x1136   :  { %v4986_v53 = vsub.f32 %v4954_v57, %v4978_v33  ;;  %5013 = vadd.xlane.f32.xlu1 %v5012_v2  ;;  %v5021_v10 = vsel %vm876_vm4, %v8687_v28, 0.0 }
0x1137   :  { %5022 = vadd.xlane.f32.xlu0 %v5021_v10  ;;  %v5293_v10 = vsel %vm984_vm3, %v5056_v47, 0 }
0x1138   :  { %v5001_v0 = vmul.f32 1.442695, %v4986_v53 }
0x113a   :  { %7362 = vpow2.f32 %v5001_v0 }
0x113c   :  { %v8692_v45 = vpop.eup %7360 }
0x113d   :  { %v5018_v46 = vsel %vm876_vm4, %v8692_v45, 0.0 }
0x113e   :  { %5019 = vadd.xlane.f32.xlu1 %v5018_v46 }
0x1144   :  { %v8696_v3 = vpop.eup %7362 }
0x1145   :  { %v5024_v49 = vsel %vm876_vm4, %v8696_v3, 0.0 }
0x1146   :  { %5025 = vadd.xlane.f32.xlu1 %v5024_v49 }
0x11b3   :  { %v5005_v57 = vpop.xlane.xlu0 %5004 }
0x11b4   :  { %7364 = vrcp.f32 %v5005_v57 }
0x11b7   :  { %v5011_v4 = vpop.xlane.xlu0 %5010 }
0x11b8   :  { %7366 = vrcp.f32 %v5011_v4 }
0x11bb   :  { %v5008_v16 = vpop.xlane.xlu1 %5007 }
0x11bc   :  { %7368 = vrcp.f32 %v5008_v16  ;;  %v5017_v7 = vpop.xlane.xlu0 %5016 }
0x11bd   :  { %7370 = vrcp.f32 %v5017_v7 }
0x11be   :  { %v7365_v61 = vpop.eup %7364 }
0x11bf   :  { %v5035_v11 = vmul.f32 %v7365_v61, %v7349_v22  ;;  %v5055_v22 = vpack.c.bf16 %v8628_v59, %v8628_v59 }
0x11c1   :  { %v5043_v50 = vpack.c.bf16 %v5035_v11, %v5035_v11  ;;  %v5247_v29 = vsel %vm984_vm3, %v5055_v22, 0 }
0x11c2   :  { %v7367_v51 = vpop.eup %7366 }
0x11c3   :  { %v5014_v34 = vpop.xlane.xlu1 %5013  ;;  %7053 = vmatmul.mubr.msk.bf16.vlgmr.msra.gmra.mrb[168].mxu0 %vm876_vm4, %v5043_v50  ;;  %v5037_v1 = vmul.f32 %v7367_v51, %v7351_v24 }
0x11c4   :  { %7372 = vrcp.f32 %v5014_v34  ;;  %7063 = vmatpush3.bf16.msra.mxu0 %v5155_v39  ;;  %7064 = vmatprep.mubr.msk.bf16.mxu0 %vm7405_vm1, %v7404_v15  ;;  %v5023_v25 = vpop.xlane.xlu0 %5022 }
0x11c5   :  { %7074 = vmatprep.subr.bf16.mxu0 %v7404_v15  ;;  %7374 = vrcp.f32 %v5023_v25  ;;  %v5045_v35 = vpack.c.bf16 %v5037_v1, %v5037_v1 }
0x11c6   :  { %v7369_v23 = vpop.eup %7368 }
0x11c7   :  { %v5036_v43 = vmul.f32 %v7369_v23, %v7353_v48  ;;  %v7371_v38 = vpop.eup %7370  ;;  %v5057_v48 = vpack.c.bf16 %v8626_v36, %v8626_v36 }
0x11c8   :  { %v5039_v41 = vmul.f32 %v7371_v38, %v8682_v42 }
0x11c9   :  { %v5044_v26 = vpack.c.bf16 %v5036_v43, %v5036_v43  ;;  %v5339_v53 = vsel %vm984_vm3, %v5057_v48, 0 }
0x11ca   :  { %v5047_v42 = vpack.c.bf16 %v5039_v41, %v5039_v41 }
0x11cb   :  { %v5020_v24 = vpop.xlane.xlu1 %5019  ;;  %7059 = vmatmul.mubr.msk.bf16.vlgmr.msra.gmra.mrb[176].mxu1 %vm876_vm4, %v5044_v26  ;;  %7065 = vmatmul.mubr.msk.bf16.vlgmr.msra.gmra.mrb[172].mxu0 %vm876_vm4, %v5045_v35 }
0x11cc   :  { %7376 = vrcp.f32 %v5020_v24  ;;  %7069 = vmatpush3.bf16.msra.mxu1 %v5201_v20  ;;  %7075 = vmatpush3.bf16.msra.mxu0 %v5247_v29 }
0x11cd   :  { %7070 = vmatprep.mubr.msk.bf16.mxu1 %vm7405_vm1, %v7404_v15  ;;  %7076 = vmatprep.mubr.msk.bf16.mxu0 %vm7405_vm1, %v7404_v15 }
0x11ce   :  { %v7373_v59 = vpop.eup %7372  ;;  %7080 = vmatprep.subr.bf16.mxu1 %v7404_v15  ;;  %7086 = vmatprep.subr.bf16.mxu0 %v7404_v15 }
0x11cf   :  { %v5038_v31 = vmul.f32 %v7373_v59, %v7357_v30  ;;  %v7375_v2 = vpop.eup %7374  ;;  %v5058_v30 = vpack.c.bf16 %v8630_v19, %v8630_v19  ;;  %v7196_v19 = vld [vmem:[%s8950_s6 + $0x18] sm:$0xff]  }
0x11d0   :  { %v5041_v36 = vmul.f32 %v7375_v2, %v8687_v28 }
0x11d1   :  { %v5046_v33 = vpack.c.bf16 %v5038_v31, %v5038_v31  ;;  %v5385_v4 = vsel %vm984_vm3, %v5058_v30, 0 }
0x11d2   :  { %v5049_v57 = vpack.c.bf16 %v5041_v36, %v5041_v36 }
0x11d3   :  { %v5026_v0 = vpop.xlane.xlu1 %5025  ;;  %7071 = vmatmul.mubr.msk.bf16.vlgmr.msra.gmra.mrb[180].mxu1 %vm876_vm4, %v5046_v33  ;;  %7077 = vmatmul.mubr.msk.bf16.vlgmr.msra.gmra.mrb[176].mxu0 %vm876_vm4, %v5047_v42 }
0x11d4   :  { %7378 = vrcp.f32 %v5026_v0  ;;  %7081 = vmatpush3.bf16.msra.mxu1 %v5293_v10  ;;  %7087 = vmatpush3.bf16.msra.mxu0 %v5339_v53 }
0x11d5   :  { %7082 = vmatprep.mubr.msk.bf16.mxu1 %vm7405_vm1, %v7404_v15  ;;  %7088 = vmatprep.mubr.msk.bf16.mxu0 %vm7405_vm1, %v7404_v15 }
0x11d6   :  { %v7377_v9 = vpop.eup %7376  ;;  %7092 = vmatprep.subr.bf16.mxu1 %v7404_v15  ;;  %7098 = vmatprep.subr.bf16.mxu0 %v7196_v19 }
0x11d7   :  { %v5040_v46 = vmul.f32 %v7377_v9, %v8692_v45  ;;  %v7197_v45 = vld [vmem:[%s8950_s6 + $0x10] sm:$0xff]  }
0x11d9   :  { %v5048_v49 = vpack.c.bf16 %v5040_v46, %v5040_v46 }
0x11db   :  { %7083 = vmatmul.mubr.msk.bf16.vlgmr.msra.gmra.mrb[184].mxu1 %vm876_vm4, %v5048_v49  ;;  %7089 = vmatmul.mubr.msk.bf16.vlgmr.msra.gmra.mrb[180].mxu0 %vm876_vm4, %v5049_v57 }
0x11dc   :  { %7093 = vmatpush3.bf16.msra.mxu1 %v5385_v4  ;;  %7094 = vmatprep.mubr.msk.bf16.mxu1 %vm7405_vm1, %v7404_v15 }
0x11dd   :  { %7099 = vmatpush3.bf16.msra.mxu0 %v7196_v19 }
0x11de   :  { %v7379_v28 = vpop.eup %7378  ;;  %7108 = vmatprep.subr.bf16.mxu0 %v7197_v45 }
0x11df   :  { %v5042_v16 = vmul.f32 %v7379_v28, %v8696_v3 }
0x11e1   :  { %v5050_v7 = vpack.c.bf16 %v5042_v16, %v5042_v16 }
0x11e3   :  { %7095 = vmatmul.mubr.msk.bf16.vlgmr.msra.gmra.mrb[188].mxu1 %vm876_vm4, %v5050_v7 }
0x1296   :  { %v5099_v61 = vpop.f32.mrb[168].mxu0 }
0x1297   :  { %v7054_v55 = vpop.f32.mrb[169].mxu0 }
0x1298   :  { %v5102_v15 = vpop.f32.mrb[170].mxu0 }
0x1299   :  { %v7055_v11 = vpop.f32.mrb[171].mxu0 }
0x129e   :  { %v5145_v50 = vpop.f32.mrb[176].mxu1  ;;  %v5191_v3 = vpop.f32.mrb[172].mxu0 }
0x129f   :  { %v5427_v51 = vpack.c.bf16 %v5145_v50, %v5099_v61  ;;  %v7060_v39 = vpop.f32.mrb[177].mxu1  ;;  %v7066_v34 = vpop.f32.mrb[173].mxu0 }
0x12a0   :  { %v5148_v1 = vpop.f32.mrb[178].mxu1  ;;  %v5194_v25 = vpop.f32.mrb[174].mxu0 }
0x12a1   :  { %v7061_v23 = vpop.f32.mrb[179].mxu1  ;;  %v7067_v13 = vpop.f32.mrb[175].mxu0  ;;  %7100 = vmatprep.mubr.msk.bf16.mxu0 %vm499_vm2, %v5427_v51 }
0x12a6   :  { %v5237_v22 = vpop.f32.mrb[180].mxu1  ;;  %v5283_v43 = vpop.f32.mrb[176].mxu0 }
0x12a7   :  { %v5428_v26 = vpack.c.bf16 %v5237_v22, %v5191_v3  ;;  %v7072_v35 = vpop.f32.mrb[181].mxu1  ;;  %v7078_v38 = vpop.f32.mrb[177].mxu0 }
0x12a8   :  { %v5240_v20 = vpop.f32.mrb[182].mxu1  ;;  %v5286_v29 = vpop.f32.mrb[178].mxu0 }
0x12a9   :  { %v7073_v24 = vpop.f32.mrb[183].mxu1  ;;  %v7079_v41 = vpop.f32.mrb[179].mxu0  ;;  %7101 = vmatmul.mubr.msk.bf16.vlgmr.msra.gmra.mrb[184].mxu0 %vm499_vm2, %v5428_v26 }
0x12aa   :  { %7109 = vmatpush3.bf16.msra.mxu0 %v7197_v45  ;;  %v7198_v41 = vld [vmem:[%s8952_s10 + $0x10] sm:$0xff]  }
0x12ab   :  { %7118 = vmatprep.subr.bf16.mxu1 %v7198_v41 }
0x12ac   :  { %7119 = vmatpush3.bf16.msra.mxu1 %v7198_v41 }
0x12ae   :  { %v5329_v59 = vpop.f32.mrb[184].mxu1  ;;  %v5375_v48 = vpop.f32.mrb[180].mxu0 }
0x12af   :  { %v5429_v47 = vpack.c.bf16 %v5329_v59, %v5283_v43  ;;  %v7084_v31 = vpop.f32.mrb[185].mxu1  ;;  %v7090_v33 = vpop.f32.mrb[181].mxu0  ;;  %v7199_v59 = vld [vmem:[%s8952_s10 + $0x18] sm:$0xff]  }
0x12b0   :  { %v5332_v42 = vpop.f32.mrb[186].mxu1  ;;  %v5378_v2 = vpop.f32.mrb[182].mxu0  ;;  %7120 = vmatprep.subr.bf16.mxu1 %v7199_v59 }
0x12b1   :  { %v7085_v53 = vpop.f32.mrb[187].mxu1  ;;  %v7091_v10 = vpop.f32.mrb[183].mxu0  ;;  %7104 = vmatprep.mubr.msk.bf16.mxu0 %vm499_vm2, %v5429_v47  ;;  %7121 = vmatpush3.bf16.msra.mxu1 %v7199_v59 }
0x12b6   :  { %v5421_v0 = vpop.f32.mrb[188].mxu1 }
0x12b7   :  { %v5430_v36 = vpack.c.bf16 %v5421_v0, %v5375_v48  ;;  %v7096_v9 = vpop.f32.mrb[189].mxu1  ;;  %v8848_v48 = vld [vmem:[%s8953_s12 + $0x20] sm:$0xff]  }
0x12b8   :  { %v5424_v30 = vpop.f32.mrb[190].mxu1  ;;  %7130 = vmatprep.subr.bf16.mxu1 %v8848_v48 }
0x12b9   :  { %v7097_v46 = vpop.f32.mrb[191].mxu1  ;;  %7105 = vmatmul.mubr.msk.bf16.gmra.mrb[188].mxu0 %vm499_vm2, %v5430_v36 }
0x12ba   :  { %7110 = vmatprep.mubr.msk.bf16.mxu0 %vm499_vm2, %v4328_v63 }
0x12c1   :  { %7111 = vmatmul.mubr.msk.bf16.vlgmr.msra.gmra.mrb[184].mxu0 %vm499_vm2, %v4329_v58 }
0x12c2   :  { %7114 = vmatprep.mubr.msk.bf16.mxu0 %vm499_vm2, %v4330_v54 }
0x12c9   :  { %7115 = vmatmul.mubr.msk.bf16.gmra.mrb[188].mxu0 %vm499_vm2, %v4331_v44 }
0x1394   :  { %v7112_v49 = vpop.f32.mrb[184].mxu0 }
0x1395   :  { %v5599_v60 = vadd.f32 %v7112_v49, %v8222_v62  ;;  %v5566_v14 = vpop.f32.mrb[185].mxu0 }
0x1396   :  { %v5597_v63 = vadd.f32 %v5566_v14, %v8225_v6  ;;  %v7113_v52 = vpop.f32.mrb[186].mxu0 }
0x1397   :  { %v8777_v58 = vadd.f32 %v6239_v27, %v5599_v60  ;;  %v5600_v56 = vadd.f32 %v7113_v52, %v8228_v17  ;;  %v5569_v8 = vpop.f32.mrb[187].mxu0 }
0x1398   :  { %v5598_v54 = vadd.f32 %v5569_v8, %v8233_v12  ;;  %v8781_v21 = vadd.f32 %v6239_v27, %v5597_v63 }
0x1399   :  { %v8783_v32 = vadd.f32 %v6239_v27, %v5600_v56  ;;  %v5631_v44 = vsel %vm58_vm0, %v8777_v58, 0.0  ;;  %v5659_v12 = vmul.f32 %v8777_v58, %v8777_v58 }
0x139a   :  { %5632 = vadd.xlane.f32.xlu0 %v5631_v44  ;;  %v8787_v62 = vadd.f32 %v6239_v27, %v5598_v54  ;;  %v5625_v17 = vsel %vm58_vm0, %v8781_v21, 0.0  ;;  %v5657_v55 = vmul.f32 %v8781_v21, %v8781_v21 }
0x139b   :  { %v5634_v6 = vsel %vm58_vm0, %v8783_v32, 0.0  ;;  %v5660_v19 = vmul.f32 %v8783_v32, %v8783_v32  ;;  %v5671_v61 = vsel %vm58_vm0, %v5659_v12, 0.0 }
0x139c   :  { %5635 = vadd.xlane.f32.xlu1 %v5634_v6  ;;  %v7116_v57 = vpop.f32.mrb[188].mxu0  ;;  %v5628_v7 = vsel %vm58_vm0, %v8787_v62, 0.0  ;;  %v5658_v50 = vmul.f32 %v8787_v62, %v8787_v62 }
0x139d   :  { %v5582_v4 = vpop.f32.mrb[189].mxu0  ;;  %v5603_v45 = vadd.f32 %v7116_v57, %v8253_v37  ;;  %v5674_v11 = vsel %vm58_vm0, %v5660_v19, 0.0  ;;  %v5665_v37 = vsel %vm58_vm0, %v5657_v55, 0.0 }
0x139e   :  { %5626 = vadd.xlane.f32.xlu0 %v5625_v17  ;;  %v7117_v28 = vpop.f32.mrb[190].mxu0  ;;  %v5601_v51 = vadd.f32 %v5582_v4, %v8257_v40  ;;  %v5668_v1 = vsel %vm58_vm0, %v5658_v50, 0.0 }
0x139f   :  { %v5585_v16 = vpop.f32.mrb[191].mxu0  ;;  %v5604_v15 = vadd.f32 %v7117_v28, %v8260_v18  ;;  %v8807_v3 = vadd.f32 %v6239_v27, %v5603_v45 }
0x13a0   :  { %5629 = vadd.xlane.f32.xlu1 %v5628_v7  ;;  %v5602_v34 = vadd.f32 %v5585_v16, %v8265_v5  ;;  %v8815_v18 = vadd.f32 %v6239_v27, %v5601_v51 }
0x13a1   :  { %v8811_v39 = vadd.f32 %v6239_v27, %v5604_v15  ;;  %v5643_v25 = vsel %vm58_vm0, %v8807_v3, 0.0  ;;  %v5663_v35 = vmul.f32 %v8807_v3, %v8807_v3 }
0x13a2   :  { %5672 = vadd.xlane.f32.xlu0 %v5671_v61  ;;  %v8819_v23 = vadd.f32 %v6239_v27, %v5602_v34  ;;  %v5637_v13 = vsel %vm58_vm0, %v8815_v18, 0.0  ;;  %v5661_v5 = vmul.f32 %v8815_v18, %v8815_v18 }
0x13a3   :  { %v5646_v40 = vsel %vm58_vm0, %v8811_v39, 0.0  ;;  %v5664_v20 = vmul.f32 %v8811_v39, %v8811_v39  ;;  %v5683_v29 = vsel %vm58_vm0, %v5663_v35, 0.0 }
0x13a4   :  { %5675 = vadd.xlane.f32.xlu1 %v5674_v11  ;;  %v5640_v22 = vsel %vm58_vm0, %v8819_v23, 0.0  ;;  %v5662_v43 = vmul.f32 %v8819_v23, %v8819_v23  ;;  %v5677_v26 = vsel %vm58_vm0, %v5661_v5, 0.0 }
0x13a5   :  { %v5686_v24 = vsel %vm58_vm0, %v5664_v20, 0.0 }
0x13a6   :  { %5666 = vadd.xlane.f32.xlu0 %v5665_v37  ;;  %v5680_v38 = vsel %vm58_vm0, %v5662_v43, 0.0 }
0x13a8   :  { %5669 = vadd.xlane.f32.xlu1 %v5668_v1 }
0x13aa   :  { %5644 = vadd.xlane.f32.xlu0 %v5643_v25 }
0x13ac   :  { %5647 = vadd.xlane.f32.xlu1 %v5646_v40 }
0x13ae   :  { %5638 = vadd.xlane.f32.xlu0 %v5637_v13 }
0x13b0   :  { %5641 = vadd.xlane.f32.xlu1 %v5640_v22 }
0x13b2   :  { %5678 = vadd.xlane.f32.xlu0 %v5677_v26 }
0x13b4   :  { %5681 = vadd.xlane.f32.xlu1 %v5680_v38 }
0x13b6   :  { %5684 = vadd.xlane.f32.xlu0 %v5683_v29 }
0x13b8   :  { %5687 = vadd.xlane.f32.xlu1 %v5686_v24 }
0x1427   :  { %v5633_v47 = vpop.xlane.xlu0 %5632 }
0x1428   :  { %v5651_v42 = vmul.f32 0.03125, %v5633_v47 }
0x1429   :  { %v5636_v31 = vpop.xlane.xlu1 %5635 }
0x142a   :  { %v5652_v53 = vmul.f32 0.03125, %v5636_v31  ;;  %v5699_v0 = vmul.f32 %v5651_v42, %v5651_v42  ;;  %v5715_v13 = vsub.f32 %v8777_v58, %v5651_v42  ;;  %v6242_v31 = vld [vmem:[%s8954_s8 + $0x1] ss:$0 sm:$0xff] }
0x142b   :  { %v5627_v33 = vpop.xlane.xlu0 %5626 }
0x142c   :  { %v5649_v36 = vmul.f32 0.03125, %v5627_v33  ;;  %v5700_v46 = vmul.f32 %v5652_v53, %v5652_v53  ;;  %v5716_v34 = vsub.f32 %v8783_v32, %v5652_v53 }
0x142d   :  { %v5630_v2 = vpop.xlane.xlu1 %5629 }
0x142e   :  { %v5650_v49 = vmul.f32 0.03125, %v5630_v2  ;;  %v5697_v63 = vmul.f32 %v5649_v36, %v5649_v36  ;;  %v5713_v26 = vsub.f32 %v8781_v21, %v5649_v36 }
0x142f   :  { %v5673_v10 = vpop.xlane.xlu0 %5672 }
0x1430   :  { %v5691_v9 = vmul.f32 0.03125, %v5673_v10  ;;  %v5698_v44 = vmul.f32 %v5650_v49, %v5650_v49  ;;  %v5714_v33 = vsub.f32 %v8787_v62, %v5650_v49  ;;  %v6243_v49 = vld [vmem:[%s8955_s9 + $0x1] ss:$0 sm:$0xff] }
0x1431   :  { %v5676_v30 = vpop.xlane.xlu1 %5675 }
0x1432   :  { %v5707_v27 = vsub.f32 %v5691_v9, %v5699_v0  ;;  %v5692_v60 = vmul.f32 0.03125, %v5676_v30 }
0x1433   :  { %v5667_v14 = vpop.xlane.xlu0 %5666 }
0x1434   :  { %v5723_v52 = vadd.f32 1e-05, %v5707_v27  ;;  %v5708_v56 = vsub.f32 %v5692_v60, %v5700_v46  ;;  %v5689_v8 = vmul.f32 0.03125, %v5667_v14 }
0x1435   :  { %v5670_v54 = vpop.xlane.xlu1 %5669 }
0x1436   :  { %v5724_v6 = vadd.f32 1e-05, %v5708_v56  ;;  %v5705_v57 = vsub.f32 %v5689_v8, %v5697_v63  ;;  %v5690_v4 = vmul.f32 0.03125, %v5670_v54  ;;  %7380 = vrsqrt.f32 %v5723_v52 }
0x1437   :  { %v5645_v17 = vpop.xlane.xlu0 %5644 }
0x1438   :  { %7382 = vrsqrt.f32 %v5724_v6  ;;  %v5721_v12 = vadd.f32 1e-05, %v5705_v57  ;;  %v5706_v28 = vsub.f32 %v5690_v4, %v5698_v44  ;;  %v8853_v15 = vmul.f32 0.03125, %v5645_v17  ;;  %v7201_v17 = vld [vmem:[%s8953_s12 + $0x28] sm:$0xff]  }
0x1439   :  { %v5648_v16 = vpop.xlane.xlu1 %5647 }
0x143a   :  { %7384 = vrsqrt.f32 %v5721_v12  ;;  %v5722_v7 = vadd.f32 1e-05, %v5706_v28  ;;  %v8856_v1 = vmul.f32 0.03125, %v5648_v16  ;;  %v5703_v38 = vmul.f32 %v8853_v15, %v8853_v15 }
0x143b   :  { %v5639_v19 = vpop.xlane.xlu0 %5638 }
0x143c   :  { %7386 = vrsqrt.f32 %v5722_v7  ;;  %v5653_v45 = vmul.f32 0.03125, %v5639_v19  ;;  %v5704_v42 = vmul.f32 %v8856_v1, %v8856_v1 }
0x143d   :  { %v5642_v61 = vpop.xlane.xlu1 %5641 }
0x143e   :  { %v8851_v55 = vmul.f32 0.03125, %v5642_v61  ;;  %v5701_v50 = vmul.f32 %v5653_v45, %v5653_v45  ;;  %v5717_v12 = vsub.f32 %v8815_v18, %v5653_v45  ;;  %v5719_v61 = vsub.f32 %v8807_v3, %v8853_v15 }
0x143f   :  { %v5679_v11 = vpop.xlane.xlu0 %5678  ;;  %v5720_v45 = vsub.f32 %v8811_v39, %v8856_v1  ;;  %v7202_v1 = vld [vmem:[%s8953_s12 + $0x30] sm:$0xff]  }
0x1440   :  { %v5693_v51 = vmul.f32 0.03125, %v5679_v11  ;;  %v7381_v37 = vpop.eup %7380  ;;  %v5702_v5 = vmul.f32 %v8851_v55, %v8851_v55  ;;  %v5718_v16 = vsub.f32 %v8819_v23, %v8851_v55 }
0x1441   :  { %v5682_v25 = vpop.xlane.xlu1 %5681  ;;  %v5739_v24 = vmul.f32 %v7381_v37, %v5715_v13 }
0x1442   :  { %v7383_v40 = vpop.eup %7382  ;;  %v5709_v22 = vsub.f32 %v5693_v51, %v5701_v50  ;;  %v5694_v43 = vmul.f32 0.03125, %v5682_v25 }
0x1443   :  { %v5740_v35 = vmul.f32 %v7383_v40, %v5716_v34  ;;  %v5685_v20 = vpop.xlane.xlu0 %5684  ;;  %v5753_v63 = vmul.f32 %v6242_v31, %v5739_v24 }
0x1444   :  { %v7385_v29 = vpop.eup %7384  ;;  %v5725_v41 = vadd.f32 1e-05, %v5709_v22  ;;  %v5710_v59 = vsub.f32 %v5694_v43, %v5702_v5  ;;  %v5695_v47 = vmul.f32 0.03125, %v5685_v20 }
0x1445   :  { %v5688_v2 = vpop.xlane.xlu1 %5687  ;;  %v5737_v53 = vmul.f32 %v7385_v29, %v5713_v26  ;;  %v5754_v10 = vmul.f32 %v6242_v31, %v5740_v35  ;;  %v5767_v6 = vadd.f32 %v6243_v49, %v5753_v63  ;;  %v7203_v35 = vld [vmem:[%s8953_s12 + $0x38] sm:$0xff]  }
0x1446   :  { %v7387_v0 = vpop.eup %7386  ;;  %7388 = vrsqrt.f32 %v5725_v41  ;;  %v5726_v36 = vadd.f32 1e-05, %v5710_v59  ;;  %v5711_v9 = vsub.f32 %v5695_v47, %v5703_v38  ;;  %v5696_v30 = vmul.f32 0.03125, %v5688_v2  ;;  %v6249_v38 = vld [vmem:[%s8956_s11 + $0x1] ss:$0 sm:$0xff] }
0x1447   :  { %v5738_v46 = vmul.f32 %v7387_v0, %v5714_v33  ;;  %v5751_v27 = vmul.f32 %v6242_v31, %v5737_v53  ;;  %v5768_v8 = vadd.f32 %v6243_v49, %v5754_v10 }
0x1448   :  { %7390 = vrsqrt.f32 %v5726_v36  ;;  %v5727_v60 = vadd.f32 1e-05, %v5711_v9  ;;  %v5712_v14 = vsub.f32 %v5696_v30, %v5704_v42 }
0x1449   :  { %v5752_v52 = vmul.f32 %v6242_v31, %v5738_v46  ;;  %v5765_v54 = vadd.f32 %v6243_v49, %v5751_v27  ;;  %v5774_v4 = vpack.c.bf16 %v5768_v8, %v5767_v6 }
0x144a   :  { %7392 = vrsqrt.f32 %v5727_v60  ;;  %v5728_v56 = vadd.f32 1e-05, %v5712_v14 }
0x144b   :  { %v5766_v44 = vadd.f32 %v6243_v49, %v5752_v52 }
0x144c   :  { %7394 = vrsqrt.f32 %v5728_v56 }
0x144d   :  { %v5773_v57 = vpack.c.bf16 %v5766_v44, %v5765_v54 }
0x144f   :  { %7122 = vmatprep.mubr.msk.bf16.mxu1 %vm58_vm0, %v5773_v57  ;;  %v6265_v57 = vld [vmem:[%s8957_s13 + $0x1] ss:$0 sm:$0xff] }
0x1450   :  { %v7389_v28 = vpop.eup %7388  ;;  %7123 = vmatmul.mubr.msk.bf16.vlgmr.msra.gmra.mrb[192].mxu1 %vm58_vm0, %v5774_v4 }
0x1451   :  { %v5741_v7 = vmul.f32 %v7389_v28, %v5717_v12  ;;  %7131 = vmatpush3.bf16.msra.mxu1 %v8848_v48 }
0x1452   :  { %v7391_v19 = vpop.eup %7390  ;;  %7132 = vmatprep.subr.bf16.mxu1 %v7201_v17 }
0x1453   :  { %v5742_v11 = vmul.f32 %v7391_v19, %v5718_v16  ;;  %v5755_v50 = vmul.f32 %v6242_v31, %v5741_v7 }
0x1454   :  { %v7393_v51 = vpop.eup %7392 }
0x1455   :  { %v5756_v37 = vmul.f32 %v6242_v31, %v5742_v11  ;;  %v5743_v34 = vmul.f32 %v7393_v51, %v5719_v61  ;;  %7133 = vmatpush3.bf16.msra.mxu1 %v7201_v17  ;;  %v5769_v40 = vadd.f32 %v6243_v49, %v5755_v50 }
0x1456   :  { %v7395_v25 = vpop.eup %7394  ;;  %7134 = vmatprep.subr.bf16.mxu1 %v7202_v1 }
0x1457   :  { %v5770_v55 = vadd.f32 %v6243_v49, %v5756_v37  ;;  %v5744_v13 = vmul.f32 %v7395_v25, %v5720_v45  ;;  %v5757_v5 = vmul.f32 %v6242_v31, %v5743_v34 }
0x1459   :  { %v5775_v48 = vpack.c.bf16 %v5770_v55, %v5769_v40  ;;  %v5758_v22 = vmul.f32 %v6242_v31, %v5744_v13  ;;  %v5771_v43 = vadd.f32 %v6243_v49, %v5757_v5  ;;  %7135 = vmatpush3.bf16.msra.mxu1 %v7202_v1 }
0x145a   :  { %7136 = vmatprep.subr.bf16.mxu1 %v7203_v35 }
0x145b   :  { %7126 = vmatprep.mubr.msk.bf16.mxu1 %vm58_vm0, %v5775_v48  ;;  %v5772_v15 = vadd.f32 %v6243_v49, %v5758_v22 }
0x145d   :  { %v5776_v26 = vpack.c.bf16 %v5772_v15, %v5771_v43  ;;  %7137 = vmatpush3.bf16.msra.mxu1 %v7203_v35 }
0x145f   :  { %7127 = vmatmul.mubr.msk.bf16.gmra.mrb[196].mxu1 %vm58_vm0, %v5776_v26 }
0x1523   :  { %v7124_v20 = vpop.f32.mrb[192].mxu1 }
0x1524   :  { %v5857_v29 = vadd.f32 %v7124_v20, %v6249_v38  ;;  %v5848_v24 = vpop.f32.mrb[193].mxu1 }
0x1525   :  { %v5849_v41 = vadd.f32 %v6249_v38, %v5848_v24  ;;  %v7125_v59 = vpop.f32.mrb[194].mxu1 }
0x1526   :  { %v5860_v47 = vadd.f32 %v7125_v59, %v6249_v38  ;;  %v5851_v31 = vpop.f32.mrb[195].mxu1  ;;  %v5881_v42 = vmax.f32 %v5857_v29, 0.0 }
0x1527   :  { %v5852_v33 = vadd.f32 %v6249_v38, %v5851_v31  ;;  %v5879_v53 = vmax.f32 %v5849_v41, 0.0 }
0x1528   :  { %v5882_v2 = vmax.f32 %v5860_v47, 0.0 }
0x1529   :  { %v5880_v10 = vmax.f32 %v5852_v33, 0.0 }
0x152a   :  { %v5888_v0 = vpack.c.bf16 %v5882_v2, %v5881_v42 }
0x152b   :  { %v5887_v36 = vpack.c.bf16 %v5880_v10, %v5879_v53 }
0x152d   :  { %7138 = vmatprep.mubr.msk.bf16.mxu1 %vm2947_vm5, %v5887_v36 }
0x152e   :  { %7139 = vmatmul.mubr.msk.bf16.vlgmr.msra.gmra.mrb[200].mxu1 %vm2947_vm5, %v5888_v0 }
0x1532   :  { %v7128_v9 = vpop.f32.mrb[196].mxu1 }
0x1533   :  { %v5873_v30 = vadd.f32 %v7128_v9, %v6249_v38  ;;  %v5864_v46 = vpop.f32.mrb[197].mxu1 }
0x1534   :  { %v5865_v27 = vadd.f32 %v6249_v38, %v5864_v46  ;;  %v7129_v60 = vpop.f32.mrb[198].mxu1 }
0x1535   :  { %v5876_v14 = vadd.f32 %v7129_v60, %v6249_v38  ;;  %v5867_v63 = vpop.f32.mrb[199].mxu1  ;;  %v5885_v52 = vmax.f32 %v5873_v30, 0.0 }
0x1536   :  { %v5868_v49 = vadd.f32 %v6249_v38, %v5867_v63  ;;  %v5883_v8 = vmax.f32 %v5865_v27, 0.0 }
0x1537   :  { %v5886_v56 = vmax.f32 %v5876_v14, 0.0 }
0x1538   :  { %v5884_v54 = vmax.f32 %v5868_v49, 0.0 }
0x1539   :  { %v5890_v44 = vpack.c.bf16 %v5886_v56, %v5885_v52 }
0x153a   :  { %v5889_v6 = vpack.c.bf16 %v5884_v54, %v5883_v8 }
0x153c   :  { %7142 = vmatprep.mubr.msk.bf16.mxu1 %vm2947_vm5, %v5889_v6 }
0x153d   :  { %7143 = vmatmul.mubr.msk.bf16.gmra.mrb[204].mxu1 %vm2947_vm5, %v5890_v44 }
0x1601   :  { %v7140_v4 = vpop.f32.mrb[200].mxu1 }
0x1602   :  { %v5987_v17 = vadd.f32 %v7140_v4, %v6265_v57  ;;  %v5978_v12 = vpop.f32.mrb[201].mxu1 }
0x1603   :  { %v5979_v28 = vadd.f32 %v6265_v57, %v5978_v12  ;;  %v7141_v16 = vpop.f32.mrb[202].mxu1 }
0x1604   :  { %v6011_v7 = vadd.f32 %v5987_v17, %v8777_v58  ;;  %v5990_v19 = vadd.f32 %v7141_v16, %v6265_v57  ;;  %v5981_v61 = vpop.f32.mrb[203].mxu1 }
0x1605   :  { %v6009_v11 = vadd.f32 %v5979_v28, %v8781_v21  ;;  %v5982_v50 = vadd.f32 %v6265_v57, %v5981_v61 }
0x1606   :  { %6019 = vst.msk [vmem:[%s8958_s14 + $0x10] sm:$0xff] %vm58_vm0, %v6011_v7  ;;  %v6012_v51 = vadd.f32 %v5990_v19, %v8783_v32 }
0x1607   :  { %6017 = vst.msk [vmem:[%s8958_s14] sm:$0xff] %vm58_vm0, %v6009_v11  ;;  %v6010_v45 = vadd.f32 %v5982_v50, %v8787_v62 }
0x1608   :  { %6020 = vst.msk [vmem:[%s8958_s14 + $0x18] sm:$0xff] %vm58_vm0, %v6012_v51 }
0x1609   :  { %6018 = vst.msk [vmem:[%s8958_s14 + $0x8] sm:$0xff] %vm58_vm0, %v6010_v45 }
0x1610   :  { %v7144_v58 = vpop.f32.mrb[204].mxu1 }
0x1611   :  { %v6003_v21 = vadd.f32 %v7144_v58, %v6265_v57  ;;  %v5994_v32 = vpop.f32.mrb[205].mxu1 }
0x1612   :  { %v5995_v37 = vadd.f32 %v6265_v57, %v5994_v32  ;;  %v7145_v34 = vpop.f32.mrb[206].mxu1 }
0x1613   :  { %v6015_v25 = vadd.f32 %v6003_v21, %v8807_v3  ;;  %v6006_v40 = vadd.f32 %v7145_v34, %v6265_v57  ;;  %v5997_v55 = vpop.f32.mrb[207].mxu1 }
0x1614   :  { %v6013_v62 = vadd.f32 %v5995_v37, %v8815_v18  ;;  %v5998_v13 = vadd.f32 %v6265_v57, %v5997_v55 }
0x1615   :  { %6023 = vst.msk [vmem:[%s8958_s14 + $0x30] sm:$0xff] %vm58_vm0, %v6015_v25  ;;  %v6016_v5 = vadd.f32 %v6006_v40, %v8811_v39 }
0x1616   :  { %6021 = vst.msk [vmem:[%s8958_s14 + $0x20] sm:$0xff] %vm58_vm0, %v6013_v62  ;;  %v6014_v48 = vadd.f32 %v5998_v13, %v8819_v23 }
0x1617   :  { %6024 = vst.msk [vmem:[%s8958_s14 + $0x38] sm:$0xff] %vm58_vm0, %v6016_v5 }
0x1618   :  { %6022 = vst.msk [vmem:[%s8958_s14 + $0x28] sm:$0xff] %vm58_vm0, %v6014_v48 }

</bundles_post_ra>
